<compile_context>
chip_gen: v7x
topology: tpu7x:2x2x1
jax: 0.10.0
libtpu: 0.0.40
codegen_flags: <defaults>
</compile_context>

<pallas_src>
import numpy as np
import jax
import jax.numpy as jnp
from jax import lax
from jax.experimental import pallas as pl
from jax.experimental.pallas import tpu as pltpu

LANE = 128      # each GRU gate (per direction) padded to one full 128-lane slot
SUBLANE = 8     # batch padded to whole sublane groups


def _round_up(x, m):
    return ((x + m - 1) // m) * m


# ------------------------------ Pallas kernel ------------------------------
def encoder_kernel(emb2_ref,      # (T*Bp, 2E)   bf16  [x(t) | x(T-1-t)]
                   wih_ref,       # (2E, 6*LANE) bf16  slots [r_f r_b z_f z_b n_f n_b]
                   gi_bias_ref,   # (1, 6*LANE)  f32   b_ih (+ b_hh for r,z) folded
                   whh_ref,       # (2*LANE, 6*LANE) bf16 block-diagonal
                   bhh_n_ref,     # (1, 2*LANE)  f32   [b_hn_f | b_hn_b]
                   fcw_ref,       # (2*LANE, Dp) bf16
                   fcb_ref,       # (1, Dp)      f32
                   out_ref,       # (T, Bp, 2*LANE) f32
                   hid_ref):      # (Bp, Dp)        f32
    T, Bp, _ = out_ref.shape
    P = LANE

    # Hoisted input projections: every timestep, both directions, all gates in one
    # lane-dense bf16 MXU matmul (f32 accumulate), biases folded in.
    gi_all = jnp.dot(emb2_ref[...], wih_ref[...],
                     preferred_element_type=jnp.float32) + gi_bias_ref[...]   # (T*Bp, 6P)

    whh = whh_ref[...]
    # Hoisted broadcast (JAX does not CSE broadcast_in_dim).
    bhh_n = jnp.broadcast_to(bhh_n_ref[...], (Bp, 2 * P))

    # Fused carried state: lanes [0:P] = forward h, lanes [P:2P] = backward h.
    h = jnp.zeros((Bp, 2 * P), jnp.float32)

    # Fully unrolled recurrence (T is a small compile-time constant).  Step t advances
    # the forward chain at time t and the backward chain at time T-1-t with ONE K=2P
    # matmul, one sigmoid slab and one tanh slab per step.
    for t in range(T):
        gi = gi_all[t * Bp:(t + 1) * Bp, :]                                   # aligned (Bp, 6P)
        gh = jnp.dot(h.astype(jnp.bfloat16), whh,
                     preferred_element_type=jnp.float32)                      # (Bp, 6P)
        rz = jax.nn.sigmoid(gi[:, 0:4 * P] + gh[:, 0:4 * P])                  # [r_f r_b z_f z_b]
        r = rz[:, 0:2 * P]
        z = rz[:, 2 * P:4 * P]
        n = jnp.tanh(gi[:, 4 * P:6 * P] + r * (gh[:, 4 * P:6 * P] + bhh_n))   # [n_f n_b]
        h = (1.0 - z) * n + z * h
        out_ref[t, :, :] = h                                                  # full-lane unmasked store

    # hidden = tanh(fc([h_f_last | h_b_last]))  (fc rows / cols slot-padded)
    hid_ref[...] = jnp.tanh(
        jnp.dot(h.astype(jnp.bfloat16), fcw_ref[...],
                preferred_element_type=jnp.float32) + fcb_ref[...])


# ------------------------------ param padding (wrapper glue) ------------------------------
def _place_gates(dst, w, H, row_off, dir_idx):
    # w: (rows, 3H), gates ordered (r, z, n).  Destination slot for gate g of
    # direction d is 2*g + d  -> column layout [r_f r_b | z_f z_b | n_f n_b],
    # each slot one full 128-lane group (only the first H lanes used).
    rows = w.shape[0]
    for g in range(3):
        s = 2 * g + dir_idx
        dst = dst.at[row_off:row_off + rows,
                     s * LANE:s * LANE + H].set(w[:, g * H:(g + 1) * H])
    return dst


def _prepare_padded_params(params):
    H = params["whh_f"].shape[0]
    E = params["wih_f"].shape[0]
    D = params["fcw"].shape[1]
    Dp = _round_up(D, LANE)

    # Fused input projection: rows 0:E consume x(t) (forward), rows E:2E consume
    # x(T-1-t) (backward) — the wrapper concatenates the time-reversed embedding
    # along the feature axis.
    wih = jnp.zeros((2 * E, 6 * LANE), jnp.float32)
    wih = _place_gates(wih, params["wih_f"], H, 0, 0)
    wih = _place_gates(wih, params["wih_b"], H, E, 1)

    # Folded gi bias: b_ih (all gates) + b_hh (r, z only); b_hh_n is applied inside
    # r*(gh_n + b_hn) per PyTorch GRU semantics.
    def gi_bias_dir(bih, bhh):
        return jnp.concatenate([bih[:, 0:H] + bhh[:, 0:H],            # r
                                bih[:, H:2 * H] + bhh[:, H:2 * H],    # z
                                bih[:, 2 * H:3 * H]], axis=1)         # n
    gi_bias = jnp.zeros((1, 6 * LANE), jnp.float32)
    gi_bias = _place_gates(gi_bias, gi_bias_dir(params["bih_f"], params["bhh_f"]), H, 0, 0)
    gi_bias = _place_gates(gi_bias, gi_bias_dir(params["bih_b"], params["bhh_b"]), H, 0, 1)

    # Block-diagonal recurrent weight: rows 0:LANE carry h_f -> {r_f, z_f, n_f},
    # rows LANE:2*LANE carry h_b -> {r_b, z_b, n_b}.  K=256 fills the v6e/v7x MXU.
    whh = jnp.zeros((2 * LANE, 6 * LANE), jnp.float32)
    whh = _place_gates(whh, params["whh_f"], H, 0, 0)
    whh = _place_gates(whh, params["whh_b"], H, LANE, 1)

    bhh_n = jnp.zeros((1, 2 * LANE), jnp.float32)
    bhh_n = bhh_n.at[:, 0:H].set(params["bhh_f"][:, 2 * H:3 * H])
    bhh_n = bhh_n.at[:, LANE:LANE + H].set(params["bhh_b"][:, 2 * H:3 * H])

    fcw = jnp.zeros((2 * LANE, Dp), jnp.float32)
    fcw = fcw.at[0:H, 0:D].set(params["fcw"][0:H, :])
    fcw = fcw.at[LANE:LANE + H, 0:D].set(params["fcw"][H:2 * H, :])
    fcb = jnp.zeros((1, Dp), jnp.float32)
    fcb = fcb.at[:, 0:D].set(params["fcb"])

    # bf16 MXU feeds; accumulation stays f32 via preferred_element_type in-kernel.
    return (wih.astype(jnp.bfloat16), gi_bias, whh.astype(jnp.bfloat16),
            bhh_n, fcw.astype(jnp.bfloat16), fcb)


# ------------------------------ wrapper ------------------------------
def encoder_forward(src, params):
    # Embedding lookup (gather) stays as plain-JAX glue; dropout is identity (eval / p=0).
    embedded = params["embedding"][src].astype(jnp.float32)       # (T, B, E)
    T, B, E = embedded.shape
    H = params["whh_f"].shape[0]
    D = params["fcw"].shape[1]
    Bp = _round_up(max(B, SUBLANE), SUBLANE)
    Dp = _round_up(D, LANE)

    # Pad batch to whole sublane groups; concatenate x(t) with x(T-1-t) along the
    # feature axis so one matmul yields both directions' gi for every step row.
    emb_pad = jnp.zeros((T, Bp, E), jnp.float32).at[:, :B, :].set(embedded)
    emb2 = jnp.concatenate([emb_pad, emb_pad[::-1]], axis=-1)     # (T, Bp, 2E)
    emb2 = emb2.reshape(T * Bp, 2 * E).astype(jnp.bfloat16)

    wih, gi_bias, whh, bhh_n, fcw, fcb = _prepare_padded_params(params)

    vspec = lambda: pl.BlockSpec(memory_space=pltpu.MemorySpace.VMEM)
    out_pad, hid_pad = pl.pallas_call(
        encoder_kernel,
        out_shape=(
            jax.ShapeDtypeStruct((T, Bp, 2 * LANE), jnp.float32),
            jax.ShapeDtypeStruct((Bp, Dp), jnp.float32),
        ),
        in_specs=[vspec() for _ in range(7)],
        out_specs=(vspec(), vspec()),
        compiler_params=pltpu.CompilerParams(vmem_limit_bytes=32 * 1024 * 1024),
    )(emb2, wih, gi_bias, whh, bhh_n, fcw, fcb)

    # Narrow the lane-dense kernel outputs back to the module layout (wrapper glue).
    out_f = out_pad[:, :B, 0:H]                      # fwd state for time t was written at step t
    out_b = out_pad[::-1, :B, LANE:LANE + H]         # bwd state for time t was written at step T-1-t
    outputs = jnp.concatenate([out_f, out_b], axis=-1)
    hidden = hid_pad[:B, :D]
    return outputs, hidden


# ------------------------------ pure-JAX reference ------------------------------
def _gru_cell_ref(x, h, wih_T, whh_T, bih, bhh, H):
    hp = lax.Precision.HIGHEST
    gi = jnp.dot(x, wih_T, precision=hp) + bih
    gh = jnp.dot(h, whh_T, precision=hp) + bhh
    r = jax.nn.sigmoid(gi[:, 0:H] + gh[:, 0:H])
    z = jax.nn.sigmoid(gi[:, H:2 * H] + gh[:, H:2 * H])
    n = jnp.tanh(gi[:, 2 * H:3 * H] + r * gh[:, 2 * H:3 * H])
    return (1.0 - z) * n + z * h


def encoder_reference(src, params):
    embedded = params["embedding"][src].astype(jnp.float32)
    T, B, E = embedded.shape
    H = params["whh_f"].shape[0]

    def run_dir(emb, wih, whh, bih, bhh):
        def step(h, x):
            h_new = _gru_cell_ref(x, h, wih, whh, bih, bhh, H)
            return h_new, h_new
        h_last, outs = lax.scan(step, jnp.zeros((B, H), jnp.float32), emb)
        return outs, h_last

    out_f, h_f = run_dir(embedded, params["wih_f"], params["whh_f"],
                         params["bih_f"], params["bhh_f"])
    out_b_rev, h_b = run_dir(embedded[::-1], params["wih_b"], params["whh_b"],
                             params["bih_b"], params["bhh_b"])
    out_b = out_b_rev[::-1]
    outputs = jnp.concatenate([out_f, out_b], axis=-1)
    h_cat = jnp.concatenate([h_f, h_b], axis=1)
    hidden = jnp.tanh(jnp.dot(h_cat, params["fcw"],
                              precision=lax.Precision.HIGHEST) + params["fcb"])
    return outputs, hidden


# ------------------------------ param init ------------------------------
def init_params(key, input_dim, emb_dim, enc_hid_dim, dec_hid_dim):
    keys = jax.random.split(key, 12)
    u = lambda k, shape: jax.random.uniform(k, shape, jnp.float32, -0.1, 0.1)
    H, E, D = enc_hid_dim, emb_dim, dec_hid_dim
    return {
        "embedding": u(keys[0], (input_dim, E)),
        # GRU weights stored transposed for x @ W_T layout; gates ordered (r, z, n).
        "wih_f": u(keys[1], (E, 3 * H)), "whh_f": u(keys[2], (H, 3 * H)),
        "bih_f": u(keys[3], (1, 3 * H)), "bhh_f": u(keys[4], (1, 3 * H)),
        "wih_b": u(keys[5], (E, 3 * H)), "whh_b": u(keys[6], (H, 3 * H)),
        "bih_b": u(keys[7], (1, 3 * H)), "bhh_b": u(keys[8], (1, 3 * H)),
        "fcw": u(keys[9], (2 * H, D)), "fcb": u(keys[10], (1, D)),
    }


if __name__ == "__main__":
    # Encoder(input_dim=32, emb_dim=16, enc_hid_dim=32, dec_hid_dim=32, dropout=0.0)
    INPUT_DIM, EMB_DIM, ENC_HID, DEC_HID = 32, 16, 32, 32
    T, B = 8, 2

    key = jax.random.PRNGKey(0)
    k_param, k_src = jax.random.split(key)
    params = init_params(k_param, INPUT_DIM, EMB_DIM, ENC_HID, DEC_HID)
    src = jax.random.randint(k_src, (T, B), 0, INPUT_DIM, dtype=jnp.int32)

    outputs, hidden = jax.block_until_ready(encoder_forward(src, params))

    ref_outputs, ref_hidden = encoder_reference(src, params)
    # bf16 MXU feeds -> relaxed tolerance (review).
    np.testing.assert_allclose(np.asarray(outputs), np.asarray(ref_outputs),
                               atol=2e-2, rtol=2e-2)
    np.testing.assert_allclose(np.asarray(hidden), np.asarray(ref_hidden),
                               atol=2e-2, rtol=2e-2)

    assert outputs.shape == (T, B, 2 * ENC_HID)
    assert hidden.shape == (B, DEC_HID)
    print("KERNEL_OK")
</pallas_src>

<mosaic_0001>
module attributes {stable_mosaic.version = 11 : i64} {
  func.func @encoder_kernel(%arg0: memref<64x32xbf16, #tpu.memory_space<vmem>>, %arg1: memref<32x768xbf16, #tpu.memory_space<vmem>>, %arg2: memref<1x768xf32, #tpu.memory_space<vmem>>, %arg3: memref<256x768xbf16, #tpu.memory_space<vmem>>, %arg4: memref<1x256xf32, #tpu.memory_space<vmem>>, %arg5: memref<256x128xbf16, #tpu.memory_space<vmem>>, %arg6: memref<1x128xf32, #tpu.memory_space<vmem>>, %arg7: memref<8x8x256xf32, #tpu.memory_space<vmem>>, %arg8: memref<8x128xf32, #tpu.memory_space<vmem>>) attributes {dimension_semantics = [], scalar_prefetch = 0 : i64, scratch_operands = 0 : i64, tpu.core_type = #tpu.core_type<tc>} {
    %c0 = arith.constant 0 : index
    %c0_0 = arith.constant 0 : index
    %0 = vector.load %arg0[%c0, %c0_0] : memref<64x32xbf16, #tpu.memory_space<vmem>>, vector<64x32xbf16>
    %c0_1 = arith.constant 0 : index
    %c0_2 = arith.constant 0 : index
    %1 = vector.load %arg1[%c0_1, %c0_2] : memref<32x768xbf16, #tpu.memory_space<vmem>>, vector<32x768xbf16>
    %cst = arith.constant dense<0.000000e+00> : vector<64x768xf32>
    %2 = tpu.matmul %0, %1, %cst {dimension_numbers = #tpu.dot_dimension_numbers<[1], [0], [0], [1], [0, 0, 1, 1], [], []>} : vector<64x32xbf16>, vector<32x768xbf16>, vector<64x768xf32> -> vector<64x768xf32>
    %c0_3 = arith.constant 0 : index
    %c0_4 = arith.constant 0 : index
    %3 = vector.load %arg2[%c0_3, %c0_4] : memref<1x768xf32, #tpu.memory_space<vmem>>, vector<1x768xf32>
    %4 = vector.broadcast %3 : vector<1x768xf32> to vector<64x768xf32>
    %5 = arith.addf %2, %4 : vector<64x768xf32>
    %c0_5 = arith.constant 0 : index
    %c0_6 = arith.constant 0 : index
    %6 = vector.load %arg3[%c0_5, %c0_6] : memref<256x768xbf16, #tpu.memory_space<vmem>>, vector<256x768xbf16>
    %c0_7 = arith.constant 0 : index
    %c0_8 = arith.constant 0 : index
    %7 = vector.load %arg4[%c0_7, %c0_8] : memref<1x256xf32, #tpu.memory_space<vmem>>, vector<1x256xf32>
    %8 = vector.shape_cast %7 : vector<1x256xf32> to vector<1x256xf32>
    %9 = vector.broadcast %8 : vector<1x256xf32> to vector<8x256xf32>
    %cst_9 = arith.constant 0.000000e+00 : f32
    %10 = vector.broadcast %cst_9 : f32 to vector<8x256xf32>
    %11 = vector.extract_strided_slice %5 {offsets = [0, 0], sizes = [8, 768], strides = [1, 1]} : vector<64x768xf32> to vector<8x768xf32>
    %12 = arith.truncf %10 : vector<8x256xf32> to vector<8x256xbf16>
    %cst_10 = arith.constant dense<0.000000e+00> : vector<8x768xf32>
    %13 = tpu.matmul %12, %6, %cst_10 {dimension_numbers = #tpu.dot_dimension_numbers<[1], [0], [0], [1], [0, 0, 1, 1], [], []>} : vector<8x256xbf16>, vector<256x768xbf16>, vector<8x768xf32> -> vector<8x768xf32>
    %14 = vector.extract_strided_slice %11 {offsets = [0, 0], sizes = [8, 512], strides = [1, 1]} : vector<8x768xf32> to vector<8x512xf32>
    %15 = vector.extract_strided_slice %13 {offsets = [0, 0], sizes = [8, 512], strides = [1, 1]} : vector<8x768xf32> to vector<8x512xf32>
    %16 = arith.addf %14, %15 : vector<8x512xf32>
    %17 = arith.negf %16 : vector<8x512xf32>
    %18 = math.exp %17 : vector<8x512xf32>
    %cst_11 = arith.constant 1.000000e+00 : f32
    %19 = vector.broadcast %cst_11 : f32 to vector<8x512xf32>
    %20 = arith.addf %19, %18 : vector<8x512xf32>
    %21 = arith.divf %19, %20 : vector<8x512xf32>
    %22 = vector.extract_strided_slice %21 {offsets = [0, 0], sizes = [8, 256], strides = [1, 1]} : vector<8x512xf32> to vector<8x256xf32>
    %23 = vector.extract_strided_slice %21 {offsets = [0, 256], sizes = [8, 256], strides = [1, 1]} : vector<8x512xf32> to vector<8x256xf32>
    %24 = vector.extract_strided_slice %11 {offsets = [0, 512], sizes = [8, 256], strides = [1, 1]} : vector<8x768xf32> to vector<8x256xf32>
    %25 = vector.extract_strided_slice %13 {offsets = [0, 512], sizes = [8, 256], strides = [1, 1]} : vector<8x768xf32> to vector<8x256xf32>
    %26 = arith.addf %25, %9 : vector<8x256xf32>
    %27 = arith.mulf %22, %26 : vector<8x256xf32>
    %28 = arith.addf %24, %27 : vector<8x256xf32>
    %29 = math.tanh %28 : vector<8x256xf32>
    %cst_12 = arith.constant 1.000000e+00 : f32
    %30 = vector.broadcast %cst_12 : f32 to vector<8x256xf32>
    %31 = arith.subf %30, %23 : vector<8x256xf32>
    %32 = arith.mulf %31, %29 : vector<8x256xf32>
    %33 = arith.mulf %23, %10 : vector<8x256xf32>
    %34 = arith.addf %32, %33 : vector<8x256xf32>
    %c0_13 = arith.constant 0 : index
    %c0_14 = arith.constant 0 : index
    %c0_15 = arith.constant 0 : index
    %35 = vector.load %arg7[%c0_13, %c0_14, %c0_15] : memref<8x8x256xf32, #tpu.memory_space<vmem>>, vector<1x8x256xf32>
    %36 = vector.shape_cast %35 : vector<1x8x256xf32> to vector<8x256xf32>
    %37 = vector.shape_cast %34 : vector<8x256xf32> to vector<1x8x256xf32>
    tpu.vector_store %arg7[%c0_13, %c0_14, %c0_15], %37 {strides = array<i32>} : memref<8x8x256xf32, #tpu.memory_space<vmem>>, vector<1x8x256xf32>,
    %38 = vector.extract_strided_slice %5 {offsets = [8, 0], sizes = [8, 768], strides = [1, 1]} : vector<64x768xf32> to vector<8x768xf32>
    %39 = arith.truncf %34 : vector<8x256xf32> to vector<8x256xbf16>
    %cst_16 = arith.constant dense<0.000000e+00> : vector<8x768xf32>
    %40 = tpu.matmul %39, %6, %cst_16 {dimension_numbers = #tpu.dot_dimension_numbers<[1], [0], [0], [1], [0, 0, 1, 1], [], []>} : vector<8x256xbf16>, vector<256x768xbf16>, vector<8x768xf32> -> vector<8x768xf32>
    %41 = vector.extract_strided_slice %38 {offsets = [0, 0], sizes = [8, 512], strides = [1, 1]} : vector<8x768xf32> to vector<8x512xf32>
    %42 = vector.extract_strided_slice %40 {offsets = [0, 0], sizes = [8, 512], strides = [1, 1]} : vector<8x768xf32> to vector<8x512xf32>
    %43 = arith.addf %41, %42 : vector<8x512xf32>
    %44 = arith.negf %43 : vector<8x512xf32>
    %45 = math.exp %44 : vector<8x512xf32>
    %cst_17 = arith.constant 1.000000e+00 : f32
    %46 = vector.broadcast %cst_17 : f32 to vector<8x512xf32>
    %47 = arith.addf %46, %45 : vector<8x512xf32>
    %48 = arith.divf %46, %47 : vector<8x512xf32>
    %49 = vector.extract_strided_slice %48 {offsets = [0, 0], sizes = [8, 256], strides = [1, 1]} : vector<8x512xf32> to vector<8x256xf32>
    %50 = vector.extract_strided_slice %48 {offsets = [0, 256], sizes = [8, 256], strides = [1, 1]} : vector<8x512xf32> to vector<8x256xf32>
    %51 = vector.extract_strided_slice %38 {offsets = [0, 512], sizes = [8, 256], strides = [1, 1]} : vector<8x768xf32> to vector<8x256xf32>
    %52 = vector.extract_strided_slice %40 {offsets = [0, 512], sizes = [8, 256], strides = [1, 1]} : vector<8x768xf32> to vector<8x256xf32>
    %53 = arith.addf %52, %9 : vector<8x256xf32>
    %54 = arith.mulf %49, %53 : vector<8x256xf32>
    %55 = arith.addf %51, %54 : vector<8x256xf32>
    %56 = math.tanh %55 : vector<8x256xf32>
    %cst_18 = arith.constant 1.000000e+00 : f32
    %57 = vector.broadcast %cst_18 : f32 to vector<8x256xf32>
    %58 = arith.subf %57, %50 : vector<8x256xf32>
    %59 = arith.mulf %58, %56 : vector<8x256xf32>
    %60 = arith.mulf %50, %34 : vector<8x256xf32>
    %61 = arith.addf %59, %60 : vector<8x256xf32>
    %c1 = arith.constant 1 : index
    %c0_19 = arith.constant 0 : index
    %c0_20 = arith.constant 0 : index
    %62 = vector.load %arg7[%c1, %c0_19, %c0_20] : memref<8x8x256xf32, #tpu.memory_space<vmem>>, vector<1x8x256xf32>
    %63 = vector.shape_cast %62 : vector<1x8x256xf32> to vector<8x256xf32>
    %64 = vector.shape_cast %61 : vector<8x256xf32> to vector<1x8x256xf32>
    tpu.vector_store %arg7[%c1, %c0_19, %c0_20], %64 {strides = array<i32>} : memref<8x8x256xf32, #tpu.memory_space<vmem>>, vector<1x8x256xf32>,
    %65 = vector.extract_strided_slice %5 {offsets = [16, 0], sizes = [8, 768], strides = [1, 1]} : vector<64x768xf32> to vector<8x768xf32>
    %66 = arith.truncf %61 : vector<8x256xf32> to vector<8x256xbf16>
    %cst_21 = arith.constant dense<0.000000e+00> : vector<8x768xf32>
    %67 = tpu.matmul %66, %6, %cst_21 {dimension_numbers = #tpu.dot_dimension_numbers<[1], [0], [0], [1], [0, 0, 1, 1], [], []>} : vector<8x256xbf16>, vector<256x768xbf16>, vector<8x768xf32> -> vector<8x768xf32>
    %68 = vector.extract_strided_slice %65 {offsets = [0, 0], sizes = [8, 512], strides = [1, 1]} : vector<8x768xf32> to vector<8x512xf32>
    %69 = vector.extract_strided_slice %67 {offsets = [0, 0], sizes = [8, 512], strides = [1, 1]} : vector<8x768xf32> to vector<8x512xf32>
    %70 = arith.addf %68, %69 : vector<8x512xf32>
    %71 = arith.negf %70 : vector<8x512xf32>
    %72 = math.exp %71 : vector<8x512xf32>
    %cst_22 = arith.constant 1.000000e+00 : f32
    %73 = vector.broadcast %cst_22 : f32 to vector<8x512xf32>
    %74 = arith.addf %73, %72 : vector<8x512xf32>
    %75 = arith.divf %73, %74 : vector<8x512xf32>
    %76 = vector.extract_strided_slice %75 {offsets = [0, 0], sizes = [8, 256], strides = [1, 1]} : vector<8x512xf32> to vector<8x256xf32>
    %77 = vector.extract_strided_slice %75 {offsets = [0, 256], sizes = [8, 256], strides = [1, 1]} : vector<8x512xf32> to vector<8x256xf32>
    %78 = vector.extract_strided_slice %65 {offsets = [0, 512], sizes = [8, 256], strides = [1, 1]} : vector<8x768xf32> to vector<8x256xf32>
    %79 = vector.extract_strided_slice %67 {offsets = [0, 512], sizes = [8, 256], strides = [1, 1]} : vector<8x768xf32> to vector<8x256xf32>
    %80 = arith.addf %79, %9 : vector<8x256xf32>
    %81 = arith.mulf %76, %80 : vector<8x256xf32>
    %82 = arith.addf %78, %81 : vector<8x256xf32>
    %83 = math.tanh %82 : vector<8x256xf32>
    %cst_23 = arith.constant 1.000000e+00 : f32
    %84 = vector.broadcast %cst_23 : f32 to vector<8x256xf32>
    %85 = arith.subf %84, %77 : vector<8x256xf32>
    %86 = arith.mulf %85, %83 : vector<8x256xf32>
    %87 = arith.mulf %77, %61 : vector<8x256xf32>
    %88 = arith.addf %86, %87 : vector<8x256xf32>
    %c2 = arith.constant 2 : index
    %c0_24 = arith.constant 0 : index
    %c0_25 = arith.constant 0 : index
    %89 = vector.load %arg7[%c2, %c0_24, %c0_25] : memref<8x8x256xf32, #tpu.memory_space<vmem>>, vector<1x8x256xf32>
    %90 = vector.shape_cast %89 : vector<1x8x256xf32> to vector<8x256xf32>
    %91 = vector.shape_cast %88 : vector<8x256xf32> to vector<1x8x256xf32>
    tpu.vector_store %arg7[%c2, %c0_24, %c0_25], %91 {strides = array<i32>} : memref<8x8x256xf32, #tpu.memory_space<vmem>>, vector<1x8x256xf32>,
    %92 = vector.extract_strided_slice %5 {offsets = [24, 0], sizes = [8, 768], strides = [1, 1]} : vector<64x768xf32> to vector<8x768xf32>
    %93 = arith.truncf %88 : vector<8x256xf32> to vector<8x256xbf16>
    %cst_26 = arith.constant dense<0.000000e+00> : vector<8x768xf32>
    %94 = tpu.matmul %93, %6, %cst_26 {dimension_numbers = #tpu.dot_dimension_numbers<[1], [0], [0], [1], [0, 0, 1, 1], [], []>} : vector<8x256xbf16>, vector<256x768xbf16>, vector<8x768xf32> -> vector<8x768xf32>
    %95 = vector.extract_strided_slice %92 {offsets = [0, 0], sizes = [8, 512], strides = [1, 1]} : vector<8x768xf32> to vector<8x512xf32>
    %96 = vector.extract_strided_slice %94 {offsets = [0, 0], sizes = [8, 512], strides = [1, 1]} : vector<8x768xf32> to vector<8x512xf32>
    %97 = arith.addf %95, %96 : vector<8x512xf32>
    %98 = arith.negf %97 : vector<8x512xf32>
    %99 = math.exp %98 : vector<8x512xf32>
    %cst_27 = arith.constant 1.000000e+00 : f32
    %100 = vector.broadcast %cst_27 : f32 to vector<8x512xf32>
    %101 = arith.addf %100, %99 : vector<8x512xf32>
    %102 = arith.divf %100, %101 : vector<8x512xf32>
    %103 = vector.extract_strided_slice %102 {offsets = [0, 0], sizes = [8, 256], strides = [1, 1]} : vector<8x512xf32> to vector<8x256xf32>
    %104 = vector.extract_strided_slice %102 {offsets = [0, 256], sizes = [8, 256], strides = [1, 1]} : vector<8x512xf32> to vector<8x256xf32>
    %105 = vector.extract_strided_slice %92 {offsets = [0, 512], sizes = [8, 256], strides = [1, 1]} : vector<8x768xf32> to vector<8x256xf32>
    %106 = vector.extract_strided_slice %94 {offsets = [0, 512], sizes = [8, 256], strides = [1, 1]} : vector<8x768xf32> to vector<8x256xf32>
    %107 = arith.addf %106, %9 : vector<8x256xf32>
    %108 = arith.mulf %103, %107 : vector<8x256xf32>
    %109 = arith.addf %105, %108 : vector<8x256xf32>
    %110 = math.tanh %109 : vector<8x256xf32>
    %cst_28 = arith.constant 1.000000e+00 : f32
    %111 = vector.broadcast %cst_28 : f32 to vector<8x256xf32>
    %112 = arith.subf %111, %104 : vector<8x256xf32>
    %113 = arith.mulf %112, %110 : vector<8x256xf32>
    %114 = arith.mulf %104, %88 : vector<8x256xf32>
    %115 = arith.addf %113, %114 : vector<8x256xf32>
    %c3 = arith.constant 3 : index
    %c0_29 = arith.constant 0 : index
    %c0_30 = arith.constant 0 : index
    %116 = vector.load %arg7[%c3, %c0_29, %c0_30] : memref<8x8x256xf32, #tpu.memory_space<vmem>>, vector<1x8x256xf32>
    %117 = vector.shape_cast %116 : vector<1x8x256xf32> to vector<8x256xf32>
    %118 = vector.shape_cast %115 : vector<8x256xf32> to vector<1x8x256xf32>
    tpu.vector_store %arg7[%c3, %c0_29, %c0_30], %118 {strides = array<i32>} : memref<8x8x256xf32, #tpu.memory_space<vmem>>, vector<1x8x256xf32>,
    %119 = vector.extract_strided_slice %5 {offsets = [32, 0], sizes = [8, 768], strides = [1, 1]} : vector<64x768xf32> to vector<8x768xf32>
    %120 = arith.truncf %115 : vector<8x256xf32> to vector<8x256xbf16>
    %cst_31 = arith.constant dense<0.000000e+00> : vector<8x768xf32>
    %121 = tpu.matmul %120, %6, %cst_31 {dimension_numbers = #tpu.dot_dimension_numbers<[1], [0], [0], [1], [0, 0, 1, 1], [], []>} : vector<8x256xbf16>, vector<256x768xbf16>, vector<8x768xf32> -> vector<8x768xf32>
    %122 = vector.extract_strided_slice %119 {offsets = [0, 0], sizes = [8, 512], strides = [1, 1]} : vector<8x768xf32> to vector<8x512xf32>
    %123 = vector.extract_strided_slice %121 {offsets = [0, 0], sizes = [8, 512], strides = [1, 1]} : vector<8x768xf32> to vector<8x512xf32>
    %124 = arith.addf %122, %123 : vector<8x512xf32>
    %125 = arith.negf %124 : vector<8x512xf32>
    %126 = math.exp %125 : vector<8x512xf32>
    %cst_32 = arith.constant 1.000000e+00 : f32
    %127 = vector.broadcast %cst_32 : f32 to vector<8x512xf32>
    %128 = arith.addf %127, %126 : vector<8x512xf32>
    %129 = arith.divf %127, %128 : vector<8x512xf32>
    %130 = vector.extract_strided_slice %129 {offsets = [0, 0], sizes = [8, 256], strides = [1, 1]} : vector<8x512xf32> to vector<8x256xf32>
    %131 = vector.extract_strided_slice %129 {offsets = [0, 256], sizes = [8, 256], strides = [1, 1]} : vector<8x512xf32> to vector<8x256xf32>
    %132 = vector.extract_strided_slice %119 {offsets = [0, 512], sizes = [8, 256], strides = [1, 1]} : vector<8x768xf32> to vector<8x256xf32>
    %133 = vector.extract_strided_slice %121 {offsets = [0, 512], sizes = [8, 256], strides = [1, 1]} : vector<8x768xf32> to vector<8x256xf32>
    %134 = arith.addf %133, %9 : vector<8x256xf32>
    %135 = arith.mulf %130, %134 : vector<8x256xf32>
    %136 = arith.addf %132, %135 : vector<8x256xf32>
    %137 = math.tanh %136 : vector<8x256xf32>
    %cst_33 = arith.constant 1.000000e+00 : f32
    %138 = vector.broadcast %cst_33 : f32 to vector<8x256xf32>
    %139 = arith.subf %138, %131 : vector<8x256xf32>
    %140 = arith.mulf %139, %137 : vector<8x256xf32>
    %141 = arith.mulf %131, %115 : vector<8x256xf32>
    %142 = arith.addf %140, %141 : vector<8x256xf32>
    %c4 = arith.constant 4 : index
    %c0_34 = arith.constant 0 : index
    %c0_35 = arith.constant 0 : index
    %143 = vector.load %arg7[%c4, %c0_34, %c0_35] : memref<8x8x256xf32, #tpu.memory_space<vmem>>, vector<1x8x256xf32>
    %144 = vector.shape_cast %143 : vector<1x8x256xf32> to vector<8x256xf32>
    %145 = vector.shape_cast %142 : vector<8x256xf32> to vector<1x8x256xf32>
    tpu.vector_store %arg7[%c4, %c0_34, %c0_35], %145 {strides = array<i32>} : memref<8x8x256xf32, #tpu.memory_space<vmem>>, vector<1x8x256xf32>,
    %146 = vector.extract_strided_slice %5 {offsets = [40, 0], sizes = [8, 768], strides = [1, 1]} : vector<64x768xf32> to vector<8x768xf32>
    %147 = arith.truncf %142 : vector<8x256xf32> to vector<8x256xbf16>
    %cst_36 = arith.constant dense<0.000000e+00> : vector<8x768xf32>
    %148 = tpu.matmul %147, %6, %cst_36 {dimension_numbers = #tpu.dot_dimension_numbers<[1], [0], [0], [1], [0, 0, 1, 1], [], []>} : vector<8x256xbf16>, vector<256x768xbf16>, vector<8x768xf32> -> vector<8x768xf32>
    %149 = vector.extract_strided_slice %146 {offsets = [0, 0], sizes = [8, 512], strides = [1, 1]} : vector<8x768xf32> to vector<8x512xf32>
    %150 = vector.extract_strided_slice %148 {offsets = [0, 0], sizes = [8, 512], strides = [1, 1]} : vector<8x768xf32> to vector<8x512xf32>
    %151 = arith.addf %149, %150 : vector<8x512xf32>
    %152 = arith.negf %151 : vector<8x512xf32>
    %153 = math.exp %152 : vector<8x512xf32>
    %cst_37 = arith.constant 1.000000e+00 : f32
    %154 = vector.broadcast %cst_37 : f32 to vector<8x512xf32>
    %155 = arith.addf %154, %153 : vector<8x512xf32>
    %156 = arith.divf %154, %155 : vector<8x512xf32>
    %157 = vector.extract_strided_slice %156 {offsets = [0, 0], sizes = [8, 256], strides = [1, 1]} : vector<8x512xf32> to vector<8x256xf32>
    %158 = vector.extract_strided_slice %156 {offsets = [0, 256], sizes = [8, 256], strides = [1, 1]} : vector<8x512xf32> to vector<8x256xf32>
    %159 = vector.extract_strided_slice %146 {offsets = [0, 512], sizes = [8, 256], strides = [1, 1]} : vector<8x768xf32> to vector<8x256xf32>
    %160 = vector.extract_strided_slice %148 {offsets = [0, 512], sizes = [8, 256], strides = [1, 1]} : vector<8x768xf32> to vector<8x256xf32>
    %161 = arith.addf %160, %9 : vector<8x256xf32>
    %162 = arith.mulf %157, %161 : vector<8x256xf32>
    %163 = arith.addf %159, %162 : vector<8x256xf32>
    %164 = math.tanh %163 : vector<8x256xf32>
    %cst_38 = arith.constant 1.000000e+00 : f32
    %165 = vector.broadcast %cst_38 : f32 to vector<8x256xf32>
    %166 = arith.subf %165, %158 : vector<8x256xf32>
    %167 = arith.mulf %166, %164 : vector<8x256xf32>
    %168 = arith.mulf %158, %142 : vector<8x256xf32>
    %169 = arith.addf %167, %168 : vector<8x256xf32>
    %c5 = arith.constant 5 : index
    %c0_39 = arith.constant 0 : index
    %c0_40 = arith.constant 0 : index
    %170 = vector.load %arg7[%c5, %c0_39, %c0_40] : memref<8x8x256xf32, #tpu.memory_space<vmem>>, vector<1x8x256xf32>
    %171 = vector.shape_cast %170 : vector<1x8x256xf32> to vector<8x256xf32>
    %172 = vector.shape_cast %169 : vector<8x256xf32> to vector<1x8x256xf32>
    tpu.vector_store %arg7[%c5, %c0_39, %c0_40], %172 {strides = array<i32>} : memref<8x8x256xf32, #tpu.memory_space<vmem>>, vector<1x8x256xf32>,
    %173 = vector.extract_strided_slice %5 {offsets = [48, 0], sizes = [8, 768], strides = [1, 1]} : vector<64x768xf32> to vector<8x768xf32>
    %174 = arith.truncf %169 : vector<8x256xf32> to vector<8x256xbf16>
    %cst_41 = arith.constant dense<0.000000e+00> : vector<8x768xf32>
    %175 = tpu.matmul %174, %6, %cst_41 {dimension_numbers = #tpu.dot_dimension_numbers<[1], [0], [0], [1], [0, 0, 1, 1], [], []>} : vector<8x256xbf16>, vector<256x768xbf16>, vector<8x768xf32> -> vector<8x768xf32>
    %176 = vector.extract_strided_slice %173 {offsets = [0, 0], sizes = [8, 512], strides = [1, 1]} : vector<8x768xf32> to vector<8x512xf32>
    %177 = vector.extract_strided_slice %175 {offsets = [0, 0], sizes = [8, 512], strides = [1, 1]} : vector<8x768xf32> to vector<8x512xf32>
    %178 = arith.addf %176, %177 : vector<8x512xf32>
    %179 = arith.negf %178 : vector<8x512xf32>
    %180 = math.exp %179 : vector<8x512xf32>
    %cst_42 = arith.constant 1.000000e+00 : f32
    %181 = vector.broadcast %cst_42 : f32 to vector<8x512xf32>
    %182 = arith.addf %181, %180 : vector<8x512xf32>
    %183 = arith.divf %181, %182 : vector<8x512xf32>
    %184 = vector.extract_strided_slice %183 {offsets = [0, 0], sizes = [8, 256], strides = [1, 1]} : vector<8x512xf32> to vector<8x256xf32>
    %185 = vector.extract_strided_slice %183 {offsets = [0, 256], sizes = [8, 256], strides = [1, 1]} : vector<8x512xf32> to vector<8x256xf32>
    %186 = vector.extract_strided_slice %173 {offsets = [0, 512], sizes = [8, 256], strides = [1, 1]} : vector<8x768xf32> to vector<8x256xf32>
    %187 = vector.extract_strided_slice %175 {offsets = [0, 512], sizes = [8, 256], strides = [1, 1]} : vector<8x768xf32> to vector<8x256xf32>
    %188 = arith.addf %187, %9 : vector<8x256xf32>
    %189 = arith.mulf %184, %188 : vector<8x256xf32>
    %190 = arith.addf %186, %189 : vector<8x256xf32>
    %191 = math.tanh %190 : vector<8x256xf32>
    %cst_43 = arith.constant 1.000000e+00 : f32
    %192 = vector.broadcast %cst_43 : f32 to vector<8x256xf32>
    %193 = arith.subf %192, %185 : vector<8x256xf32>
    %194 = arith.mulf %193, %191 : vector<8x256xf32>
    %195 = arith.mulf %185, %169 : vector<8x256xf32>
    %196 = arith.addf %194, %195 : vector<8x256xf32>
    %c6 = arith.constant 6 : index
    %c0_44 = arith.constant 0 : index
    %c0_45 = arith.constant 0 : index
    %197 = vector.load %arg7[%c6, %c0_44, %c0_45] : memref<8x8x256xf32, #tpu.memory_space<vmem>>, vector<1x8x256xf32>
    %198 = vector.shape_cast %197 : vector<1x8x256xf32> to vector<8x256xf32>
    %199 = vector.shape_cast %196 : vector<8x256xf32> to vector<1x8x256xf32>
    tpu.vector_store %arg7[%c6, %c0_44, %c0_45], %199 {strides = array<i32>} : memref<8x8x256xf32, #tpu.memory_space<vmem>>, vector<1x8x256xf32>,
    %200 = vector.extract_strided_slice %5 {offsets = [56, 0], sizes = [8, 768], strides = [1, 1]} : vector<64x768xf32> to vector<8x768xf32>
    %201 = arith.truncf %196 : vector<8x256xf32> to vector<8x256xbf16>
    %cst_46 = arith.constant dense<0.000000e+00> : vector<8x768xf32>
    %202 = tpu.matmul %201, %6, %cst_46 {dimension_numbers = #tpu.dot_dimension_numbers<[1], [0], [0], [1], [0, 0, 1, 1], [], []>} : vector<8x256xbf16>, vector<256x768xbf16>, vector<8x768xf32> -> vector<8x768xf32>
    %203 = vector.extract_strided_slice %200 {offsets = [0, 0], sizes = [8, 512], strides = [1, 1]} : vector<8x768xf32> to vector<8x512xf32>
    %204 = vector.extract_strided_slice %202 {offsets = [0, 0], sizes = [8, 512], strides = [1, 1]} : vector<8x768xf32> to vector<8x512xf32>
    %205 = arith.addf %203, %204 : vector<8x512xf32>
    %206 = arith.negf %205 : vector<8x512xf32>
    %207 = math.exp %206 : vector<8x512xf32>
    %cst_47 = arith.constant 1.000000e+00 : f32
    %208 = vector.broadcast %cst_47 : f32 to vector<8x512xf32>
    %209 = arith.addf %208, %207 : vector<8x512xf32>
    %210 = arith.divf %208, %209 : vector<8x512xf32>
    %211 = vector.extract_strided_slice %210 {offsets = [0, 0], sizes = [8, 256], strides = [1, 1]} : vector<8x512xf32> to vector<8x256xf32>
    %212 = vector.extract_strided_slice %210 {offsets = [0, 256], sizes = [8, 256], strides = [1, 1]} : vector<8x512xf32> to vector<8x256xf32>
    %213 = vector.extract_strided_slice %200 {offsets = [0, 512], sizes = [8, 256], strides = [1, 1]} : vector<8x768xf32> to vector<8x256xf32>
    %214 = vector.extract_strided_slice %202 {offsets = [0, 512], sizes = [8, 256], strides = [1, 1]} : vector<8x768xf32> to vector<8x256xf32>
    %215 = arith.addf %214, %9 : vector<8x256xf32>
    %216 = arith.mulf %211, %215 : vector<8x256xf32>
    %217 = arith.addf %213, %216 : vector<8x256xf32>
    %218 = math.tanh %217 : vector<8x256xf32>
    %cst_48 = arith.constant 1.000000e+00 : f32
    %219 = vector.broadcast %cst_48 : f32 to vector<8x256xf32>
    %220 = arith.subf %219, %212 : vector<8x256xf32>
    %221 = arith.mulf %220, %218 : vector<8x256xf32>
    %222 = arith.mulf %212, %196 : vector<8x256xf32>
    %223 = arith.addf %221, %222 : vector<8x256xf32>
    %c7 = arith.constant 7 : index
    %c0_49 = arith.constant 0 : index
    %c0_50 = arith.constant 0 : index
    %224 = vector.load %arg7[%c7, %c0_49, %c0_50] : memref<8x8x256xf32, #tpu.memory_space<vmem>>, vector<1x8x256xf32>
    %225 = vector.shape_cast %224 : vector<1x8x256xf32> to vector<8x256xf32>
    %226 = vector.shape_cast %223 : vector<8x256xf32> to vector<1x8x256xf32>
    tpu.vector_store %arg7[%c7, %c0_49, %c0_50], %226 {strides = array<i32>} : memref<8x8x256xf32, #tpu.memory_space<vmem>>, vector<1x8x256xf32>,
    %227 = arith.truncf %223 : vector<8x256xf32> to vector<8x256xbf16>
    %c0_51 = arith.constant 0 : index
    %c0_52 = arith.constant 0 : index
    %228 = vector.load %arg5[%c0_51, %c0_52] : memref<256x128xbf16, #tpu.memory_space<vmem>>, vector<256x128xbf16>
    %cst_53 = arith.constant dense<0.000000e+00> : vector<8x128xf32>
    %229 = tpu.matmul %227, %228, %cst_53 {dimension_numbers = #tpu.dot_dimension_numbers<[1], [0], [0], [1], [0, 0, 1, 1], [], []>} : vector<8x256xbf16>, vector<256x128xbf16>, vector<8x128xf32> -> vector<8x128xf32>
    %c0_54 = arith.constant 0 : index
    %c0_55 = arith.constant 0 : index
    %230 = vector.load %arg6[%c0_54, %c0_55] : memref<1x128xf32, #tpu.memory_space<vmem>>, vector<1x128xf32>
    %231 = vector.broadcast %230 : vector<1x128xf32> to vector<8x128xf32>
    %232 = arith.addf %229, %231 : vector<8x128xf32>
    %233 = math.tanh %232 : vector<8x128xf32>
    %c0_56 = arith.constant 0 : index
    %c0_57 = arith.constant 0 : index
    %234 = vector.load %arg8[%c0_56, %c0_57] : memref<8x128xf32, #tpu.memory_space<vmem>>, vector<8x128xf32>
    tpu.vector_store %arg8[%c0_56, %c0_57], %233 {strides = array<i32>} : memref<8x128xf32, #tpu.memory_space<vmem>>, vector<8x128xf32>,
    return
  }
}

</mosaic_0001>

<bundles_post_ra>
// kernel: tpu_custom_call.1
= control target key start
LH: loop header
LB: loop body
LE: loop exit
PB: predicated region body
PF: predicated region fallthrough
CT: control target
= control target key end

     0   :  { %14 = vsyncpa [#allocation3], 0  ;;  %s5196_s0 = inlined_call_operand.vmem [shape: bf16[64,32], index: 0, kind: input, shape index: {}]   ;;  %s5197_s1 = inlined_call_operand.hbm [shape: bf16[32,768], index: 1, kind: input, shape index: {}]   ;;  %s5198_s2 = inlined_call_operand.vmem [shape: f32[1,768], index: 2, kind: input, shape index: {}]   ;;  %s5199_s3 = inlined_call_operand.hbm [shape: bf16[256,768], index: 3, kind: input, shape index: {}]   ;;  %s5200_s4 = inlined_call_operand.vmem [shape: f32[1,256], index: 4, kind: input, shape index: {}]   ;;  %s5201_s5 = inlined_call_operand.hbm [shape: bf16[256,128], index: 5, kind: input, shape index: {}]   ;;  %s5202_s6 = inlined_call_operand.vmem [shape: f32[1,128], index: 6, kind: input, shape index: {}]   ;;  %s5203_s7 = inlined_call_operand.hbm [shape: f32[8,8,256], index: 7, kind: output, shape index: {0}]   ;;  %s5204_s8 = inlined_call_operand.hbm [shape: f32[8,128], index: 8, kind: output, shape index: {1}]  }
   0x1   :  { %15 = vsyncpa [#allocation6], 0 }
   0x2   :  { %16 = vsyncpa [#allocation4], 0 }
   0x3   :  { %17 = vsyncpa [#allocation10], 0  ;;  %s3469_s27 = smov [#allocation5]   ;;  %s3470_s29 = smov [#allocation2]  }
   0x4   :  { %s39_s28 = sshll.u32 %s3469_s27, 4  ;;  %s25_s30 = sshll.u32 %s3470_s29, 4  ;;  %s40_s28 = int_to_ptr.vmem [resolvable:$true] %s39_s28  ;;  %s3526_s30 = int_to_ptr.vmem [resolvable:$true] %s25_s30 }
   0x5   :  { %s3351_s11 = scalar_lea.hbm %s5199_s3, 12288 }
   0x6   :  { %p3352_p0 = scmp.ne.s32.totalorder %s5199_s3, %s3351_s11  ;;  %p3355_p1 = scmp.lt.u32.totalorder %s3351_s11, %s5199_s3 }
   0x8   :  { %p3357_p2 = pnand %p3355_p1, %p3352_p0 }
   0xa   :  { %3360 = shalt.err (!%p3357_p2)
}
   0xb   :  { %s3361_s16 = scalar_lea.vmem %s40_s28, 12288  ;;  %p3366_p4 = scmp.lt.s32.totalorder %s40_s28, %s40_s28 }
   0xc   :  { %p3362_p3 = scmp.ne.s32.totalorder %s40_s28, %s3361_s16  ;;  %p3367_p5 = scmp.lt.s32.totalorder %s3361_s16, %s3361_s16 }
   0xe   :  { %p3368_p6 = por %p3367_p5, %p3366_p4 }
  0x10   :  { %p3369_p7 = pnand %p3368_p6, %p3362_p3 }
  0x12   :  { %3372 = shalt.err (!%p3369_p7)
}
  0x13   :  { %s3471_s17 = smov 384   ;;  %s3472_s18 = smov 24  }
  0x14   :  { %45 = dma.hbm_to_vmem [thread:$0]  %s5199_s3, 12288, %s40_s28, [#allocation6], %s3471_s17, %s3471_s17, %s3472_s18  }
  0x15   :  { %s3373_s23 = scalar_lea.hbm %s5197_s1, 1536 }
  0x16   :  { %p3374_p8 = scmp.ne.s32.totalorder %s5197_s1, %s3373_s23  ;;  %p3377_p9 = scmp.lt.u32.totalorder %s3373_s23, %s5197_s1 }
  0x18   :  { %p3379_p10 = pnand %p3377_p9, %p3374_p8 }
  0x1a   :  { %3382 = shalt.err (!%p3379_p10)
}
  0x1b   :  { %s3383_s29 = scalar_lea.vmem %s3526_s30, 1536  ;;  %p3388_p12 = scmp.lt.s32.totalorder %s3526_s30, %s3526_s30 }
  0x1c   :  { %p3384_p11 = scmp.ne.s32.totalorder %s3526_s30, %s3383_s29  ;;  %p3389_p13 = scmp.lt.s32.totalorder %s3383_s29, %s3383_s29 }
  0x1e   :  { %p3390_p0 = por %p3389_p13, %p3388_p12 }
  0x20   :  { %p3391_p1 = pnand %p3390_p0, %p3384_p11 }
  0x22   :  { %3394 = shalt.err (!%p3391_p1)
}
  0x23   :  { %31 = dma.hbm_to_vmem [thread:$0]  %s5197_s1, 1536, %s3526_s30, [#allocation3], %s3471_s17, %s3471_s17, %s3472_s18  }
  0x24   :  { %s3473_s9 = smov [#allocation7]   ;;  %s3395_s13 = scalar_lea.hbm %s5201_s5, 2048 }
  0x25   :  { %s53_s10 = sshll.u32 %s3473_s9, 4  ;;  %p3396_p2 = scmp.ne.s32.totalorder %s5201_s5, %s3395_s13  ;;  %s54_s10 = int_to_ptr.vmem [resolvable:$true] %s53_s10 }
  0x26   :  { %p3399_p3 = scmp.lt.u32.totalorder %s3395_s13, %s5201_s5 }
  0x28   :  { %p3401_p4 = pnand %p3399_p3, %p3396_p2 }
  0x2a   :  { %3404 = shalt.err (!%p3401_p4)
}
  0x2b   :  { %s3405_s20 = scalar_lea.vmem %s54_s10, 2048  ;;  %p3410_p6 = scmp.lt.s32.totalorder %s54_s10, %s54_s10 }
  0x2c   :  { %p3406_p5 = scmp.ne.s32.totalorder %s54_s10, %s3405_s20  ;;  %p3411_p7 = scmp.lt.s32.totalorder %s3405_s20, %s3405_s20 }
  0x2e   :  { %p3412_p8 = por %p3411_p7, %p3410_p6 }
  0x30   :  { %p3413_p9 = pnand %p3412_p8, %p3406_p5 }
  0x32   :  { %3416 = shalt.err (!%p3413_p9)
}
  0x33   :  { %s3474_s1 = smov 64   ;;  %s3475_s30 = smov 4  }
  0x34   :  { %59 = dma.hbm_to_vmem [thread:$0]  %s5201_s5, 2048, %s54_s10, [#allocation6], %s3474_s1, %s3474_s1, %s3475_s30  }
  0x35   :  { %3461 = dma.done.wait [#allocation3], 1536  }
  0x36   :  { %3462 = vsyncadd [#allocation3], 4294965760 }
  0x37   :  { %3463 = dma.done.wait [#allocation6], 14336  }
  0x38   :  { %3464 = vsyncadd [#allocation6], 4294952960  ;;  %v5209_v0 = vmov 0   ;;  %v2815_v1 = vld [vmem:[#allocation2 + $0x4] ss:$24 sps:$4 sm:$0xff]   ;;  %vm204_vm0 = vcmask 261120  }
  0x39   :  { %249 = vmatprep.mubr.bf16.mxu0 %v5209_v0  ;;  %322 = vmatprep.mubr.bf16.mxu1 %v5209_v0  ;;  %v2817_v2 = vld [vmem:[#allocation2 + $0xc] ss:$24 sps:$4 sm:$0xff]   ;;  %v2819_v3 = vld [vmem:[#allocation2] ss:$24 sps:$4 sm:$0xff]   ;;  %v2823_v6 = vld [vmem:[#allocation2 + $0x3c] ss:$24 sps:$4 sm:$0xff]  }
  0x3a   :  { %217 = vmatprep.subr.bf16.mxu0 %v2815_v1  ;;  %v2820_v4 = vld [vmem:[#allocation2 + $0x8] ss:$24 sps:$4 sm:$0xff]   ;;  %290 = vmatprep.subr.bf16.mxu1 %v2817_v2  ;;  %v2821_v5 = vld [vmem:[#allocation2 + $0x34] ss:$24 sps:$4 sm:$0xff]   ;;  %v2826_v8 = vld [vmem:[#allocation2 + $0x38] ss:$24 sps:$4 sm:$0xff]  }
  0x3b   :  { %218 = vmatpush1.bf16.msra.mxu0 %v2819_v3  ;;  %291 = vmatpush1.bf16.msra.mxu1 %v2820_v4  ;;  %v2825_v7 = vld [vmem:[#allocation2 + $0x30] ss:$24 sps:$4 sm:$0xff]   ;;  %v3574_v9 = vld [vmem:[%s5196_s0] sm:$0xff]   ;;  %v3581_v12 = vld [vmem:[#allocation5 + $0x34] ss:$24 sps:$4 sm:$0xff]  }
  0x3c   :  { %219 = vmatprep.subr.bf16.mxu0 %v2821_v5  ;;  %292 = vmatprep.subr.bf16.mxu1 %v2823_v6  ;;  %v3576_v10 = vld [vmem:[#allocation5 + $0x4] ss:$24 sps:$4 sm:$0xff]   ;;  %v3578_v11 = vld [vmem:[#allocation5] ss:$24 sps:$4 sm:$0xff]   ;;  %v3588_v13 = vld [vmem:[#allocation5 + $0x30] ss:$24 sps:$4 sm:$0xff]  }
  0x3d   :  { %v3592_v14 = vld [vmem:[#allocation5 + $0x64] ss:$24 sps:$4 sm:$0xff]   ;;  %v3598_v15 = vld [vmem:[%s5196_s0 + $0x8] sm:$0xff]   ;;  %v3600_v16 = vld [vmem:[#allocation5 + $0x60] ss:$24 sps:$4 sm:$0xff]  }
  0x3e   :  { %v2847_v17 = vld [vmem:[#allocation2 + $0x14] ss:$24 sps:$4 sm:$0xff]   ;;  %v2845_v19 = vld [vmem:[#allocation2 + $0x10] ss:$24 sps:$4 sm:$0xff]   ;;  %v3610_v21 = vld [vmem:[#allocation5 + $0xc4] ss:$24 sps:$4 sm:$0xff]  }
  0x3f   :  { %220 = vmatpush1.bf16.msra.mxu0 %v2825_v7  ;;  %293 = vmatpush1.bf16.msra.mxu1 %v2826_v8  ;;  %v3604_v18 = vld [vmem:[#allocation5 + $0x94] ss:$24 sps:$4 sm:$0xff]   ;;  %v3608_v20 = vld [vmem:[#allocation5 + $0x90] ss:$24 sps:$4 sm:$0xff]   ;;  %v2855_v22 = vld [vmem:[#allocation2 + $0x40] ss:$24 sps:$4 sm:$0xff]  }
  0x40   :  { %1024 = vmatprep.subr.bf16.mxu1 %v3576_v10  ;;  %363 = vmatprep.subr.bf16.mxu0 %v2847_v17  ;;  %v2857_v23 = vld [vmem:[#allocation2 + $0x44] ss:$24 sps:$4 sm:$0xff]   ;;  %v3620_v24 = vld [vmem:[%s5196_s0 + $0x10] sm:$0xff]   ;;  %v3626_v26 = vld [vmem:[#allocation5 + $0xc0] ss:$24 sps:$4 sm:$0xff]  }
  0x41   :  { %v3623_v25 = vld [vmem:[#allocation5 + $0xc] ss:$24 sps:$4 sm:$0xff]   ;;  %v3637_v28 = vld [vmem:[#allocation5 + $0xf0] ss:$24 sps:$4 sm:$0xff]   ;;  %v3647_v30 = vld [vmem:[%s5196_s0 + $0x18] sm:$0xff]  }
  0x42   :  { %2624 = vmatmul.mubr.msk.bf16.vlgmr.msra.gmra.mrb[0].mxu0 %vm204_vm0, %v3574_v9  ;;  %2628 = vmatmul.mubr.msk.bf16.vlgmr.msra.gmra.mrb[0].mxu1 %vm204_vm0, %v3574_v9  ;;  %v3629_v27 = vld [vmem:[#allocation5 + $0xf4] ss:$24 sps:$4 sm:$0xff]   ;;  %v3641_v29 = vld [vmem:[#allocation5 + $0x124] ss:$24 sps:$4 sm:$0xff]   ;;  %v3650_v31 = vld [vmem:[#allocation5 + $0x120] ss:$24 sps:$4 sm:$0xff]  }
  0x43   :  { %1025 = vmatpush1.bf16.msra.mxu1 %v3578_v11  ;;  %259 = vmatprep.mubr.bf16.mxu0 %v5209_v0  ;;  %v3653_v32 = vld [vmem:[#allocation5 + $0x154] ss:$24 sps:$4 sm:$0xff]   ;;  %v3660_v33 = vld [vmem:[#allocation5 + $0x150] ss:$24 sps:$4 sm:$0xff]   ;;  %v3664_v34 = vld [vmem:[#allocation5 + $0x184] ss:$24 sps:$4 sm:$0xff]  }
  0x44   :  { %1026 = vmatprep.subr.bf16.mxu1 %v3581_v12  ;;  %332 = vmatprep.mubr.bf16.mxu1 %v5209_v0  ;;  %v3667_v35 = vld [vmem:[#allocation5 + $0x8] ss:$24 sps:$4 sm:$0xff]   ;;  %v3672_v37 = vld [vmem:[#allocation5 + $0x3c] ss:$24 sps:$4 sm:$0xff]   ;;  %v3679_v39 = vld [vmem:[#allocation5 + $0x38] ss:$24 sps:$4 sm:$0xff]  }
  0x45   :  { %364 = vmatpush1.bf16.msra.mxu0 %v2845_v19  ;;  %v3670_v36 = vld [vmem:[#allocation5 + $0x180] ss:$24 sps:$4 sm:$0xff]   ;;  %v3675_v38 = vld [vmem:[#allocation5 + $0x1b4] ss:$24 sps:$4 sm:$0xff]   ;;  %v3681_v40 = vld [vmem:[#allocation5 + $0x1b0] ss:$24 sps:$4 sm:$0xff]  }
  0x46   :  { %365 = vmatprep.subr.bf16.mxu0 %v2857_v23  ;;  %v3685_v41 = vld [vmem:[#allocation5 + $0x6c] ss:$24 sps:$4 sm:$0xff]   ;;  %v3692_v43 = vld [vmem:[#allocation5 + $0x68] ss:$24 sps:$4 sm:$0xff]   ;;  %v3698_v45 = vld [vmem:[#allocation5 + $0x9c] ss:$24 sps:$4 sm:$0xff]  }
  0x47   :  { %1027 = vmatpush1.bf16.msra.mxu1 %v3588_v13  ;;  %v3689_v42 = vld [vmem:[#allocation5 + $0x1e4] ss:$24 sps:$4 sm:$0xff]   ;;  %v3694_v44 = vld [vmem:[#allocation5 + $0x1e0] ss:$24 sps:$4 sm:$0xff]   ;;  %v3702_v46 = vld [vmem:[#allocation5 + $0x214] ss:$24 sps:$4 sm:$0xff]  }
  0x48   :  { %1028 = vmatprep.subr.bf16.mxu1 %v3592_v14  ;;  %v3704_v47 = vld [vmem:[#allocation5 + $0x98] ss:$24 sps:$4 sm:$0xff]   ;;  %v3712_v49 = vld [vmem:[#allocation5 + $0xcc] ss:$24 sps:$4 sm:$0xff]   ;;  %v3719_v51 = vld [vmem:[#allocation5 + $0xc8] ss:$24 sps:$4 sm:$0xff]  }
  0x49   :  { %366 = vmatpush1.bf16.msra.mxu0 %v2855_v22  ;;  %v3706_v48 = vld [vmem:[#allocation5 + $0x210] ss:$24 sps:$4 sm:$0xff]   ;;  %v3716_v50 = vld [vmem:[#allocation5 + $0x244] ss:$24 sps:$4 sm:$0xff]   ;;  %v3721_v52 = vld [vmem:[#allocation5 + $0x240] ss:$24 sps:$4 sm:$0xff]  }
  0x4a   :  { %2625 = vmatmul.mubr.msk.bf16.gmra.mrb[4].mxu0 %vm204_vm0, %v3598_v15  ;;  %2629 = vmatmul.mubr.msk.bf16.gmra.mrb[4].mxu1 %vm204_vm0, %v3598_v15  ;;  %v3725_v53 = vld [vmem:[#allocation5 + $0xfc] ss:$24 sps:$4 sm:$0xff]   ;;  %v3731_v55 = vld [vmem:[#allocation5 + $0xf8] ss:$24 sps:$4 sm:$0xff]   ;;  %v3739_v57 = vld [vmem:[#allocation5 + $0x12c] ss:$24 sps:$4 sm:$0xff]  }
  0x4b   :  { %1029 = vmatpush1.bf16.msra.mxu1 %v3600_v16  ;;  %269 = vmatprep.mubr.bf16.mxu0 %v5209_v0  ;;  %v3729_v54 = vld [vmem:[#allocation5 + $0x274] ss:$24 sps:$4 sm:$0xff]   ;;  %v3733_v56 = vld [vmem:[#allocation5 + $0x270] ss:$24 sps:$4 sm:$0xff]   ;;  %v3743_v58 = vld [vmem:[#allocation5 + $0x2a4] ss:$24 sps:$4 sm:$0xff]  }
  0x4c   :  { %1030 = vmatprep.subr.bf16.mxu1 %v3604_v18  ;;  %342 = vmatprep.mubr.bf16.mxu1 %v5209_v0  ;;  %v3746_v59 = vld [vmem:[#allocation5 + $0x128] ss:$24 sps:$4 sm:$0xff]   ;;  %v3752_v61 = vld [vmem:[#allocation5 + $0x15c] ss:$24 sps:$4 sm:$0xff]   ;;  %v3758_v63 = vld [vmem:[#allocation5 + $0x158] ss:$24 sps:$4 sm:$0xff]  }
  0x4d   :  { %1065 = vmatprep.subr.bf16.mxu0 %v3623_v25  ;;  %v3748_v60 = vld [vmem:[#allocation5 + $0x2a0] ss:$24 sps:$4 sm:$0xff]   ;;  %v3756_v62 = vld [vmem:[#allocation5 + $0x2d4] ss:$24 sps:$4 sm:$0xff]   ;;  %v3760_v1 = vld [vmem:[#allocation5 + $0x2d0] ss:$24 sps:$4 sm:$0xff]  }
  0x4e   :  { %v3766_v2 = vld [vmem:[#allocation5 + $0x18c] ss:$24 sps:$4 sm:$0xff]   ;;  %v3773_v4 = vld [vmem:[#allocation5 + $0x188] ss:$24 sps:$4 sm:$0xff]   ;;  %v3779_v6 = vld [vmem:[#allocation5 + $0x1bc] ss:$24 sps:$4 sm:$0xff]  }
  0x4f   :  { %1031 = vmatpush1.bf16.msra.mxu1 %v3608_v20  ;;  %v3770_v3 = vld [vmem:[#allocation5 + $0x14] ss:$24 sps:$4 sm:$0xff]   ;;  %v3775_v5 = vld [vmem:[#allocation5 + $0x10] ss:$24 sps:$4 sm:$0xff]   ;;  %5398 = vst [vmem:[#allocation16_spill] sm:$0xff] %v3779_v6 }
  0x50   :  { %1032 = vmatprep.subr.bf16.mxu1 %v3610_v21  ;;  %5397 = vst [vmem:[#allocation15_spill] sm:$0xff] %v3775_v5  ;;  %v3783_v7 = vld [vmem:[#allocation5 + $0x44] ss:$24 sps:$4 sm:$0xff]   ;;  %v3785_v8 = vld [vmem:[#allocation5 + $0x1b8] ss:$24 sps:$4 sm:$0xff]  }
  0x51   :  { %5399 = vst [vmem:[#allocation17_spill] sm:$0xff] %v3783_v7  ;;  %v3794_v17 = vld [vmem:[#allocation5 + $0x74] ss:$24 sps:$4 sm:$0xff]   ;;  %v3798_v19 = vld [vmem:[#allocation5 + $0x1e8] ss:$24 sps:$4 sm:$0xff]  }
  0x52   :  { %2626 = vmatmul.mubr.msk.bf16.gmra.mrb[8].mxu0 %vm204_vm0, %v3620_v24  ;;  %2630 = vmatmul.mubr.msk.bf16.gmra.mrb[8].mxu1 %vm204_vm0, %v3620_v24  ;;  %5401 = vst [vmem:[#allocation19_spill] sm:$0xff] %v3794_v17  ;;  %5402 = vst [vmem:[#allocation20_spill] sm:$0xff] %v3798_v19  ;;  %v3800_v22 = vld [vmem:[#allocation5 + $0x70] ss:$24 sps:$4 sm:$0xff]   ;;  %v3803_v23 = vld [vmem:[#allocation5 + $0x21c] ss:$24 sps:$4 sm:$0xff]  }
  0x53   :  { %1033 = vmatpush1.bf16.msra.mxu1 %v3626_v26  ;;  %279 = vmatprep.mubr.bf16.mxu0 %v5209_v0  ;;  %5403 = vst [vmem:[#allocation21_spill] sm:$0xff] %v3800_v22  ;;  %5404 = vst [vmem:[#allocation22_spill] sm:$0xff] %v3803_v23 }
  0x54   :  { %1034 = vmatprep.subr.bf16.mxu1 %v3629_v27  ;;  %352 = vmatprep.mubr.bf16.mxu1 %v5209_v0 }
  0x57   :  { %1035 = vmatpush1.bf16.msra.mxu1 %v3637_v28 }
  0x58   :  { %1036 = vmatprep.subr.bf16.mxu1 %v3641_v29 }
  0x5a   :  { %2627 = vmatmul.mubr.msk.bf16.gmra.mrb[12].mxu0 %vm204_vm0, %v3647_v30  ;;  %2631 = vmatmul.mubr.msk.bf16.gmra.mrb[12].mxu1 %vm204_vm0, %v3647_v30 }
  0x5b   :  { %1037 = vmatpush1.bf16.msra.mxu1 %v3650_v31  ;;  %395 = vmatprep.mubr.bf16.mxu0 %v5209_v0 }
  0x5c   :  { %1038 = vmatprep.subr.bf16.mxu1 %v3653_v32  ;;  %1056 = vmatprep.mubr.bf16.mxu1 %v5209_v0 }
  0x5f   :  { %1039 = vmatpush1.bf16.msra.mxu1 %v3660_v33 }
  0x60   :  { %1040 = vmatprep.subr.bf16.mxu1 %v3664_v34 }
  0x62   :  { %2632 = vmatmul.mubr.msk.bf16.vlgmr.msra.gmra.mrb[16].mxu0 %vm204_vm0, %v3574_v9  ;;  %v3788_v9 = vld [vmem:[#allocation5 + $0x40] ss:$24 sps:$4 sm:$0xff]  }
  0x63   :  { %1066 = vmatpush1.bf16.msra.mxu0 %v3667_v35  ;;  %1041 = vmatpush1.bf16.msra.mxu1 %v3670_v36  ;;  %5400 = vst [vmem:[#allocation18_spill] sm:$0xff] %v3788_v9 }
  0x64   :  { %1067 = vmatprep.subr.bf16.mxu0 %v3672_v37  ;;  %1042 = vmatprep.subr.bf16.mxu1 %v3675_v38 }
  0x65   :  { %405 = vmatprep.mubr.bf16.mxu0 %v5209_v0 }
  0x67   :  { %1068 = vmatpush1.bf16.msra.mxu0 %v3679_v39  ;;  %1043 = vmatpush1.bf16.msra.mxu1 %v3681_v40 }
  0x68   :  { %1069 = vmatprep.subr.bf16.mxu0 %v3685_v41  ;;  %1044 = vmatprep.subr.bf16.mxu1 %v3689_v42 }
  0x6a   :  { %2633 = vmatmul.mubr.msk.bf16.gmra.mrb[20].mxu0 %vm204_vm0, %v3598_v15  ;;  %v3790_v15 = vld [vmem:[#allocation5 + $0x1ec] ss:$24 sps:$4 sm:$0xff]  }
  0x6b   :  { %1070 = vmatpush1.bf16.msra.mxu0 %v3692_v43  ;;  %1045 = vmatpush1.bf16.msra.mxu1 %v3694_v44 }
  0x6c   :  { %1071 = vmatprep.subr.bf16.mxu0 %v3698_v45  ;;  %1046 = vmatprep.subr.bf16.mxu1 %v3702_v46 }
  0x6d   :  { %415 = vmatprep.mubr.bf16.mxu0 %v5209_v0 }
  0x6f   :  { %1072 = vmatpush1.bf16.msra.mxu0 %v3704_v47  ;;  %1047 = vmatpush1.bf16.msra.mxu1 %v3706_v48 }
  0x70   :  { %1073 = vmatprep.subr.bf16.mxu0 %v3712_v49  ;;  %1048 = vmatprep.subr.bf16.mxu1 %v3716_v50 }
  0x72   :  { %2634 = vmatmul.mubr.msk.bf16.gmra.mrb[24].mxu0 %vm204_vm0, %v3620_v24  ;;  %v3805_v24 = vld [vmem:[#allocation5 + $0xa4] ss:$24 sps:$4 sm:$0xff]  }
  0x73   :  { %1074 = vmatpush1.bf16.msra.mxu0 %v3719_v51  ;;  %1049 = vmatpush1.bf16.msra.mxu1 %v3721_v52  ;;  %5405 = vst [vmem:[#allocation23_spill] sm:$0xff] %v3805_v24 }
  0x74   :  { %1075 = vmatprep.subr.bf16.mxu0 %v3725_v53  ;;  %1050 = vmatprep.subr.bf16.mxu1 %v3729_v54 }
  0x75   :  { %425 = vmatprep.mubr.bf16.mxu0 %v5209_v0 }
  0x77   :  { %1076 = vmatpush1.bf16.msra.mxu0 %v3731_v55  ;;  %1051 = vmatpush1.bf16.msra.mxu1 %v3733_v56 }
  0x78   :  { %1077 = vmatprep.subr.bf16.mxu0 %v3739_v57  ;;  %1052 = vmatprep.subr.bf16.mxu1 %v3743_v58 }
  0x7a   :  { %2635 = vmatmul.mubr.msk.bf16.gmra.mrb[28].mxu0 %vm204_vm0, %v3647_v30  ;;  %v3811_v30 = vld [vmem:[#allocation5 + $0x218] ss:$24 sps:$4 sm:$0xff]  }
  0x7b   :  { %1078 = vmatpush1.bf16.msra.mxu0 %v3746_v59  ;;  %1053 = vmatpush1.bf16.msra.mxu1 %v3748_v60  ;;  %5406 = vst [vmem:[#allocation24_spill] sm:$0xff] %v3811_v30 }
  0x7c   :  { %1079 = vmatprep.subr.bf16.mxu0 %v3752_v61  ;;  %1054 = vmatprep.subr.bf16.mxu1 %v3756_v62 }
  0x7d   :  { %1097 = vmatprep.mubr.bf16.mxu0 %v5209_v0 }
  0x7f   :  { %1080 = vmatpush1.bf16.msra.mxu0 %v3758_v63  ;;  %1055 = vmatpush1.bf16.msra.mxu1 %v3760_v1 }
  0x80   :  { %1081 = vmatprep.subr.bf16.mxu0 %v3766_v2  ;;  %1106 = vmatprep.subr.bf16.mxu1 %v3770_v3 }
  0x82   :  { %1057 = vmatmul.mubr.bf16.vlgmr.msra.gmra.mrb[16].mxu1 %v5209_v0 }
  0x83   :  { %1082 = vmatpush1.bf16.msra.mxu0 %v3773_v4  ;;  %1107 = vmatpush1.bf16.msra.mxu1 %v3775_v5  ;;  %v3815_v5 = vld [vmem:[#allocation5 + $0x24c] ss:$24 sps:$4 sm:$0xff]  }
  0x84   :  { %1083 = vmatprep.subr.bf16.mxu0 %v3779_v6  ;;  %1108 = vmatprep.subr.bf16.mxu1 %v3783_v7  ;;  %v3813_v7 = vld [vmem:[#allocation5 + $0xa0] ss:$24 sps:$4 sm:$0xff]   ;;  %5408 = vst [vmem:[#allocation26_spill] sm:$0xff] %v3815_v5  ;;  %v3817_v6 = vld [vmem:[#allocation5 + $0xd4] ss:$24 sps:$4 sm:$0xff]  }
  0x85   :  { %1138 = vmatprep.mubr.bf16.mxu1 %v5209_v0  ;;  %5407 = vst [vmem:[#allocation25_spill] sm:$0xff] %v3813_v7  ;;  %5409 = vst [vmem:[#allocation27_spill] sm:$0xff] %v3817_v6  ;;  %v3825_v0 = vld [vmem:[#allocation5 + $0x248] ss:$24 sps:$4 sm:$0xff]  }
  0x86   :  { %5410 = vst [vmem:[#allocation28_spill] sm:$0xff] %v3825_v0 }
  0x87   :  { %1084 = vmatpush1.bf16.msra.mxu0 %v3785_v8  ;;  %1109 = vmatpush1.bf16.msra.mxu1 %v3788_v9  ;;  %v3831_v9 = vld [vmem:[#allocation5 + $0x27c] ss:$24 sps:$4 sm:$0xff]  }
  0x88   :  { %1085 = vmatprep.subr.bf16.mxu0 %v3790_v15  ;;  %1110 = vmatprep.subr.bf16.mxu1 %v3794_v17  ;;  %v3827_v17 = vld [vmem:[#allocation5 + $0xd0] ss:$24 sps:$4 sm:$0xff]   ;;  %5412 = vst [vmem:[#allocation30_spill] sm:$0xff] %v3831_v9 }
  0x89   :  { %5411 = vst [vmem:[#allocation29_spill] sm:$0xff] %v3827_v17 }
  0x8b   :  { %1086 = vmatpush1.bf16.msra.mxu0 %v3798_v19  ;;  %1111 = vmatpush1.bf16.msra.mxu1 %v3800_v22  ;;  %v3833_v19 = vld [vmem:[#allocation5 + $0x104] ss:$24 sps:$4 sm:$0xff]   ;;  %v3839_v22 = vld [vmem:[#allocation5 + $0x100] ss:$24 sps:$4 sm:$0xff]  }
  0x8c   :  { %1087 = vmatprep.subr.bf16.mxu0 %v3803_v23  ;;  %1112 = vmatprep.subr.bf16.mxu1 %v3805_v24  ;;  %5413 = vst [vmem:[#allocation31_spill] sm:$0xff] %v3833_v19  ;;  %v3837_v24 = vld [vmem:[#allocation5 + $0x278] ss:$24 sps:$4 sm:$0xff]   ;;  %5415 = vst [vmem:[#allocation33_spill] sm:$0xff] %v3839_v22 }
  0x8d   :  { %5414 = vst [vmem:[#allocation32_spill] sm:$0xff] %v3837_v24 }
  0x8f   :  { %1088 = vmatpush1.bf16.msra.mxu0 %v3811_v30  ;;  %1113 = vmatpush1.bf16.msra.mxu1 %v3813_v7  ;;  %v3843_v7 = vld [vmem:[#allocation5 + $0x2ac] ss:$24 sps:$4 sm:$0xff]  }
  0x90   :  { %1089 = vmatprep.subr.bf16.mxu0 %v3815_v5  ;;  %1114 = vmatprep.subr.bf16.mxu1 %v3817_v6  ;;  %5416 = vst [vmem:[#allocation34_spill] sm:$0xff] %v3843_v7  ;;  %v3845_v5 = vld [vmem:[#allocation5 + $0x134] ss:$24 sps:$4 sm:$0xff]   ;;  %v3849_v6 = vld [vmem:[#allocation5 + $0x2a8] ss:$24 sps:$4 sm:$0xff]  }
  0x91   :  { %5417 = vst [vmem:[#allocation35_spill] sm:$0xff] %v3845_v5  ;;  %5418 = vst [vmem:[#allocation36_spill] sm:$0xff] %v3849_v6 }
  0x93   :  { %1090 = vmatpush1.bf16.msra.mxu0 %v3825_v0  ;;  %1115 = vmatpush1.bf16.msra.mxu1 %v3827_v17  ;;  %v3851_v0 = vld [vmem:[#allocation5 + $0x130] ss:$24 sps:$4 sm:$0xff]   ;;  %v3855_v17 = vld [vmem:[#allocation5 + $0x2dc] ss:$24 sps:$4 sm:$0xff]  }
  0x94   :  { %1091 = vmatprep.subr.bf16.mxu0 %v3831_v9  ;;  %1116 = vmatprep.subr.bf16.mxu1 %v3833_v19  ;;  %5419 = vst [vmem:[#allocation37_spill] sm:$0xff] %v3851_v0  ;;  %5420 = vst [vmem:[#allocation38_spill] sm:$0xff] %v3855_v17  ;;  %v3857_v9 = vld [vmem:[#allocation5 + $0x164] ss:$24 sps:$4 sm:$0xff]   ;;  %v3861_v19 = vld [vmem:[#allocation5 + $0x2d8] ss:$24 sps:$4 sm:$0xff]  }
  0x95   :  { %5421 = vst [vmem:[#allocation39_spill] sm:$0xff] %v3857_v9  ;;  %5422 = vst [vmem:[#allocation40_spill] sm:$0xff] %v3861_v19 }
  0x97   :  { %1092 = vmatpush1.bf16.msra.mxu0 %v3837_v24  ;;  %1117 = vmatpush1.bf16.msra.mxu1 %v3839_v22  ;;  %v3863_v24 = vld [vmem:[#allocation5 + $0x160] ss:$24 sps:$4 sm:$0xff]   ;;  %v3867_v22 = vld [vmem:[#allocation5 + $0x194] ss:$24 sps:$4 sm:$0xff]  }
  0x98   :  { %1093 = vmatprep.subr.bf16.mxu0 %v3843_v7  ;;  %1118 = vmatprep.subr.bf16.mxu1 %v3845_v5  ;;  %5423 = vst [vmem:[#allocation41_spill] sm:$0xff] %v3863_v24  ;;  %5424 = vst [vmem:[#allocation42_spill] sm:$0xff] %v3867_v22  ;;  %v3871_v5 = vld [vmem:[#allocation5 + $0x190] ss:$24 sps:$4 sm:$0xff]  }
  0x9b   :  { %1094 = vmatpush1.bf16.msra.mxu0 %v3849_v6  ;;  %1119 = vmatpush1.bf16.msra.mxu1 %v3851_v0  ;;  %v3874_v6 = vld [vmem:[#allocation5 + $0x1c4] ss:$24 sps:$4 sm:$0xff]   ;;  %v5425_v0 = vmov 0  }
  0x9c   :  { %1095 = vmatprep.subr.bf16.mxu0 %v3855_v17  ;;  %1120 = vmatprep.subr.bf16.mxu1 %v3857_v9  ;;  %v3879_v17 = vld [vmem:[#allocation5 + $0x1c0] ss:$24 sps:$4 sm:$0xff]   ;;  %v3883_v9 = vld [vmem:[#allocation5 + $0x1f4] ss:$24 sps:$4 sm:$0xff]  }
  0x9f   :  { %1096 = vmatpush1.bf16.msra.mxu0 %v3861_v19  ;;  %1121 = vmatpush1.bf16.msra.mxu1 %v3863_v24  ;;  %v3891_v24 = vld [vmem:[#allocation5 + $0x224] ss:$24 sps:$4 sm:$0xff]  }
  0xa0   :  { %1122 = vmatprep.subr.bf16.mxu1 %v3867_v22  ;;  %1195 = vmatprep.subr.bf16.mxu0 %v3576_v10  ;;  %v3887_v22 = vld [vmem:[#allocation5 + $0x1f0] ss:$24 sps:$4 sm:$0xff]  }
  0xa2   :  { %1098 = vmatmul.mubr.bf16.vlgmr.msra.gmra.mrb[32].mxu0 %v5425_v0 }
  0xa3   :  { %1123 = vmatpush1.bf16.msra.mxu1 %v3871_v5  ;;  %1196 = vmatpush1.bf16.msra.mxu0 %v3578_v11  ;;  %v3895_v11 = vld [vmem:[#allocation5 + $0x220] ss:$24 sps:$4 sm:$0xff]  }
  0xa4   :  { %1124 = vmatprep.subr.bf16.mxu1 %v3874_v6  ;;  %1197 = vmatprep.subr.bf16.mxu0 %v3581_v12  ;;  %v3899_v12 = vld [vmem:[#allocation5 + $0x254] ss:$24 sps:$4 sm:$0xff]  }
  0xa7   :  { %1125 = vmatpush1.bf16.msra.mxu1 %v3879_v17  ;;  %1198 = vmatpush1.bf16.msra.mxu0 %v3588_v13  ;;  %v3903_v13 = vld [vmem:[#allocation5 + $0x250] ss:$24 sps:$4 sm:$0xff]  }
  0xa8   :  { %1126 = vmatprep.subr.bf16.mxu1 %v3883_v9  ;;  %1199 = vmatprep.subr.bf16.mxu0 %v3592_v14  ;;  %v3907_v14 = vld [vmem:[#allocation5 + $0x284] ss:$24 sps:$4 sm:$0xff]  }
  0xab   :  { %1127 = vmatpush1.bf16.msra.mxu1 %v3887_v22  ;;  %1200 = vmatpush1.bf16.msra.mxu0 %v3600_v16  ;;  %v3911_v16 = vld [vmem:[#allocation5 + $0x280] ss:$24 sps:$4 sm:$0xff]  }
  0xac   :  { %1128 = vmatprep.subr.bf16.mxu1 %v3891_v24  ;;  %1201 = vmatprep.subr.bf16.mxu0 %v3604_v18  ;;  %v3915_v18 = vld [vmem:[#allocation5 + $0x2b4] ss:$24 sps:$4 sm:$0xff]  }
  0xaf   :  { %1129 = vmatpush1.bf16.msra.mxu1 %v3895_v11  ;;  %1202 = vmatpush1.bf16.msra.mxu0 %v3608_v20  ;;  %v3919_v20 = vld [vmem:[#allocation5 + $0x2b0] ss:$24 sps:$4 sm:$0xff]  }
  0xb0   :  { %1130 = vmatprep.subr.bf16.mxu1 %v3899_v12  ;;  %1203 = vmatprep.subr.bf16.mxu0 %v3610_v21  ;;  %v3923_v21 = vld [vmem:[#allocation5 + $0x2e4] ss:$24 sps:$4 sm:$0xff]  }
  0xb3   :  { %1131 = vmatpush1.bf16.msra.mxu1 %v3903_v13  ;;  %1204 = vmatpush1.bf16.msra.mxu0 %v3626_v26  ;;  %v3927_v26 = vld [vmem:[#allocation5 + $0x2e0] ss:$24 sps:$4 sm:$0xff]  }
  0xb4   :  { %1132 = vmatprep.subr.bf16.mxu1 %v3907_v14  ;;  %1205 = vmatprep.subr.bf16.mxu0 %v3629_v27  ;;  %v5428_v27 = vld [vmem:[#allocation26_spill] sm:$0xff] }
  0xb7   :  { %1133 = vmatpush1.bf16.msra.mxu1 %v3911_v16  ;;  %1206 = vmatpush1.bf16.msra.mxu0 %v3637_v28  ;;  %v5429_v28 = vld [vmem:[#allocation28_spill] sm:$0xff] }
  0xb8   :  { %1134 = vmatprep.subr.bf16.mxu1 %v3915_v18  ;;  %1207 = vmatprep.subr.bf16.mxu0 %v3641_v29  ;;  %v5430_v29 = vld [vmem:[#allocation30_spill] sm:$0xff] }
  0xbb   :  { %1135 = vmatpush1.bf16.msra.mxu1 %v3919_v20  ;;  %1208 = vmatpush1.bf16.msra.mxu0 %v3650_v31  ;;  %v5431_v31 = vld [vmem:[#allocation32_spill] sm:$0xff] }
  0xbc   :  { %1136 = vmatprep.subr.bf16.mxu1 %v3923_v21  ;;  %1209 = vmatprep.subr.bf16.mxu0 %v3653_v32  ;;  %v5432_v32 = vld [vmem:[#allocation36_spill] sm:$0xff] }
  0xbf   :  { %1137 = vmatpush1.bf16.msra.mxu1 %v3927_v26  ;;  %1210 = vmatpush1.bf16.msra.mxu0 %v3660_v33  ;;  %v5433_v33 = vld [vmem:[#allocation38_spill] sm:$0xff] }
  0xc0   :  { %1236 = vmatprep.subr.bf16.mxu1 %v3623_v25  ;;  %1211 = vmatprep.subr.bf16.mxu0 %v3664_v34  ;;  %v5427_v25 = vld [vmem:[#allocation20_spill] sm:$0xff]  ;;  %v94_v34 = vlaneseq }
  0xc2   :  { %1139 = vmatmul.mubr.bf16.vlgmr.msra.gmra.mrb[20].mxu1 %v5425_v0  ;;  %v5426_v0 = vld [vmem:[#allocation16_spill] sm:$0xff] }
  0xc3   :  { %1237 = vmatpush1.bf16.msra.mxu1 %v3667_v35  ;;  %1212 = vmatpush1.bf16.msra.mxu0 %v3670_v36  ;;  %v3985_v35 = vshrl.u32 %v94_v34, 7 }
  0xc4   :  { %1238 = vmatprep.subr.bf16.mxu1 %v3672_v37  ;;  %1213 = vmatprep.subr.bf16.mxu0 %v3675_v38  ;;  %v3992_v38 = vld [vmem:[%s5198_s2] sm:$0x3f] }
  0xc5   :  { %v104_v36 = vsub.s32 2, %v3985_v35  ;;  %v5249_v37 = vsub.s32 0, %v3985_v35 }
  0xc7   :  { %1239 = vmatpush1.bf16.msra.mxu1 %v3679_v39  ;;  %1214 = vmatpush1.bf16.msra.mxu0 %v3681_v40  ;;  %v5251_v39 = vsub.s32 1, %v3985_v35  ;;  %v108_v40 = vsub.s32 3, %v3985_v35 }
  0xc8   :  { %1240 = vmatprep.subr.bf16.mxu1 %v3685_v41  ;;  %1215 = vmatprep.subr.bf16.mxu0 %v3689_v42  ;;  %v3997_v41 = vrot.slane %v3992_v38, %v104_v36 }
  0xcb   :  { %1241 = vmatpush1.bf16.msra.mxu1 %v3692_v43  ;;  %1216 = vmatpush1.bf16.msra.mxu0 %v3694_v44  ;;  %v4011_v44 = vrot.slane %v3992_v38, %v5251_v39 }
  0xcc   :  { %1242 = vmatprep.subr.bf16.mxu1 %v3698_v45  ;;  %1217 = vmatprep.subr.bf16.mxu0 %v3702_v46 }
  0xcf   :  { %1243 = vmatpush1.bf16.msra.mxu1 %v3704_v47  ;;  %1218 = vmatpush1.bf16.msra.mxu0 %v3706_v48 }
  0xd0   :  { %1244 = vmatprep.subr.bf16.mxu1 %v3712_v49  ;;  %1219 = vmatprep.subr.bf16.mxu0 %v3716_v50  ;;  %v4018_v49 = vrot.slane %v3992_v38, %v108_v40 }
  0xd3   :  { %1245 = vmatpush1.bf16.msra.mxu1 %v3719_v51  ;;  %1220 = vmatpush1.bf16.msra.mxu0 %v3721_v52 }
  0xd4   :  { %1246 = vmatprep.subr.bf16.mxu1 %v3725_v53  ;;  %1221 = vmatprep.subr.bf16.mxu0 %v3729_v54 }
  0xd7   :  { %1247 = vmatpush1.bf16.msra.mxu1 %v3731_v55  ;;  %1222 = vmatpush1.bf16.msra.mxu0 %v3733_v56 }
  0xd8   :  { %1248 = vmatprep.subr.bf16.mxu1 %v3739_v57  ;;  %1223 = vmatprep.subr.bf16.mxu0 %v3743_v58 }
  0xdb   :  { %1249 = vmatpush1.bf16.msra.mxu1 %v3746_v59  ;;  %1224 = vmatpush1.bf16.msra.mxu0 %v3748_v60 }
  0xdc   :  { %1250 = vmatprep.subr.bf16.mxu1 %v3752_v61  ;;  %1225 = vmatprep.subr.bf16.mxu0 %v3756_v62 }
  0xdf   :  { %1251 = vmatpush1.bf16.msra.mxu1 %v3758_v63  ;;  %1226 = vmatpush1.bf16.msra.mxu0 %v3760_v1 }
  0xe0   :  { %1252 = vmatprep.subr.bf16.mxu1 %v3766_v2  ;;  %1277 = vmatprep.subr.bf16.mxu0 %v3770_v3 }
  0xe3   :  { %1253 = vmatpush1.bf16.msra.mxu1 %v3773_v4 }
  0xe4   :  { %1254 = vmatprep.subr.bf16.mxu1 %v5426_v0 }
  0xe7   :  { %1255 = vmatpush1.bf16.msra.mxu1 %v3785_v8 }
  0xe8   :  { %1256 = vmatprep.subr.bf16.mxu1 %v3790_v15 }
  0xeb   :  { %1257 = vmatpush1.bf16.msra.mxu1 %v5427_v25 }
  0xec   :  { %1258 = vmatprep.subr.bf16.mxu1 %v3803_v23 }
  0xef   :  { %1259 = vmatpush1.bf16.msra.mxu1 %v3811_v30 }
  0xf0   :  { %1260 = vmatprep.subr.bf16.mxu1 %v5428_v27 }
  0xf3   :  { %1261 = vmatpush1.bf16.msra.mxu1 %v5429_v28 }
  0xf4   :  { %1262 = vmatprep.subr.bf16.mxu1 %v5430_v29 }
  0xf7   :  { %1263 = vmatpush1.bf16.msra.mxu1 %v5431_v31 }
  0xf8   :  { %1264 = vmatprep.subr.bf16.mxu1 %v3843_v7 }
  0xfb   :  { %1265 = vmatpush1.bf16.msra.mxu1 %v5432_v32 }
  0xfc   :  { %1266 = vmatprep.subr.bf16.mxu1 %v5433_v33 }
  0xff   :  { %1267 = vmatpush1.bf16.msra.mxu1 %v3861_v19 }
 0x100   :  { %1367 = vmatprep.subr.bf16.mxu1 %v3576_v10  ;;  %v4002_v10 = vrot.slane %v3992_v38, %v5249_v37 }
 0x115   :  { %v4004_v42 = vpop.f32.mrb[0].mxu1  ;;  %v4006_v43 = vpop.f32.mrb[0].mxu0 }
 0x116   :  { %v4013_v45 = vpop.f32.mrb[1].mxu1  ;;  %v4015_v47 = vpop.f32.mrb[1].mxu0 }
 0x117   :  { %v328_v51 = vpop.f32.mrb[2].mxu1  ;;  %v255_v53 = vpop.f32.mrb[2].mxu0 }
 0x118   :  { %v4021_v34 = vadd.f32 %v328_v51, %v3997_v41  ;;  %v330_v36 = vpop.f32.mrb[3].mxu1  ;;  %v4024_v37 = vadd.f32 %v255_v53, %v4002_v10  ;;  %v257_v19 = vpop.f32.mrb[3].mxu0 }
 0x119   :  { %v4027_v39 = vadd.f32 %v330_v36, %v4018_v49  ;;  %v4030_v33 = vadd.f32 %v257_v19, %v4011_v44 }
 0x11a   :  { %5434 = vst [vmem:[#allocation16_spill] sm:$0xff] %v4021_v34  ;;  %5435 = vst [vmem:[#allocation43_spill] sm:$0xff] %v4024_v37 }
 0x11b   :  { %5436 = vst [vmem:[#allocation44_spill] sm:$0xff] %v4027_v39  ;;  %5437 = vst [vmem:[#allocation45_spill] sm:$0xff] %v4030_v33 }
 0x11d   :  { %v261_v32 = vpop.f32.mrb[4].mxu0  ;;  %v334_v7 = vpop.f32.mrb[4].mxu1 }
 0x11e   :  { %v4033_v40 = vadd.f32 %v261_v32, %v4002_v10  ;;  %v263_v31 = vpop.f32.mrb[5].mxu0  ;;  %v4036_v51 = vadd.f32 %v334_v7, %v3997_v41  ;;  %v336_v34 = vpop.f32.mrb[5].mxu1 }
 0x11f   :  { %v4039_v53 = vadd.f32 %v263_v31, %v4011_v44  ;;  %v265_v37 = vpop.f32.mrb[6].mxu0  ;;  %v4042_v36 = vadd.f32 %v336_v34, %v4018_v49  ;;  %v338_v39 = vpop.f32.mrb[6].mxu1 }
 0x120   :  { %5438 = vst [vmem:[#allocation46_spill] sm:$0xff] %v4033_v40  ;;  %5439 = vst [vmem:[#allocation47_spill] sm:$0xff] %v4036_v51  ;;  %v4045_v19 = vadd.f32 %v265_v37, %v4002_v10  ;;  %v267_v33 = vpop.f32.mrb[7].mxu0  ;;  %v4048_v32 = vadd.f32 %v338_v39, %v3997_v41  ;;  %v340_v40 = vpop.f32.mrb[7].mxu1 }
 0x121   :  { %5440 = vst [vmem:[#allocation48_spill] sm:$0xff] %v4039_v53  ;;  %5441 = vst [vmem:[#allocation49_spill] sm:$0xff] %v4042_v36  ;;  %v4051_v7 = vadd.f32 %v267_v33, %v4011_v44  ;;  %v4054_v51 = vadd.f32 %v340_v40, %v4018_v49 }
 0x122   :  { %5442 = vst [vmem:[#allocation50_spill] sm:$0xff] %v4045_v19  ;;  %5443 = vst [vmem:[#allocation51_spill] sm:$0xff] %v4048_v32 }
 0x123   :  { %5444 = vst [vmem:[#allocation52_spill] sm:$0xff] %v4051_v7  ;;  %5445 = vst [vmem:[#allocation53_spill] sm:$0xff] %v4054_v51 }
 0x125   :  { %v271_v31 = vpop.f32.mrb[8].mxu0  ;;  %v344_v53 = vpop.f32.mrb[8].mxu1 }
 0x126   :  { %v4057_v34 = vadd.f32 %v271_v31, %v4002_v10  ;;  %v273_v36 = vpop.f32.mrb[9].mxu0  ;;  %v4060_v37 = vadd.f32 %v344_v53, %v3997_v41  ;;  %v346_v19 = vpop.f32.mrb[9].mxu1 }
 0x127   :  { %v4063_v39 = vadd.f32 %v273_v36, %v4011_v44  ;;  %v275_v32 = vpop.f32.mrb[10].mxu0  ;;  %v4066_v33 = vadd.f32 %v346_v19, %v4018_v49  ;;  %v348_v7 = vpop.f32.mrb[10].mxu1 }
 0x128   :  { %5446 = vst [vmem:[#allocation54_spill] sm:$0xff] %v4057_v34  ;;  %5447 = vst [vmem:[#allocation55_spill] sm:$0xff] %v4060_v37  ;;  %v4069_v40 = vadd.f32 %v275_v32, %v4002_v10  ;;  %v277_v51 = vpop.f32.mrb[11].mxu0  ;;  %v4072_v31 = vadd.f32 %v348_v7, %v3997_v41  ;;  %v350_v34 = vpop.f32.mrb[11].mxu1 }
 0x129   :  { %5448 = vst [vmem:[#allocation56_spill] sm:$0xff] %v4063_v39  ;;  %5449 = vst [vmem:[#allocation57_spill] sm:$0xff] %v4066_v33  ;;  %v4075_v53 = vadd.f32 %v277_v51, %v4011_v44  ;;  %v4078_v37 = vadd.f32 %v350_v34, %v4018_v49 }
 0x12a   :  { %5450 = vst [vmem:[#allocation58_spill] sm:$0xff] %v4069_v40  ;;  %5451 = vst [vmem:[#allocation59_spill] sm:$0xff] %v4072_v31 }
 0x12b   :  { %5452 = vst [vmem:[#allocation60_spill] sm:$0xff] %v4075_v53  ;;  %5453 = vst [vmem:[#allocation61_spill] sm:$0xff] %v4078_v37 }
 0x12d   :  { %v281_v36 = vpop.f32.mrb[12].mxu0  ;;  %v354_v39 = vpop.f32.mrb[12].mxu1 }
 0x12e   :  { %v4081_v19 = vadd.f32 %v281_v36, %v4002_v10  ;;  %v283_v33 = vpop.f32.mrb[13].mxu0  ;;  %v4084_v32 = vadd.f32 %v354_v39, %v3997_v41  ;;  %v356_v40 = vpop.f32.mrb[13].mxu1  ;;  %v112_v36 = vsub.s32 4, %v3985_v35 }
 0x12f   :  { %v4087_v7 = vadd.f32 %v283_v33, %v4011_v44  ;;  %v285_v31 = vpop.f32.mrb[14].mxu0  ;;  %v4090_v51 = vadd.f32 %v356_v40, %v4018_v49  ;;  %v358_v53 = vpop.f32.mrb[14].mxu1  ;;  %v116_v33 = vsub.s32 5, %v3985_v35 }
 0x130   :  { %5454 = vst [vmem:[#allocation62_spill] sm:$0xff] %v4081_v19  ;;  %5455 = vst [vmem:[#allocation63_spill] sm:$0xff] %v4084_v32  ;;  %v4093_v34 = vadd.f32 %v285_v31, %v4002_v10  ;;  %v287_v37 = vpop.f32.mrb[15].mxu0  ;;  %v4097_v19 = vadd.f32 %v358_v53, %v3997_v41  ;;  %v360_v39 = vpop.f32.mrb[15].mxu1  ;;  %v4107_v40 = vrot.slane %v3992_v38, %v112_v36 }
 0x131   :  { %5456 = vst [vmem:[#allocation64_spill] sm:$0xff] %v4087_v7  ;;  %5457 = vst [vmem:[#allocation65_spill] sm:$0xff] %v4090_v51  ;;  %v4100_v32 = vadd.f32 %v287_v37, %v4011_v44  ;;  %v4104_v7 = vadd.f32 %v360_v39, %v4018_v49 }
 0x132   :  { %5458 = vst [vmem:[#allocation66_spill] sm:$0xff] %v4093_v34  ;;  %5459 = vst [vmem:[#allocation67_spill] sm:$0xff] %v4097_v19  ;;  %v4112_v34 = vrot.slane %v3992_v38, %v116_v33 }
 0x133   :  { %5460 = vst [vmem:[#allocation68_spill] sm:$0xff] %v4100_v32  ;;  %5461 = vst [vmem:[#allocation69_spill] sm:$0xff] %v4104_v7 }
 0x135   :  { %v4109_v31 = vpop.f32.mrb[16].mxu0 }
 0x136   :  { %v4114_v51 = vpop.f32.mrb[17].mxu0 }
 0x137   :  { %v401_v53 = vpop.f32.mrb[18].mxu0 }
 0x138   :  { %v4117_v19 = vadd.f32 %v401_v53, %v4107_v40  ;;  %v403_v37 = vpop.f32.mrb[19].mxu0 }
 0x139   :  { %v4120_v32 = vadd.f32 %v403_v37, %v4112_v34 }
 0x13a   :  { %5462 = vst [vmem:[#allocation70_spill] sm:$0xff] %v4117_v19 }
 0x13b   :  { %5463 = vst [vmem:[#allocation71_spill] sm:$0xff] %v4120_v32 }
 0x13d   :  { %v407_v39 = vpop.f32.mrb[20].mxu0 }
 0x13e   :  { %v4123_v7 = vadd.f32 %v407_v39, %v4107_v40  ;;  %v409_v36 = vpop.f32.mrb[21].mxu0 }
 0x13f   :  { %v4126_v29 = vadd.f32 %v409_v36, %v4112_v34  ;;  %v411_v38 = vpop.f32.mrb[22].mxu0 }
 0x140   :  { %5464 = vst [vmem:[#allocation72_spill] sm:$0xff] %v4123_v7  ;;  %v4129_v33 = vadd.f32 %v411_v38, %v4107_v40  ;;  %v413_v28 = vpop.f32.mrb[23].mxu0 }
 0x141   :  { %5465 = vst [vmem:[#allocation73_spill] sm:$0xff] %v4126_v29  ;;  %v4132_v53 = vadd.f32 %v413_v28, %v4112_v34 }
 0x142   :  { %5466 = vst [vmem:[#allocation74_spill] sm:$0xff] %v4129_v33 }
 0x143   :  { %5467 = vst [vmem:[#allocation75_spill] sm:$0xff] %v4132_v53 }
 0x145   :  { %v417_v19 = vpop.f32.mrb[24].mxu0 }
 0x146   :  { %v4135_v37 = vadd.f32 %v417_v19, %v4107_v40  ;;  %v419_v32 = vpop.f32.mrb[25].mxu0 }
 0x147   :  { %v4138_v39 = vadd.f32 %v419_v32, %v4112_v34  ;;  %v421_v7 = vpop.f32.mrb[26].mxu0 }
 0x148   :  { %5468 = vst [vmem:[#allocation76_spill] sm:$0xff] %v4135_v37  ;;  %v4141_v36 = vadd.f32 %v421_v7, %v4107_v40  ;;  %v423_v29 = vpop.f32.mrb[27].mxu0 }
 0x149   :  { %5469 = vst [vmem:[#allocation77_spill] sm:$0xff] %v4138_v39  ;;  %v4144_v38 = vadd.f32 %v423_v29, %v4112_v34  ;;  %v252_v29 = vadd.f32 %v4006_v43, %v4002_v10 }
 0x14a   :  { %5470 = vst [vmem:[#allocation78_spill] sm:$0xff] %v4141_v36 }
 0x14b   :  { %5471 = vst [vmem:[#allocation79_spill] sm:$0xff] %v4144_v38  ;;  %v254_v38 = vadd.f32 %v4015_v47, %v4011_v44 }
 0x14d   :  { %v427_v33 = vpop.f32.mrb[28].mxu0 }
 0x14e   :  { %v4147_v28 = vadd.f32 %v427_v33, %v4107_v40  ;;  %v429_v53 = vpop.f32.mrb[29].mxu0 }
 0x14f   :  { %v4150_v19 = vadd.f32 %v429_v53, %v4112_v34  ;;  %v431_v37 = vpop.f32.mrb[30].mxu0 }
 0x150   :  { %5472 = vst [vmem:[#allocation80_spill] sm:$0xff] %v4147_v28  ;;  %v4153_v32 = vadd.f32 %v431_v37, %v4107_v40  ;;  %v433_v39 = vpop.f32.mrb[31].mxu0  ;;  %v325_v37 = vadd.f32 %v4004_v42, %v3997_v41 }
 0x151   :  { %5473 = vst [vmem:[#allocation81_spill] sm:$0xff] %v4150_v19  ;;  %v4156_v7 = vadd.f32 %v433_v39, %v4112_v34 }
 0x152   :  { %5474 = vst [vmem:[#allocation82_spill] sm:$0xff] %v4153_v32  ;;  %v327_v32 = vadd.f32 %v4013_v45, %v4018_v49 }
 0x153   :  { %5475 = vst [vmem:[#allocation83_spill] sm:$0xff] %v4156_v7 }
 0x155   :  { %v1058_v33 = vpop.f32.mrb[16].mxu1 }
 0x156   :  { %v1147_v28 = vadd.f32 %v1058_v33, %v252_v29  ;;  %v1060_v36 = vpop.f32.mrb[17].mxu1 }
 0x157   :  { %v1148_v27 = vadd.f32 %v1060_v36, %v254_v38  ;;  %v1062_v53 = vpop.f32.mrb[18].mxu1 }
 0x158   :  { %v1063_v19 = vpop.f32.mrb[19].mxu1  ;;  %v2732_v43 = vmul.f32 -1.442695, %v1147_v28 }
 0x159   :  { %v2733_v44 = vmul.f32 -1.442695, %v1148_v27 }
 0x15a   :  { %2997 = vpow2.f32 %v2732_v43 }
 0x15b   :  { %2999 = vpow2.f32 %v2733_v44  ;;  %v398_v44 = vadd.f32 %v4109_v31, %v4107_v40 }
 0x164   :  { %v2998_v38 = vpop.eup %2997 }
 0x165   :  { %v3000_v19 = vpop.eup %2999  ;;  %v1163_v41 = vadd.f32 1.0, %v2998_v38 }
 0x166   :  { %v1164_v42 = vadd.f32 1.0, %v3000_v19 }
 0x175   :  { %v1099_v39 = vpop.f32.mrb[32].mxu0 }
 0x176   :  { %v1149_v7 = vadd.f32 %v1099_v39, %v325_v37  ;;  %v1101_v30 = vpop.f32.mrb[33].mxu0 }
 0x177   :  { %v1150_v23 = vadd.f32 %v1101_v30, %v327_v32  ;;  %v1103_v10 = vpop.f32.mrb[34].mxu0  ;;  %v532_v30 = vld [vmem:[%s5200_s4] sm:$0x3]  ;;  %s3477_s4 = smov [#allocation8]  }
 0x178   :  { %v1104_v25 = vpop.f32.mrb[35].mxu0  ;;  %v2734_v47 = vmul.f32 -1.442695, %v1149_v7  ;;  %s2581_s28 = sshll.u32 %s3477_s4, 4  ;;  %s2582_s28 = int_to_ptr.vmem [resolvable:$true] %s2581_s28 }
 0x179   :  { %v2735_v36 = vmul.f32 -1.442695, %v1150_v23  ;;  %v5476_v25 = vsub.s32 0, %v3985_v35  ;;  %v5477_v23 = vsub.s32 1, %v3985_v35  ;;  %v400_v35 = vadd.f32 %v4114_v51, %v4112_v34  ;;  %s3417_s9 = scalar_lea.vmem %s2582_s28, 2048  ;;  %p3422_p11 = scmp.lt.s32.totalorder %s2582_s28, %s2582_s28 }
 0x17a   :  { %3001 = vpow2.f32 %v2734_v47  ;;  %p3418_p10 = scmp.ne.s32.totalorder %s2582_s28, %s3417_s9  ;;  %p3423_p12 = scmp.lt.s32.totalorder %s3417_s9, %s3417_s9 }
 0x17b   :  { %3003 = vpow2.f32 %v2735_v36  ;;  %v4171_v27 = vrot.slane %v532_v30, %v5476_v25  ;;  %v4175_v28 = vrot.slane %v532_v30, %v5477_v23 }
 0x17c   :  { %3005 = vrcp.f32 %v1163_v41  ;;  %p3424_p13 = por %p3423_p12, %p3422_p11 }
 0x17d   :  { %3007 = vrcp.f32 %v1164_v42 }
 0x17e   :  { %p3425_p0 = pnand %p3424_p13, %p3418_p10 }
 0x184   :  { %v3002_v45 = vpop.eup %3001 }
 0x185   :  { %v3004_v49 = vpop.eup %3003  ;;  %v1165_v32 = vadd.f32 1.0, %v3002_v45 }
 0x186   :  { %v1166_v7 = vadd.f32 1.0, %v3004_v49  ;;  %v3006_v37 = vpop.eup %3005 }
 0x187   :  { %v3008_v43 = vpop.eup %3007  ;;  %3009 = vrcp.f32 %v1165_v32 }
 0x188   :  { %3011 = vrcp.f32 %v1166_v7  ;;  %v5478_v7 = vld [vmem:[#allocation15_spill] sm:$0xff] }
 0x191   :  { %v3010_v42 = vpop.eup %3009 }
 0x192   :  { %v3012_v30 = vpop.eup %3011  ;;  %v1183_v45 = vsub.f32 1.0, %v3010_v42  ;;  %v1187_v40 = vmul.f32 0.0, %v3010_v42  ;;  %v5484_v42 = vld [vmem:[#allocation25_spill] sm:$0xff] }
 0x193   :  { %v1184_v25 = vsub.f32 1.0, %v3012_v30  ;;  %v1188_v32 = vmul.f32 0.0, %v3012_v30  ;;  %v5485_v30 = vld [vmem:[#allocation27_spill] sm:$0xff] }
 0x195   :  { %v1140_v29 = vpop.f32.mrb[20].mxu1 }
 0x196   :  { %v1175_v33 = vadd.f32 %v1140_v29, %v4171_v27  ;;  %v1142_v53 = vpop.f32.mrb[21].mxu1 }
 0x197   :  { %v1176_v39 = vadd.f32 %v1142_v53, %v4175_v28  ;;  %v1144_v10 = vpop.f32.mrb[22].mxu1 }
 0x198   :  { %v1177_v47 = vmul.f32 %v3006_v37, %v1175_v33  ;;  %v1145_v36 = vpop.f32.mrb[23].mxu1  ;;  %v5479_v37 = vld [vmem:[#allocation17_spill] sm:$0xff]  ;;  %v4202_v10 = vld [vmem:[#allocation5 + $0x34] ss:$24 sps:$4 sm:$0xff]  }
 0x199   :  { %v1178_v38 = vmul.f32 %v3008_v43, %v1176_v39  ;;  %v4199_v39 = vld [vmem:[#allocation5] ss:$24 sps:$4 sm:$0xff]   ;;  %v4210_v36 = vld [vmem:[#allocation5 + $0x64] ss:$24 sps:$4 sm:$0xff]  }
 0x19a   :  { %v1179_v19 = vadd.f32 %v1177_v47, %v398_v44  ;;  %v5480_v43 = vld [vmem:[#allocation18_spill] sm:$0xff]  ;;  %v5481_v44 = vld [vmem:[#allocation19_spill] sm:$0xff] }
 0x19b   :  { %v1180_v41 = vadd.f32 %v1178_v38, %v400_v35  ;;  %v4207_v47 = vld [vmem:[#allocation5 + $0x30] ss:$24 sps:$4 sm:$0xff]   ;;  %v5482_v35 = vld [vmem:[#allocation21_spill] sm:$0xff] }
 0x19c   :  { %3013 = vtanh.f32 %v1179_v19  ;;  %v5483_v38 = vld [vmem:[#allocation23_spill] sm:$0xff]  ;;  %v4215_v19 = vld [vmem:[#allocation5 + $0x60] ss:$24 sps:$4 sm:$0xff]  }
 0x19d   :  { %3015 = vtanh.f32 %v1180_v41  ;;  %v4218_v41 = vld [vmem:[#allocation5 + $0x94] ss:$24 sps:$4 sm:$0xff]  }
 0x1a6   :  { %v3014_v49 = vpop.eup %3013 }
 0x1a7   :  { %v3016_v23 = vpop.eup %3015  ;;  %v1185_v29 = vmul.f32 %v3014_v49, %v1183_v45  ;;  %v4223_v45 = vld [vmem:[#allocation5 + $0x90] ss:$24 sps:$4 sm:$0xff]   ;;  %v4226_v49 = vld [vmem:[#allocation5 + $0xc4] ss:$24 sps:$4 sm:$0xff]  }
 0x1a8   :  { %v1186_v31 = vmul.f32 %v3016_v23, %v1184_v25  ;;  %v5486_v25 = vld [vmem:[#allocation29_spill] sm:$0xff]  ;;  %v5487_v23 = vld [vmem:[#allocation31_spill] sm:$0xff] }
 0x1a9   :  { %v4183_v33 = vadd.f32 %v1187_v40, %v1185_v29  ;;  %v4231_v29 = vld [vmem:[#allocation5 + $0xc0] ss:$24 sps:$4 sm:$0xff]   ;;  %v4234_v40 = vld [vmem:[#allocation5 + $0xf4] ss:$24 sps:$4 sm:$0xff]  }
 0x1aa   :  { %v4185_v53 = vadd.f32 %v1188_v32, %v1186_v31  ;;  %v5488_v31 = vld [vmem:[#allocation33_spill] sm:$0xff]  ;;  %v5489_v32 = vld [vmem:[#allocation35_spill] sm:$0xff] }
 0x1ab   :  { %1191 = vst [vmem:[#allocation8] sm:$0xff] %v4183_v33  ;;  %v4193_v34 = vpack.c.bf16 %v4183_v33, %v4183_v33 }
 0x1ac   :  { %1192 = vst [vmem:[#allocation8 + $0x8] sm:$0xff] %v4185_v53  ;;  %v1194_v51 = vpack.c.bf16 %v4185_v53, %v4185_v53 }
 0x1ae   :  { %1227 = vmatprep.mubr.bf16.mxu0 %v1194_v51  ;;  %1268 = vmatprep.mubr.bf16.mxu1 %v1194_v51 }
 0x1af   :  { %1228 = vmatmul.mubr.bf16.vlgmr.msra.gmra.mrb[36].mxu0 %v4193_v34  ;;  %1269 = vmatmul.mubr.bf16.vlgmr.msra.gmra.mrb[24].mxu1 %v4193_v34 }
 0x1b0   :  { %1278 = vmatpush1.bf16.msra.mxu0 %v5478_v7  ;;  %1309 = vmatprep.mubr.bf16.mxu0 %v1194_v51  ;;  %v4239_v51 = vld [vmem:[#allocation5 + $0xf0] ss:$24 sps:$4 sm:$0xff]   ;;  %v4242_v7 = vld [vmem:[#allocation5 + $0x124] ss:$24 sps:$4 sm:$0xff]  }
 0x1b1   :  { %1279 = vmatprep.subr.bf16.mxu0 %v5479_v37  ;;  %1368 = vmatpush1.bf16.msra.mxu1 %v4199_v39  ;;  %5490 = vst [vmem:[#allocation15_spill] sm:$0xff] %v4239_v51  ;;  %5491 = vst [vmem:[#allocation17_spill] sm:$0xff] %v4242_v7  ;;  %v5492_v37 = vld [vmem:[#allocation37_spill] sm:$0xff] }
 0x1b2   :  { %1369 = vmatprep.subr.bf16.mxu1 %v4202_v10 }
 0x1b4   :  { %1280 = vmatpush1.bf16.msra.mxu0 %v5480_v43  ;;  %v5493_v43 = vld [vmem:[#allocation39_spill] sm:$0xff] }
 0x1b5   :  { %1281 = vmatprep.subr.bf16.mxu0 %v5481_v44  ;;  %1370 = vmatpush1.bf16.msra.mxu1 %v4207_v47  ;;  %v4247_v44 = vld [vmem:[#allocation5 + $0x120] ss:$24 sps:$4 sm:$0xff]  }
 0x1b6   :  { %1371 = vmatprep.subr.bf16.mxu1 %v4210_v36  ;;  %5494 = vst [vmem:[#allocation18_spill] sm:$0xff] %v4247_v44 }
 0x1b8   :  { %1282 = vmatpush1.bf16.msra.mxu0 %v5482_v35  ;;  %v4250_v35 = vld [vmem:[#allocation5 + $0x154] ss:$24 sps:$4 sm:$0xff]  }
 0x1b9   :  { %1283 = vmatprep.subr.bf16.mxu0 %v5483_v38  ;;  %1372 = vmatpush1.bf16.msra.mxu1 %v4215_v19  ;;  %5495 = vst [vmem:[#allocation19_spill] sm:$0xff] %v4250_v35  ;;  %v5496_v38 = vld [vmem:[#allocation41_spill] sm:$0xff] }
 0x1ba   :  { %1373 = vmatprep.subr.bf16.mxu1 %v4218_v41 }
 0x1bc   :  { %1284 = vmatpush1.bf16.msra.mxu0 %v5484_v42 }
 0x1bd   :  { %1285 = vmatprep.subr.bf16.mxu0 %v5485_v30  ;;  %1374 = vmatpush1.bf16.msra.mxu1 %v4223_v45 }
 0x1be   :  { %1375 = vmatprep.subr.bf16.mxu1 %v4226_v49 }
 0x1c0   :  { %1286 = vmatpush1.bf16.msra.mxu0 %v5486_v25 }
 0x1c1   :  { %1287 = vmatprep.subr.bf16.mxu0 %v5487_v23  ;;  %1376 = vmatpush1.bf16.msra.mxu1 %v4231_v29 }
 0x1c2   :  { %1377 = vmatprep.subr.bf16.mxu1 %v4234_v40 }
 0x1c4   :  { %1288 = vmatpush1.bf16.msra.mxu0 %v5488_v31 }
 0x1c5   :  { %1289 = vmatprep.subr.bf16.mxu0 %v5489_v32  ;;  %1378 = vmatpush1.bf16.msra.mxu1 %v4239_v51  ;;  %v5497_v32 = vld [vmem:[#allocation42_spill] sm:$0xff]  ;;  %v4255_v51 = vld [vmem:[#allocation5 + $0x150] ss:$24 sps:$4 sm:$0xff]  }
 0x1c6   :  { %1379 = vmatprep.subr.bf16.mxu1 %v4242_v7  ;;  %5498 = vst [vmem:[#allocation21_spill] sm:$0xff] %v4255_v51  ;;  %v4258_v7 = vld [vmem:[#allocation5 + $0x184] ss:$24 sps:$4 sm:$0xff]  }
 0x1c7   :  { %5499 = vst [vmem:[#allocation23_spill] sm:$0xff] %v4258_v7 }
 0x1c8   :  { %1290 = vmatpush1.bf16.msra.mxu0 %v5492_v37 }
 0x1c9   :  { %1291 = vmatprep.subr.bf16.mxu0 %v5493_v43  ;;  %1380 = vmatpush1.bf16.msra.mxu1 %v4247_v44  ;;  %v4263_v44 = vld [vmem:[#allocation5 + $0x180] ss:$24 sps:$4 sm:$0xff]  }
 0x1ca   :  { %1381 = vmatprep.subr.bf16.mxu1 %v4250_v35  ;;  %5500 = vst [vmem:[#allocation25_spill] sm:$0xff] %v4263_v44  ;;  %v4266_v35 = vld [vmem:[#allocation5 + $0x1b4] ss:$24 sps:$4 sm:$0xff]  }
 0x1cc   :  { %1292 = vmatpush1.bf16.msra.mxu0 %v5496_v38 }
 0x1cd   :  { %1293 = vmatprep.subr.bf16.mxu0 %v5497_v32  ;;  %1382 = vmatpush1.bf16.msra.mxu1 %v4255_v51  ;;  %v4271_v51 = vld [vmem:[#allocation5 + $0x1b0] ss:$24 sps:$4 sm:$0xff]  }
 0x1ce   :  { %1383 = vmatprep.subr.bf16.mxu1 %v4258_v7  ;;  %v4274_v7 = vld [vmem:[#allocation5 + $0x1e4] ss:$24 sps:$4 sm:$0xff]  }
 0x1cf   :  { %5501 = vst [vmem:[#allocation27_spill] sm:$0xff] %v4274_v7 }
 0x1d0   :  { %1294 = vmatpush1.bf16.msra.mxu0 %v3871_v5 }
 0x1d1   :  { %1295 = vmatprep.subr.bf16.mxu0 %v3874_v6  ;;  %1384 = vmatpush1.bf16.msra.mxu1 %v4263_v44  ;;  %v4279_v44 = vld [vmem:[#allocation5 + $0x1e0] ss:$24 sps:$4 sm:$0xff]  }
 0x1d2   :  { %1385 = vmatprep.subr.bf16.mxu1 %v4266_v35  ;;  %5502 = vst [vmem:[#allocation29_spill] sm:$0xff] %v4279_v44 }
 0x1d4   :  { %1296 = vmatpush1.bf16.msra.mxu0 %v3879_v17 }
 0x1d5   :  { %1297 = vmatprep.subr.bf16.mxu0 %v3883_v9  ;;  %1386 = vmatpush1.bf16.msra.mxu1 %v4271_v51 }
 0x1d6   :  { %1387 = vmatprep.subr.bf16.mxu1 %v4274_v7 }
 0x1d8   :  { %1298 = vmatpush1.bf16.msra.mxu0 %v3887_v22 }
 0x1d9   :  { %1299 = vmatprep.subr.bf16.mxu0 %v3891_v24  ;;  %1388 = vmatpush1.bf16.msra.mxu1 %v4279_v44 }
 0x1da   :  { %1389 = vmatprep.subr.bf16.mxu1 %v3702_v46  ;;  %v4300_v46 = vld [vmem:[#allocation5 + $0xc] ss:$24 sps:$4 sm:$0xff]  }
 0x1db   :  { %5503 = vst [vmem:[#allocation31_spill] sm:$0xff] %v4300_v46 }
 0x1dc   :  { %1300 = vmatpush1.bf16.msra.mxu0 %v3895_v11 }
 0x1dd   :  { %1301 = vmatprep.subr.bf16.mxu0 %v3899_v12  ;;  %1390 = vmatpush1.bf16.msra.mxu1 %v3706_v48  ;;  %v4306_v48 = vld [vmem:[#allocation5 + $0x8] ss:$24 sps:$4 sm:$0xff]  }
 0x1de   :  { %1391 = vmatprep.subr.bf16.mxu1 %v3716_v50  ;;  %5504 = vst [vmem:[#allocation33_spill] sm:$0xff] %v4306_v48  ;;  %v4309_v50 = vld [vmem:[#allocation5 + $0x3c] ss:$24 sps:$4 sm:$0xff]  }
 0x1df   :  { %5505 = vst [vmem:[#allocation37_spill] sm:$0xff] %v4309_v50 }
 0x1e0   :  { %1302 = vmatpush1.bf16.msra.mxu0 %v3903_v13 }
 0x1e1   :  { %1303 = vmatprep.subr.bf16.mxu0 %v3907_v14  ;;  %1392 = vmatpush1.bf16.msra.mxu1 %v3721_v52  ;;  %v4312_v52 = vld [vmem:[#allocation5 + $0x38] ss:$24 sps:$4 sm:$0xff]  }
 0x1e2   :  { %1393 = vmatprep.subr.bf16.mxu1 %v3729_v54  ;;  %5506 = vst [vmem:[#allocation39_spill] sm:$0xff] %v4312_v52  ;;  %v4315_v54 = vld [vmem:[#allocation5 + $0x6c] ss:$24 sps:$4 sm:$0xff]  }
 0x1e3   :  { %5507 = vst [vmem:[#allocation41_spill] sm:$0xff] %v4315_v54 }
 0x1e4   :  { %1304 = vmatpush1.bf16.msra.mxu0 %v3911_v16 }
 0x1e5   :  { %1305 = vmatprep.subr.bf16.mxu0 %v3915_v18  ;;  %1394 = vmatpush1.bf16.msra.mxu1 %v3733_v56  ;;  %v4318_v56 = vld [vmem:[#allocation5 + $0x68] ss:$24 sps:$4 sm:$0xff]  }
 0x1e6   :  { %1395 = vmatprep.subr.bf16.mxu1 %v3743_v58  ;;  %5508 = vst [vmem:[#allocation42_spill] sm:$0xff] %v4318_v56  ;;  %v4321_v58 = vld [vmem:[#allocation5 + $0x9c] ss:$24 sps:$4 sm:$0xff]  }
 0x1e7   :  { %5509 = vst [vmem:[#allocation84_spill] sm:$0xff] %v4321_v58 }
 0x1e8   :  { %1306 = vmatpush1.bf16.msra.mxu0 %v3919_v20 }
 0x1e9   :  { %1307 = vmatprep.subr.bf16.mxu0 %v3923_v21  ;;  %1396 = vmatpush1.bf16.msra.mxu1 %v3748_v60  ;;  %v4324_v60 = vld [vmem:[#allocation5 + $0x98] ss:$24 sps:$4 sm:$0xff]  }
 0x1ea   :  { %1397 = vmatprep.subr.bf16.mxu1 %v3756_v62  ;;  %5510 = vst [vmem:[#allocation85_spill] sm:$0xff] %v4324_v60  ;;  %v4327_v62 = vld [vmem:[#allocation5 + $0xcc] ss:$24 sps:$4 sm:$0xff]  }
 0x1eb   :  { %5511 = vst [vmem:[#allocation86_spill] sm:$0xff] %v4327_v62 }
 0x1ec   :  { %1308 = vmatpush1.bf16.msra.mxu0 %v3927_v26 }
 0x1ed   :  { %1408 = vmatprep.subr.bf16.mxu0 %v4300_v46  ;;  %1398 = vmatpush1.bf16.msra.mxu1 %v3760_v1  ;;  %v4330_v1 = vld [vmem:[#allocation5 + $0xc8] ss:$24 sps:$4 sm:$0xff]  }
 0x1ee   :  { %1449 = vmatprep.subr.bf16.mxu1 %v3770_v3  ;;  %5512 = vst [vmem:[#allocation87_spill] sm:$0xff] %v4330_v1  ;;  %v4333_v3 = vld [vmem:[#allocation5 + $0xfc] ss:$24 sps:$4 sm:$0xff]  }
 0x1ef   :  { %1310 = vmatmul.mubr.bf16.vlgmr.msra.gmra.mrb[40].mxu0 %v4193_v34  ;;  %5513 = vst [vmem:[#allocation88_spill] sm:$0xff] %v4333_v3  ;;  %v5514_v34 = vld [vmem:[#allocation20_spill] sm:$0xff] }
 0x1f0   :  { %1409 = vmatpush1.bf16.msra.mxu0 %v4306_v48 }
 0x1f1   :  { %1410 = vmatprep.subr.bf16.mxu0 %v4309_v50 }
 0x1f4   :  { %1411 = vmatpush1.bf16.msra.mxu0 %v4312_v52 }
 0x1f5   :  { %1412 = vmatprep.subr.bf16.mxu0 %v4315_v54 }
 0x1f8   :  { %1413 = vmatpush1.bf16.msra.mxu0 %v4318_v56 }
 0x1f9   :  { %1414 = vmatprep.subr.bf16.mxu0 %v4321_v58 }
 0x1fc   :  { %1415 = vmatpush1.bf16.msra.mxu0 %v4324_v60  ;;  %v5529_v60 = vld [vmem:[#allocation44_spill] sm:$0xff] }
 0x1fd   :  { %1416 = vmatprep.subr.bf16.mxu0 %v4327_v62  ;;  %v5528_v62 = vld [vmem:[#allocation45_spill] sm:$0xff] }
 0x200   :  { %1417 = vmatpush1.bf16.msra.mxu0 %v4330_v1 }
 0x201   :  { %1418 = vmatprep.subr.bf16.mxu0 %v4333_v3  ;;  %v5527_v3 = vld [vmem:[#allocation16_spill] sm:$0xff] }
 0x204   :  { %1419 = vmatpush1.bf16.msra.mxu0 %v3731_v55  ;;  %v5515_v55 = vld [vmem:[#allocation22_spill] sm:$0xff] }
 0x205   :  { %1420 = vmatprep.subr.bf16.mxu0 %v3739_v57  ;;  %v5516_v57 = vld [vmem:[#allocation24_spill] sm:$0xff] }
 0x208   :  { %1421 = vmatpush1.bf16.msra.mxu0 %v3746_v59  ;;  %v5517_v59 = vld [vmem:[#allocation26_spill] sm:$0xff] }
 0x209   :  { %1422 = vmatprep.subr.bf16.mxu0 %v3752_v61  ;;  %v5518_v61 = vld [vmem:[#allocation28_spill] sm:$0xff] }
 0x20c   :  { %1423 = vmatpush1.bf16.msra.mxu0 %v3758_v63  ;;  %v5519_v63 = vld [vmem:[#allocation30_spill] sm:$0xff] }
 0x20d   :  { %1424 = vmatprep.subr.bf16.mxu0 %v3766_v2  ;;  %v5520_v2 = vld [vmem:[#allocation32_spill] sm:$0xff] }
 0x210   :  { %1425 = vmatpush1.bf16.msra.mxu0 %v3773_v4  ;;  %v5521_v4 = vld [vmem:[#allocation34_spill] sm:$0xff] }
 0x211   :  { %1426 = vmatprep.subr.bf16.mxu0 %v5426_v0  ;;  %v5522_v0 = vld [vmem:[#allocation36_spill] sm:$0xff] }
 0x214   :  { %1427 = vmatpush1.bf16.msra.mxu0 %v3785_v8  ;;  %v5523_v8 = vld [vmem:[#allocation38_spill] sm:$0xff] }
 0x215   :  { %1428 = vmatprep.subr.bf16.mxu0 %v3790_v15  ;;  %v5524_v15 = vld [vmem:[#allocation40_spill] sm:$0xff] }
 0x218   :  { %1429 = vmatpush1.bf16.msra.mxu0 %v5514_v34  ;;  %v4357_v34 = vld [vmem:[#allocation5 + $0x4] ss:$24 sps:$4 sm:$0xff]  }
 0x219   :  { %1430 = vmatprep.subr.bf16.mxu0 %v5515_v55  ;;  %5525 = vst [vmem:[#allocation20_spill] sm:$0xff] %v4357_v34 }
 0x21c   :  { %1431 = vmatpush1.bf16.msra.mxu0 %v5516_v57 }
 0x21d   :  { %1432 = vmatprep.subr.bf16.mxu0 %v5517_v59  ;;  %v5526_v59 = vld [vmem:[#allocation43_spill] sm:$0xff] }
 0x220   :  { %1433 = vmatpush1.bf16.msra.mxu0 %v5518_v61 }
 0x221   :  { %1434 = vmatprep.subr.bf16.mxu0 %v5519_v63 }
 0x224   :  { %1435 = vmatpush1.bf16.msra.mxu0 %v5520_v2 }
 0x225   :  { %1436 = vmatprep.subr.bf16.mxu0 %v5521_v4 }
 0x228   :  { %1437 = vmatpush1.bf16.msra.mxu0 %v5522_v0 }
 0x229   :  { %1438 = vmatprep.subr.bf16.mxu0 %v5523_v8 }
 0x22c   :  { %1439 = vmatpush1.bf16.msra.mxu0 %v5524_v15 }
 0x22d   :  { %1539 = vmatprep.subr.bf16.mxu0 %v4357_v34 }
 0x282   :  { %v1229_v55 = vpop.f32.mrb[36].mxu0  ;;  %v1270_v57 = vpop.f32.mrb[24].mxu1 }
 0x283   :  { %v1318_v61 = vadd.f32 %v1229_v55, %v5526_v59  ;;  %v1320_v63 = vadd.f32 %v1270_v57, %v5527_v3  ;;  %v1231_v1 = vpop.f32.mrb[37].mxu0  ;;  %v1272_v2 = vpop.f32.mrb[25].mxu1 }
 0x284   :  { %v1319_v4 = vadd.f32 %v1231_v1, %v5528_v62  ;;  %v1321_v0 = vadd.f32 %v1272_v2, %v5529_v60  ;;  %v1233_v58 = vpop.f32.mrb[38].mxu0  ;;  %v1274_v8 = vpop.f32.mrb[26].mxu1 }
 0x285   :  { %v1234_v56 = vpop.f32.mrb[39].mxu0  ;;  %v1275_v15 = vpop.f32.mrb[27].mxu1  ;;  %v2736_v54 = vmul.f32 -1.442695, %v1318_v61  ;;  %v2738_v34 = vmul.f32 -1.442695, %v1320_v63 }
 0x286   :  { %v2737_v52 = vmul.f32 -1.442695, %v1319_v4  ;;  %v2739_v50 = vmul.f32 -1.442695, %v1321_v0  ;;  %v5530_v4 = vld [vmem:[#allocation70_spill] sm:$0xff]  ;;  %v5531_v8 = vld [vmem:[#allocation71_spill] sm:$0xff] }
 0x287   :  { %3017 = vpow2.f32 %v2736_v54 }
 0x288   :  { %3019 = vpow2.f32 %v2737_v52 }
 0x289   :  { %3021 = vpow2.f32 %v2738_v34 }
 0x28a   :  { %3023 = vpow2.f32 %v2739_v50 }
 0x291   :  { %v3018_v48 = vpop.eup %3017 }
 0x292   :  { %v3020_v55 = vpop.eup %3019  ;;  %v1334_v3 = vadd.f32 1.0, %v3018_v48 }
 0x293   :  { %v1335_v57 = vadd.f32 1.0, %v3020_v55  ;;  %v3022_v62 = vpop.eup %3021 }
 0x294   :  { %3025 = vrcp.f32 %v1334_v3  ;;  %v3024_v60 = vpop.eup %3023  ;;  %v1336_v58 = vadd.f32 1.0, %v3022_v62 }
 0x295   :  { %3027 = vrcp.f32 %v1335_v57  ;;  %v1337_v1 = vadd.f32 1.0, %v3024_v60 }
 0x296   :  { %3029 = vrcp.f32 %v1336_v58 }
 0x297   :  { %3031 = vrcp.f32 %v1337_v1 }
 0x29e   :  { %v3026_v54 = vpop.eup %3025 }
 0x29f   :  { %v3028_v2 = vpop.eup %3027 }
 0x2a0   :  { %v3030_v55 = vpop.eup %3029 }
 0x2a1   :  { %v3032_v3 = vpop.eup %3031  ;;  %v1354_v57 = vsub.f32 1.0, %v3030_v55 }
 0x2a2   :  { %v1355_v60 = vsub.f32 1.0, %v3032_v3 }
 0x2c2   :  { %v1311_v56 = vpop.f32.mrb[40].mxu0 }
 0x2c3   :  { %v1346_v59 = vadd.f32 %v1311_v56, %v4171_v27  ;;  %v1313_v61 = vpop.f32.mrb[41].mxu0 }
 0x2c4   :  { %v1347_v52 = vadd.f32 %v1313_v61, %v4175_v28  ;;  %v1315_v63 = vpop.f32.mrb[42].mxu0 }
 0x2c5   :  { %v1348_v34 = vmul.f32 %v3026_v54, %v1346_v59  ;;  %v1316_v50 = vpop.f32.mrb[43].mxu0  ;;  %v1358_v63 = vmul.f32 %v3030_v55, %v4183_v33  ;;  %v1359_v59 = vmul.f32 %v3032_v3, %v4185_v53  ;;  %v4384_v33 = vld [vmem:[#allocation5 + $0x10] ss:$24 sps:$4 sm:$0xff]   ;;  %v4387_v53 = vld [vmem:[#allocation5 + $0x44] ss:$24 sps:$4 sm:$0xff]  }
 0x2c6   :  { %v1349_v48 = vmul.f32 %v3028_v2, %v1347_v52  ;;  %v4395_v50 = vld [vmem:[#allocation5 + $0x74] ss:$24 sps:$4 sm:$0xff]  }
 0x2c7   :  { %v1350_v0 = vadd.f32 %v1348_v34, %v5530_v4  ;;  %v4392_v34 = vld [vmem:[#allocation5 + $0x40] ss:$24 sps:$4 sm:$0xff]   ;;  %v4403_v4 = vld [vmem:[#allocation5 + $0xa4] ss:$24 sps:$4 sm:$0xff]   ;;  %v5559_v55 = vld [vmem:[#allocation87_spill] sm:$0xff] }
 0x2c8   :  { %v1351_v15 = vadd.f32 %v1349_v48, %v5531_v8  ;;  %v4400_v48 = vld [vmem:[#allocation5 + $0x70] ss:$24 sps:$4 sm:$0xff]  }
 0x2c9   :  { %3033 = vtanh.f32 %v1350_v0  ;;  %v5532_v0 = vld [vmem:[#allocation35_spill] sm:$0xff]  ;;  %v5560_v3 = vld [vmem:[#allocation88_spill] sm:$0xff] }
 0x2ca   :  { %3035 = vtanh.f32 %v1351_v15  ;;  %v5533_v8 = vld [vmem:[#allocation15_spill] sm:$0xff]  ;;  %v5539_v15 = vld [vmem:[#allocation25_spill] sm:$0xff] }
 0x2d3   :  { %v3034_v62 = vpop.eup %3033 }
 0x2d4   :  { %v3036_v56 = vpop.eup %3035  ;;  %v1356_v61 = vmul.f32 %v3034_v62, %v1354_v57  ;;  %v4493_v57 = vld [vmem:[#allocation5 + $0xf8] ss:$24 sps:$4 sm:$0xff]   ;;  %v4496_v62 = vld [vmem:[#allocation5 + $0x12c] ss:$24 sps:$4 sm:$0xff]  }
 0x2d5   :  { %v1357_v58 = vmul.f32 %v3036_v56, %v1355_v60  ;;  %5561 = vst [vmem:[#allocation16_spill] sm:$0xff] %v4493_v57  ;;  %5562 = vst [vmem:[#allocation45_spill] sm:$0xff] %v4496_v62  ;;  %v4499_v60 = vld [vmem:[#allocation5 + $0x128] ss:$24 sps:$4 sm:$0xff]   ;;  %v4502_v56 = vld [vmem:[#allocation5 + $0x15c] ss:$24 sps:$4 sm:$0xff]  }
 0x2d6   :  { %v4370_v1 = vadd.f32 %v1358_v63, %v1356_v61  ;;  %5563 = vst [vmem:[#allocation44_spill] sm:$0xff] %v4499_v60  ;;  %5564 = vst [vmem:[#allocation70_spill] sm:$0xff] %v4502_v56  ;;  %v4505_v61 = vld [vmem:[#allocation5 + $0x158] ss:$24 sps:$4 sm:$0xff]   ;;  %v4508_v63 = vld [vmem:[#allocation5 + $0x18c] ss:$24 sps:$4 sm:$0xff]  }
 0x2d7   :  { %v4372_v54 = vadd.f32 %v1359_v59, %v1357_v58  ;;  %5565 = vst [vmem:[#allocation71_spill] sm:$0xff] %v4505_v61  ;;  %5566 = vst [vmem:[#allocation35_spill] sm:$0xff] %v4508_v63  ;;  %v4511_v58 = vld [vmem:[#allocation5 + $0x188] ss:$24 sps:$4 sm:$0xff]   ;;  %v4514_v59 = vld [vmem:[#allocation5 + $0x1bc] ss:$24 sps:$4 sm:$0xff]  }
 0x2d8   :  { %1363 = vst [vmem:[#allocation8 + $0x10] sm:$0xff] %v4370_v1  ;;  %v4380_v2 = vpack.c.bf16 %v4370_v1, %v4370_v1  ;;  %5567 = vst [vmem:[#allocation15_spill] sm:$0xff] %v4511_v58 }
 0x2d9   :  { %1364 = vst [vmem:[#allocation8 + $0x18] sm:$0xff] %v4372_v54  ;;  %v1366_v52 = vpack.c.bf16 %v4372_v54, %v4372_v54 }
 0x2db   :  { %1399 = vmatprep.mubr.bf16.mxu1 %v1366_v52  ;;  %1440 = vmatprep.mubr.bf16.mxu0 %v1366_v52 }
 0x2dc   :  { %1400 = vmatmul.mubr.bf16.vlgmr.msra.gmra.mrb[28].mxu1 %v4380_v2  ;;  %1441 = vmatmul.mubr.bf16.vlgmr.msra.gmra.mrb[44].mxu0 %v4380_v2 }
 0x2dd   :  { %1450 = vmatpush1.bf16.msra.mxu1 %v4384_v33  ;;  %1481 = vmatprep.mubr.bf16.mxu1 %v1366_v52  ;;  %v4517_v52 = vld [vmem:[#allocation5 + $0x1b8] ss:$24 sps:$4 sm:$0xff]  }
 0x2de   :  { %1451 = vmatprep.subr.bf16.mxu1 %v4387_v53  ;;  %1540 = vmatpush1.bf16.msra.mxu0 %v4199_v39 }
 0x2df   :  { %1541 = vmatprep.subr.bf16.mxu0 %v4202_v10 }
 0x2e1   :  { %1452 = vmatpush1.bf16.msra.mxu1 %v4392_v34 }
 0x2e2   :  { %1453 = vmatprep.subr.bf16.mxu1 %v4395_v50  ;;  %1542 = vmatpush1.bf16.msra.mxu0 %v4207_v47 }
 0x2e3   :  { %1543 = vmatprep.subr.bf16.mxu0 %v4210_v36 }
 0x2e5   :  { %1454 = vmatpush1.bf16.msra.mxu1 %v4400_v48 }
 0x2e6   :  { %1455 = vmatprep.subr.bf16.mxu1 %v4403_v4  ;;  %1544 = vmatpush1.bf16.msra.mxu0 %v4215_v19 }
 0x2e7   :  { %1545 = vmatprep.subr.bf16.mxu0 %v4218_v41 }
 0x2e9   :  { %1456 = vmatpush1.bf16.msra.mxu1 %v5484_v42  ;;  %v5534_v42 = vld [vmem:[#allocation17_spill] sm:$0xff] }
 0x2ea   :  { %1457 = vmatprep.subr.bf16.mxu1 %v5485_v30  ;;  %1546 = vmatpush1.bf16.msra.mxu0 %v4223_v45  ;;  %v5535_v30 = vld [vmem:[#allocation18_spill] sm:$0xff]  ;;  %5568 = vst [vmem:[#allocation17_spill] sm:$0xff] %v4514_v59 }
 0x2eb   :  { %1547 = vmatprep.subr.bf16.mxu0 %v4226_v49  ;;  %5569 = vst [vmem:[#allocation18_spill] sm:$0xff] %v4517_v52 }
 0x2ed   :  { %1458 = vmatpush1.bf16.msra.mxu1 %v5486_v25  ;;  %v5536_v25 = vld [vmem:[#allocation19_spill] sm:$0xff] }
 0x2ee   :  { %1459 = vmatprep.subr.bf16.mxu1 %v5487_v23  ;;  %1548 = vmatpush1.bf16.msra.mxu0 %v4231_v29  ;;  %v5537_v23 = vld [vmem:[#allocation21_spill] sm:$0xff] }
 0x2ef   :  { %1549 = vmatprep.subr.bf16.mxu0 %v4234_v40 }
 0x2f1   :  { %1460 = vmatpush1.bf16.msra.mxu1 %v5488_v31  ;;  %v5538_v31 = vld [vmem:[#allocation23_spill] sm:$0xff] }
 0x2f2   :  { %1461 = vmatprep.subr.bf16.mxu1 %v5532_v0  ;;  %1550 = vmatpush1.bf16.msra.mxu0 %v5533_v8  ;;  %v4523_v0 = vld [vmem:[#allocation5 + $0x1e8] ss:$24 sps:$4 sm:$0xff]  }
 0x2f3   :  { %1551 = vmatprep.subr.bf16.mxu0 %v5534_v42  ;;  %5571 = vst [vmem:[#allocation21_spill] sm:$0xff] %v4523_v0 }
 0x2f5   :  { %1462 = vmatpush1.bf16.msra.mxu1 %v5492_v37  ;;  %v5556_v37 = vld [vmem:[#allocation84_spill] sm:$0xff] }
 0x2f6   :  { %1463 = vmatprep.subr.bf16.mxu1 %v5493_v43  ;;  %1552 = vmatpush1.bf16.msra.mxu0 %v5535_v30  ;;  %v5557_v43 = vld [vmem:[#allocation85_spill] sm:$0xff] }
 0x2f7   :  { %1553 = vmatprep.subr.bf16.mxu0 %v5536_v25 }
 0x2f9   :  { %1464 = vmatpush1.bf16.msra.mxu1 %v5496_v38  ;;  %v5558_v38 = vld [vmem:[#allocation86_spill] sm:$0xff] }
 0x2fa   :  { %1465 = vmatprep.subr.bf16.mxu1 %v5497_v32  ;;  %1554 = vmatpush1.bf16.msra.mxu0 %v5537_v23  ;;  %v5554_v32 = vld [vmem:[#allocation41_spill] sm:$0xff] }
 0x2fb   :  { %1555 = vmatprep.subr.bf16.mxu0 %v5538_v31 }
 0x2fd   :  { %1466 = vmatpush1.bf16.msra.mxu1 %v3871_v5  ;;  %v4439_v5 = vld [vmem:[#allocation5 + $0x214] ss:$24 sps:$4 sm:$0xff]  }
 0x2fe   :  { %1467 = vmatprep.subr.bf16.mxu1 %v3874_v6  ;;  %1556 = vmatpush1.bf16.msra.mxu0 %v5539_v15  ;;  %5540 = vst [vmem:[#allocation22_spill] sm:$0xff] %v4439_v5  ;;  %v4444_v6 = vld [vmem:[#allocation5 + $0x210] ss:$24 sps:$4 sm:$0xff]  }
 0x2ff   :  { %1557 = vmatprep.subr.bf16.mxu0 %v4266_v35  ;;  %5541 = vst [vmem:[#allocation24_spill] sm:$0xff] %v4444_v6 }
 0x301   :  { %1468 = vmatpush1.bf16.msra.mxu1 %v3879_v17  ;;  %v4452_v17 = vld [vmem:[#allocation5 + $0x240] ss:$24 sps:$4 sm:$0xff]  }
 0x302   :  { %1469 = vmatprep.subr.bf16.mxu1 %v3883_v9  ;;  %1558 = vmatpush1.bf16.msra.mxu0 %v4271_v51  ;;  %v4447_v9 = vld [vmem:[#allocation5 + $0x244] ss:$24 sps:$4 sm:$0xff]   ;;  %5543 = vst [vmem:[#allocation28_spill] sm:$0xff] %v4452_v17 }
 0x303   :  { %1559 = vmatprep.subr.bf16.mxu0 %v4274_v7  ;;  %5542 = vst [vmem:[#allocation26_spill] sm:$0xff] %v4447_v9 }
 0x305   :  { %1470 = vmatpush1.bf16.msra.mxu1 %v3887_v22  ;;  %v4455_v22 = vld [vmem:[#allocation5 + $0x274] ss:$24 sps:$4 sm:$0xff]  }
 0x306   :  { %1471 = vmatprep.subr.bf16.mxu1 %v3891_v24  ;;  %1560 = vmatpush1.bf16.msra.mxu0 %v4279_v44  ;;  %5544 = vst [vmem:[#allocation30_spill] sm:$0xff] %v4455_v22  ;;  %v4460_v24 = vld [vmem:[#allocation5 + $0x270] ss:$24 sps:$4 sm:$0xff]  }
 0x307   :  { %1561 = vmatprep.subr.bf16.mxu0 %v4439_v5  ;;  %5545 = vst [vmem:[#allocation32_spill] sm:$0xff] %v4460_v24 }
 0x309   :  { %1472 = vmatpush1.bf16.msra.mxu1 %v3895_v11  ;;  %v4463_v11 = vld [vmem:[#allocation5 + $0x2a4] ss:$24 sps:$4 sm:$0xff]  }
 0x30a   :  { %1473 = vmatprep.subr.bf16.mxu1 %v3899_v12  ;;  %1562 = vmatpush1.bf16.msra.mxu0 %v4444_v6  ;;  %5546 = vst [vmem:[#allocation34_spill] sm:$0xff] %v4463_v11  ;;  %v4468_v12 = vld [vmem:[#allocation5 + $0x2a0] ss:$24 sps:$4 sm:$0xff]  }
 0x30b   :  { %1563 = vmatprep.subr.bf16.mxu0 %v4447_v9  ;;  %5547 = vst [vmem:[#allocation36_spill] sm:$0xff] %v4468_v12 }
 0x30d   :  { %1474 = vmatpush1.bf16.msra.mxu1 %v3903_v13  ;;  %v4471_v13 = vld [vmem:[#allocation5 + $0x2d4] ss:$24 sps:$4 sm:$0xff]  }
 0x30e   :  { %1475 = vmatprep.subr.bf16.mxu1 %v3907_v14  ;;  %1564 = vmatpush1.bf16.msra.mxu0 %v4452_v17  ;;  %5548 = vst [vmem:[#allocation38_spill] sm:$0xff] %v4471_v13  ;;  %v4476_v14 = vld [vmem:[#allocation5 + $0x2d0] ss:$24 sps:$4 sm:$0xff]  }
 0x30f   :  { %1565 = vmatprep.subr.bf16.mxu0 %v4455_v22  ;;  %5549 = vst [vmem:[#allocation40_spill] sm:$0xff] %v4476_v14 }
 0x311   :  { %1476 = vmatpush1.bf16.msra.mxu1 %v3911_v16  ;;  %v4479_v16 = vld [vmem:[#allocation5 + $0x14] ss:$24 sps:$4 sm:$0xff]  }
 0x312   :  { %1477 = vmatprep.subr.bf16.mxu1 %v3915_v18  ;;  %1566 = vmatpush1.bf16.msra.mxu0 %v4460_v24  ;;  %5550 = vst [vmem:[#allocation43_spill] sm:$0xff] %v4479_v16  ;;  %v5551_v18 = vld [vmem:[#allocation33_spill] sm:$0xff] }
 0x313   :  { %1567 = vmatprep.subr.bf16.mxu0 %v4463_v11 }
 0x315   :  { %1478 = vmatpush1.bf16.msra.mxu1 %v3919_v20  ;;  %v5552_v20 = vld [vmem:[#allocation37_spill] sm:$0xff] }
 0x316   :  { %1479 = vmatprep.subr.bf16.mxu1 %v3923_v21  ;;  %1568 = vmatpush1.bf16.msra.mxu0 %v4468_v12  ;;  %v5553_v21 = vld [vmem:[#allocation39_spill] sm:$0xff] }
 0x317   :  { %1569 = vmatprep.subr.bf16.mxu0 %v4471_v13 }
 0x319   :  { %1480 = vmatpush1.bf16.msra.mxu1 %v3927_v26  ;;  %v5555_v26 = vld [vmem:[#allocation42_spill] sm:$0xff] }
 0x31a   :  { %1580 = vmatprep.subr.bf16.mxu1 %v4300_v46  ;;  %1570 = vmatpush1.bf16.msra.mxu0 %v4476_v14 }
 0x31b   :  { %1621 = vmatprep.subr.bf16.mxu0 %v4479_v16 }
 0x31c   :  { %1482 = vmatmul.mubr.bf16.vlgmr.msra.gmra.mrb[32].mxu1 %v4380_v2  ;;  %v4520_v2 = vld [vmem:[#allocation5 + $0x1ec] ss:$24 sps:$4 sm:$0xff]  }
 0x31d   :  { %1581 = vmatpush1.bf16.msra.mxu1 %v5551_v18  ;;  %5570 = vst [vmem:[#allocation19_spill] sm:$0xff] %v4520_v2 }
 0x31e   :  { %1582 = vmatprep.subr.bf16.mxu1 %v5552_v20 }
 0x321   :  { %1583 = vmatpush1.bf16.msra.mxu1 %v5553_v21 }
 0x322   :  { %1584 = vmatprep.subr.bf16.mxu1 %v5554_v32 }
 0x325   :  { %1585 = vmatpush1.bf16.msra.mxu1 %v5555_v26 }
 0x326   :  { %1586 = vmatprep.subr.bf16.mxu1 %v5556_v37 }
 0x329   :  { %1587 = vmatpush1.bf16.msra.mxu1 %v5557_v43 }
 0x32a   :  { %1588 = vmatprep.subr.bf16.mxu1 %v5558_v38  ;;  %v5586_v38 = vld [vmem:[#allocation49_spill] sm:$0xff] }
 0x32d   :  { %1589 = vmatpush1.bf16.msra.mxu1 %v5559_v55  ;;  %v5585_v55 = vld [vmem:[#allocation48_spill] sm:$0xff] }
 0x32e   :  { %1590 = vmatprep.subr.bf16.mxu1 %v5560_v3 }
 0x331   :  { %1591 = vmatpush1.bf16.msra.mxu1 %v4493_v57 }
 0x332   :  { %1592 = vmatprep.subr.bf16.mxu1 %v4496_v62  ;;  %v5584_v62 = vld [vmem:[#allocation47_spill] sm:$0xff] }
 0x335   :  { %1593 = vmatpush1.bf16.msra.mxu1 %v4499_v60 }
 0x336   :  { %1594 = vmatprep.subr.bf16.mxu1 %v4502_v56  ;;  %v5583_v56 = vld [vmem:[#allocation46_spill] sm:$0xff] }
 0x339   :  { %1595 = vmatpush1.bf16.msra.mxu1 %v4505_v61 }
 0x33a   :  { %1596 = vmatprep.subr.bf16.mxu1 %v4508_v63  ;;  %v4526_v63 = vld [vmem:[#allocation5 + $0x21c] ss:$24 sps:$4 sm:$0xff]  }
 0x33b   :  { %5572 = vst [vmem:[#allocation23_spill] sm:$0xff] %v4526_v63 }
 0x33d   :  { %1597 = vmatpush1.bf16.msra.mxu1 %v4511_v58  ;;  %v4529_v58 = vld [vmem:[#allocation5 + $0x218] ss:$24 sps:$4 sm:$0xff]  }
 0x33e   :  { %1598 = vmatprep.subr.bf16.mxu1 %v4514_v59  ;;  %5573 = vst [vmem:[#allocation25_spill] sm:$0xff] %v4529_v58  ;;  %v4532_v59 = vld [vmem:[#allocation5 + $0x24c] ss:$24 sps:$4 sm:$0xff]  }
 0x33f   :  { %5574 = vst [vmem:[#allocation89_spill] sm:$0xff] %v4532_v59 }
 0x341   :  { %1599 = vmatpush1.bf16.msra.mxu1 %v4517_v52  ;;  %v4535_v52 = vld [vmem:[#allocation5 + $0x248] ss:$24 sps:$4 sm:$0xff]  }
 0x342   :  { %1600 = vmatprep.subr.bf16.mxu1 %v4520_v2  ;;  %5575 = vst [vmem:[#allocation90_spill] sm:$0xff] %v4535_v52  ;;  %v4538_v2 = vld [vmem:[#allocation5 + $0x27c] ss:$24 sps:$4 sm:$0xff]  }
 0x343   :  { %5576 = vst [vmem:[#allocation91_spill] sm:$0xff] %v4538_v2 }
 0x345   :  { %1601 = vmatpush1.bf16.msra.mxu1 %v4523_v0  ;;  %v4541_v0 = vld [vmem:[#allocation5 + $0x278] ss:$24 sps:$4 sm:$0xff]  }
 0x346   :  { %1602 = vmatprep.subr.bf16.mxu1 %v4526_v63  ;;  %5577 = vst [vmem:[#allocation92_spill] sm:$0xff] %v4541_v0  ;;  %v4544_v63 = vld [vmem:[#allocation5 + $0x2ac] ss:$24 sps:$4 sm:$0xff]  }
 0x347   :  { %5578 = vst [vmem:[#allocation93_spill] sm:$0xff] %v4544_v63 }
 0x349   :  { %1603 = vmatpush1.bf16.msra.mxu1 %v4529_v58  ;;  %v4547_v58 = vld [vmem:[#allocation5 + $0x2a8] ss:$24 sps:$4 sm:$0xff]  }
 0x34a   :  { %1604 = vmatprep.subr.bf16.mxu1 %v4532_v59  ;;  %5579 = vst [vmem:[#allocation94_spill] sm:$0xff] %v4547_v58  ;;  %v4550_v59 = vld [vmem:[#allocation5 + $0x2dc] ss:$24 sps:$4 sm:$0xff]  }
 0x34b   :  { %5580 = vst [vmem:[#allocation95_spill] sm:$0xff] %v4550_v59 }
 0x34d   :  { %1605 = vmatpush1.bf16.msra.mxu1 %v4535_v52  ;;  %v4553_v52 = vld [vmem:[#allocation5 + $0x2d8] ss:$24 sps:$4 sm:$0xff]  }
 0x34e   :  { %1606 = vmatprep.subr.bf16.mxu1 %v4538_v2  ;;  %5581 = vst [vmem:[#allocation96_spill] sm:$0xff] %v4553_v52  ;;  %v5582_v2 = vld [vmem:[#allocation20_spill] sm:$0xff] }
 0x351   :  { %1607 = vmatpush1.bf16.msra.mxu1 %v4541_v0 }
 0x352   :  { %1608 = vmatprep.subr.bf16.mxu1 %v4544_v63 }
 0x355   :  { %1609 = vmatpush1.bf16.msra.mxu1 %v4547_v58 }
 0x356   :  { %1610 = vmatprep.subr.bf16.mxu1 %v4550_v59 }
 0x359   :  { %1611 = vmatpush1.bf16.msra.mxu1 %v4553_v52 }
 0x35a   :  { %1711 = vmatprep.subr.bf16.mxu1 %v5582_v2 }
 0x3af   :  { %v1401_v61 = vpop.f32.mrb[28].mxu1  ;;  %v1442_v0 = vpop.f32.mrb[44].mxu0 }
 0x3b0   :  { %v1490_v60 = vadd.f32 %v1401_v61, %v5583_v56  ;;  %v1492_v63 = vadd.f32 %v1442_v0, %v5584_v62  ;;  %v1403_v57 = vpop.f32.mrb[29].mxu1  ;;  %v1444_v3 = vpop.f32.mrb[45].mxu0 }
 0x3b1   :  { %v1491_v58 = vadd.f32 %v1403_v57, %v5585_v55  ;;  %v1493_v43 = vadd.f32 %v1444_v3, %v5586_v38  ;;  %v1405_v37 = vpop.f32.mrb[30].mxu1  ;;  %v1446_v59 = vpop.f32.mrb[46].mxu0 }
 0x3b2   :  { %v1406_v26 = vpop.f32.mrb[31].mxu1  ;;  %v1447_v32 = vpop.f32.mrb[47].mxu0  ;;  %v2740_v21 = vmul.f32 -1.442695, %v1490_v60  ;;  %v2742_v2 = vmul.f32 -1.442695, %v1492_v63 }
 0x3b3   :  { %v2741_v52 = vmul.f32 -1.442695, %v1491_v58  ;;  %v2743_v20 = vmul.f32 -1.442695, %v1493_v43  ;;  %v5587_v59 = vld [vmem:[#allocation72_spill] sm:$0xff] }
 0x3b4   :  { %3037 = vpow2.f32 %v2740_v21 }
 0x3b5   :  { %3039 = vpow2.f32 %v2741_v52 }
 0x3b6   :  { %3041 = vpow2.f32 %v2742_v2  ;;  %v5588_v2 = vld [vmem:[#allocation73_spill] sm:$0xff] }
 0x3b7   :  { %3043 = vpow2.f32 %v2743_v20 }
 0x3be   :  { %v3038_v18 = vpop.eup %3037 }
 0x3bf   :  { %v3040_v56 = vpop.eup %3039  ;;  %v1506_v62 = vadd.f32 1.0, %v3038_v18 }
 0x3c0   :  { %v1507_v61 = vadd.f32 1.0, %v3040_v56  ;;  %v3042_v55 = vpop.eup %3041 }
 0x3c1   :  { %3045 = vrcp.f32 %v1506_v62  ;;  %v3044_v38 = vpop.eup %3043  ;;  %v1508_v37 = vadd.f32 1.0, %v3042_v55 }
 0x3c2   :  { %3047 = vrcp.f32 %v1507_v61  ;;  %v1509_v3 = vadd.f32 1.0, %v3044_v38 }
 0x3c3   :  { %3049 = vrcp.f32 %v1508_v37 }
 0x3c4   :  { %3051 = vrcp.f32 %v1509_v3 }
 0x3cb   :  { %v3046_v21 = vpop.eup %3045 }
 0x3cc   :  { %v3048_v63 = vpop.eup %3047 }
 0x3cd   :  { %v3050_v56 = vpop.eup %3049 }
 0x3ce   :  { %v3052_v62 = vpop.eup %3051  ;;  %v1526_v61 = vsub.f32 1.0, %v3050_v56 }
 0x3cf   :  { %v1527_v38 = vsub.f32 1.0, %v3052_v62 }
 0x3ef   :  { %v1483_v26 = vpop.f32.mrb[32].mxu1 }
 0x3f0   :  { %v1518_v32 = vadd.f32 %v1483_v26, %v4171_v27  ;;  %v1485_v57 = vpop.f32.mrb[33].mxu1 }
 0x3f1   :  { %v1519_v60 = vadd.f32 %v1485_v57, %v4175_v28  ;;  %v1487_v43 = vpop.f32.mrb[34].mxu1 }
 0x3f2   :  { %v1520_v58 = vmul.f32 %v3046_v21, %v1518_v32  ;;  %v1488_v20 = vpop.f32.mrb[35].mxu1  ;;  %v1530_v43 = vmul.f32 %v3050_v56, %v4370_v1  ;;  %v1531_v32 = vmul.f32 %v3052_v62, %v4372_v54  ;;  %v4593_v1 = vld [vmem:[#allocation5 + $0xa0] ss:$24 sps:$4 sm:$0xff]   ;;  %v4596_v54 = vld [vmem:[#allocation5 + $0xd4] ss:$24 sps:$4 sm:$0xff]  }
 0x3f3   :  { %v1521_v18 = vmul.f32 %v3048_v63, %v1519_v60  ;;  %v4604_v20 = vld [vmem:[#allocation5 + $0x104] ss:$24 sps:$4 sm:$0xff]   ;;  %v4628_v56 = vld [vmem:[#allocation5 + $0x194] ss:$24 sps:$4 sm:$0xff]   ;;  %v4633_v62 = vld [vmem:[#allocation5 + $0x190] ss:$24 sps:$4 sm:$0xff]  }
 0x3f4   :  { %v1522_v52 = vadd.f32 %v1520_v58, %v5587_v59  ;;  %v4601_v58 = vld [vmem:[#allocation5 + $0xd0] ss:$24 sps:$4 sm:$0xff]   ;;  %v4612_v59 = vld [vmem:[#allocation5 + $0x134] ss:$24 sps:$4 sm:$0xff]  }
 0x3f5   :  { %v1523_v0 = vadd.f32 %v1521_v18, %v5588_v2  ;;  %v4609_v18 = vld [vmem:[#allocation5 + $0x100] ss:$24 sps:$4 sm:$0xff]   ;;  %v4620_v2 = vld [vmem:[#allocation5 + $0x164] ss:$24 sps:$4 sm:$0xff]  }
 0x3f6   :  { %3053 = vtanh.f32 %v1522_v52  ;;  %v4617_v52 = vld [vmem:[#allocation5 + $0x130] ss:$24 sps:$4 sm:$0xff]  }
 0x3f7   :  { %3055 = vtanh.f32 %v1523_v0  ;;  %v4625_v0 = vld [vmem:[#allocation5 + $0x160] ss:$24 sps:$4 sm:$0xff]  }
 0x400   :  { %v3054_v55 = vpop.eup %3053 }
 0x401   :  { %v3056_v26 = vpop.eup %3055  ;;  %v1528_v57 = vmul.f32 %v3054_v55, %v1526_v61  ;;  %v4636_v61 = vld [vmem:[#allocation5 + $0x1c4] ss:$24 sps:$4 sm:$0xff]   ;;  %v4641_v55 = vld [vmem:[#allocation5 + $0x1c0] ss:$24 sps:$4 sm:$0xff]  }
 0x402   :  { %v1529_v37 = vmul.f32 %v3056_v26, %v1527_v38  ;;  %v4644_v38 = vld [vmem:[#allocation5 + $0x1f4] ss:$24 sps:$4 sm:$0xff]   ;;  %v4649_v26 = vld [vmem:[#allocation5 + $0x1f0] ss:$24 sps:$4 sm:$0xff]  }
 0x403   :  { %v4567_v3 = vadd.f32 %v1530_v43, %v1528_v57  ;;  %5589 = vst [vmem:[#allocation46_spill] sm:$0xff] %v4649_v26  ;;  %v4652_v57 = vld [vmem:[#allocation5 + $0x224] ss:$24 sps:$4 sm:$0xff]   ;;  %v4657_v43 = vld [vmem:[#allocation5 + $0x220] ss:$24 sps:$4 sm:$0xff]  }
 0x404   :  { %v4569_v21 = vadd.f32 %v1531_v32, %v1529_v37  ;;  %5590 = vst [vmem:[#allocation47_spill] sm:$0xff] %v4652_v57  ;;  %5591 = vst [vmem:[#allocation48_spill] sm:$0xff] %v4657_v43  ;;  %v4660_v37 = vld [vmem:[#allocation5 + $0x254] ss:$24 sps:$4 sm:$0xff]   ;;  %v4665_v32 = vld [vmem:[#allocation5 + $0x250] ss:$24 sps:$4 sm:$0xff]  }
 0x405   :  { %1535 = vst [vmem:[#allocation8 + $0x20] sm:$0xff] %v4567_v3  ;;  %v4577_v63 = vpack.c.bf16 %v4567_v3, %v4567_v3  ;;  %5592 = vst [vmem:[#allocation49_spill] sm:$0xff] %v4660_v37 }
 0x406   :  { %1536 = vst [vmem:[#allocation8 + $0x28] sm:$0xff] %v4569_v21  ;;  %v1538_v60 = vpack.c.bf16 %v4569_v21, %v4569_v21  ;;  %5593 = vst [vmem:[#allocation72_spill] sm:$0xff] %v4665_v32 }
 0x408   :  { %1571 = vmatprep.mubr.bf16.mxu0 %v1538_v60  ;;  %1612 = vmatprep.mubr.bf16.mxu1 %v1538_v60 }
 0x409   :  { %1572 = vmatmul.mubr.bf16.vlgmr.msra.gmra.mrb[48].mxu0 %v4577_v63  ;;  %1613 = vmatmul.mubr.bf16.vlgmr.msra.gmra.mrb[36].mxu1 %v4577_v63 }
 0x40a   :  { %1622 = vmatpush1.bf16.msra.mxu0 %v4384_v33  ;;  %1653 = vmatprep.mubr.bf16.mxu0 %v1538_v60  ;;  %v4668_v60 = vld [vmem:[#allocation5 + $0x284] ss:$24 sps:$4 sm:$0xff]  }
 0x40b   :  { %1623 = vmatprep.subr.bf16.mxu0 %v4387_v53  ;;  %1712 = vmatpush1.bf16.msra.mxu1 %v4199_v39  ;;  %5594 = vst [vmem:[#allocation73_spill] sm:$0xff] %v4668_v60 }
 0x40c   :  { %1713 = vmatprep.subr.bf16.mxu1 %v4202_v10 }
 0x40e   :  { %1624 = vmatpush1.bf16.msra.mxu0 %v4392_v34 }
 0x40f   :  { %1625 = vmatprep.subr.bf16.mxu0 %v4395_v50  ;;  %1714 = vmatpush1.bf16.msra.mxu1 %v4207_v47 }
 0x410   :  { %1715 = vmatprep.subr.bf16.mxu1 %v4210_v36 }
 0x412   :  { %1626 = vmatpush1.bf16.msra.mxu0 %v4400_v48 }
 0x413   :  { %1627 = vmatprep.subr.bf16.mxu0 %v4403_v4  ;;  %1716 = vmatpush1.bf16.msra.mxu1 %v4215_v19 }
 0x414   :  { %1717 = vmatprep.subr.bf16.mxu1 %v4218_v41 }
 0x416   :  { %1628 = vmatpush1.bf16.msra.mxu0 %v4593_v1 }
 0x417   :  { %1629 = vmatprep.subr.bf16.mxu0 %v4596_v54  ;;  %1718 = vmatpush1.bf16.msra.mxu1 %v4223_v45 }
 0x418   :  { %1719 = vmatprep.subr.bf16.mxu1 %v4226_v49 }
 0x41a   :  { %1630 = vmatpush1.bf16.msra.mxu0 %v4601_v58 }
 0x41b   :  { %1631 = vmatprep.subr.bf16.mxu0 %v4604_v20  ;;  %1720 = vmatpush1.bf16.msra.mxu1 %v4231_v29 }
 0x41c   :  { %1721 = vmatprep.subr.bf16.mxu1 %v4234_v40 }
 0x41e   :  { %1632 = vmatpush1.bf16.msra.mxu0 %v4609_v18 }
 0x41f   :  { %1633 = vmatprep.subr.bf16.mxu0 %v4612_v59  ;;  %1722 = vmatpush1.bf16.msra.mxu1 %v5533_v8 }
 0x420   :  { %1723 = vmatprep.subr.bf16.mxu1 %v5534_v42 }
 0x422   :  { %1634 = vmatpush1.bf16.msra.mxu0 %v4617_v52 }
 0x423   :  { %1635 = vmatprep.subr.bf16.mxu0 %v4620_v2  ;;  %1724 = vmatpush1.bf16.msra.mxu1 %v5535_v30 }
 0x424   :  { %1725 = vmatprep.subr.bf16.mxu1 %v5536_v25 }
 0x426   :  { %1636 = vmatpush1.bf16.msra.mxu0 %v4625_v0 }
 0x427   :  { %1637 = vmatprep.subr.bf16.mxu0 %v4628_v56  ;;  %1726 = vmatpush1.bf16.msra.mxu1 %v5537_v23 }
 0x428   :  { %1727 = vmatprep.subr.bf16.mxu1 %v5538_v31 }
 0x42a   :  { %1638 = vmatpush1.bf16.msra.mxu0 %v4633_v62 }
 0x42b   :  { %1639 = vmatprep.subr.bf16.mxu0 %v4636_v61  ;;  %1728 = vmatpush1.bf16.msra.mxu1 %v5539_v15 }
 0x42c   :  { %1729 = vmatprep.subr.bf16.mxu1 %v4266_v35 }
 0x42e   :  { %1640 = vmatpush1.bf16.msra.mxu0 %v4641_v55 }
 0x42f   :  { %1641 = vmatprep.subr.bf16.mxu0 %v4644_v38  ;;  %1730 = vmatpush1.bf16.msra.mxu1 %v4271_v51 }
 0x430   :  { %1731 = vmatprep.subr.bf16.mxu1 %v4274_v7 }
 0x432   :  { %1642 = vmatpush1.bf16.msra.mxu0 %v4649_v26 }
 0x433   :  { %1643 = vmatprep.subr.bf16.mxu0 %v4652_v57  ;;  %1732 = vmatpush1.bf16.msra.mxu1 %v4279_v44 }
 0x434   :  { %1733 = vmatprep.subr.bf16.mxu1 %v4439_v5 }
 0x436   :  { %1644 = vmatpush1.bf16.msra.mxu0 %v4657_v43  ;;  %v4673_v43 = vld [vmem:[#allocation5 + $0x280] ss:$24 sps:$4 sm:$0xff]  }
 0x437   :  { %1645 = vmatprep.subr.bf16.mxu0 %v4660_v37  ;;  %1734 = vmatpush1.bf16.msra.mxu1 %v4444_v6  ;;  %5595 = vst [vmem:[#allocation97_spill] sm:$0xff] %v4673_v43  ;;  %v4676_v37 = vld [vmem:[#allocation5 + $0x2b4] ss:$24 sps:$4 sm:$0xff]   ;;  %v5635_v6 = vld [vmem:[#allocation53_spill] sm:$0xff] }
 0x438   :  { %1735 = vmatprep.subr.bf16.mxu1 %v4447_v9  ;;  %5596 = vst [vmem:[#allocation98_spill] sm:$0xff] %v4676_v37  ;;  %v5634_v9 = vld [vmem:[#allocation52_spill] sm:$0xff] }
 0x43a   :  { %1646 = vmatpush1.bf16.msra.mxu0 %v4665_v32  ;;  %v4681_v32 = vld [vmem:[#allocation5 + $0x2b0] ss:$24 sps:$4 sm:$0xff]  }
 0x43b   :  { %1647 = vmatprep.subr.bf16.mxu0 %v4668_v60  ;;  %1736 = vmatpush1.bf16.msra.mxu1 %v4452_v17  ;;  %5597 = vst [vmem:[#allocation99_spill] sm:$0xff] %v4681_v32  ;;  %v4684_v60 = vld [vmem:[#allocation5 + $0x2e4] ss:$24 sps:$4 sm:$0xff]  }
 0x43c   :  { %1737 = vmatprep.subr.bf16.mxu1 %v4455_v22  ;;  %5598 = vst [vmem:[#allocation100_spill] sm:$0xff] %v4684_v60  ;;  %v5633_v22 = vld [vmem:[#allocation51_spill] sm:$0xff] }
 0x43e   :  { %1648 = vmatpush1.bf16.msra.mxu0 %v4673_v43  ;;  %v4689_v43 = vld [vmem:[#allocation5 + $0x2e0] ss:$24 sps:$4 sm:$0xff]  }
 0x43f   :  { %1649 = vmatprep.subr.bf16.mxu0 %v4676_v37  ;;  %1738 = vmatpush1.bf16.msra.mxu1 %v4460_v24  ;;  %5599 = vst [vmem:[#allocation101_spill] sm:$0xff] %v4689_v43  ;;  %v5605_v24 = vld [vmem:[#allocation84_spill] sm:$0xff]  ;;  %v5632_v37 = vld [vmem:[#allocation50_spill] sm:$0xff] }
 0x440   :  { %1739 = vmatprep.subr.bf16.mxu1 %v4463_v11  ;;  %v5601_v11 = vld [vmem:[#allocation37_spill] sm:$0xff] }
 0x442   :  { %1650 = vmatpush1.bf16.msra.mxu0 %v4681_v32  ;;  %v5600_v32 = vld [vmem:[#allocation33_spill] sm:$0xff] }
 0x443   :  { %1651 = vmatprep.subr.bf16.mxu0 %v4684_v60  ;;  %1740 = vmatpush1.bf16.msra.mxu1 %v4468_v12  ;;  %v5602_v60 = vld [vmem:[#allocation39_spill] sm:$0xff]  ;;  %v5603_v12 = vld [vmem:[#allocation41_spill] sm:$0xff] }
 0x444   :  { %1741 = vmatprep.subr.bf16.mxu1 %v4471_v13  ;;  %v5604_v13 = vld [vmem:[#allocation42_spill] sm:$0xff] }
 0x446   :  { %1652 = vmatpush1.bf16.msra.mxu0 %v4689_v43  ;;  %v5606_v43 = vld [vmem:[#allocation85_spill] sm:$0xff] }
 0x447   :  { %1752 = vmatprep.subr.bf16.mxu0 %v4300_v46  ;;  %1742 = vmatpush1.bf16.msra.mxu1 %v4476_v14  ;;  %v5607_v46 = vld [vmem:[#allocation86_spill] sm:$0xff]  ;;  %v5608_v14 = vld [vmem:[#allocation87_spill] sm:$0xff] }
 0x448   :  { %1793 = vmatprep.subr.bf16.mxu1 %v4479_v16  ;;  %v5609_v16 = vld [vmem:[#allocation88_spill] sm:$0xff] }
 0x449   :  { %1654 = vmatmul.mubr.bf16.vlgmr.msra.gmra.mrb[52].mxu0 %v4577_v63  ;;  %v5610_v63 = vld [vmem:[#allocation16_spill] sm:$0xff] }
 0x44a   :  { %1753 = vmatpush1.bf16.msra.mxu0 %v5600_v32  ;;  %v5611_v32 = vld [vmem:[#allocation45_spill] sm:$0xff] }
 0x44b   :  { %1754 = vmatprep.subr.bf16.mxu0 %v5601_v11  ;;  %v5612_v11 = vld [vmem:[#allocation44_spill] sm:$0xff] }
 0x44e   :  { %1755 = vmatpush1.bf16.msra.mxu0 %v5602_v60  ;;  %v5613_v60 = vld [vmem:[#allocation70_spill] sm:$0xff] }
 0x44f   :  { %1756 = vmatprep.subr.bf16.mxu0 %v5603_v12  ;;  %v5614_v12 = vld [vmem:[#allocation71_spill] sm:$0xff] }
 0x452   :  { %1757 = vmatpush1.bf16.msra.mxu0 %v5604_v13  ;;  %v5615_v13 = vld [vmem:[#allocation35_spill] sm:$0xff] }
 0x453   :  { %1758 = vmatprep.subr.bf16.mxu0 %v5605_v24  ;;  %v5616_v24 = vld [vmem:[#allocation15_spill] sm:$0xff] }
 0x456   :  { %1759 = vmatpush1.bf16.msra.mxu0 %v5606_v43  ;;  %v5617_v43 = vld [vmem:[#allocation17_spill] sm:$0xff] }
 0x457   :  { %1760 = vmatprep.subr.bf16.mxu0 %v5607_v46  ;;  %v5618_v46 = vld [vmem:[#allocation18_spill] sm:$0xff] }
 0x45a   :  { %1761 = vmatpush1.bf16.msra.mxu0 %v5608_v14  ;;  %v5619_v14 = vld [vmem:[#allocation19_spill] sm:$0xff] }
 0x45b   :  { %1762 = vmatprep.subr.bf16.mxu0 %v5609_v16  ;;  %v5620_v16 = vld [vmem:[#allocation21_spill] sm:$0xff] }
 0x45e   :  { %1763 = vmatpush1.bf16.msra.mxu0 %v5610_v63  ;;  %v5621_v63 = vld [vmem:[#allocation23_spill] sm:$0xff] }
 0x45f   :  { %1764 = vmatprep.subr.bf16.mxu0 %v5611_v32  ;;  %v5622_v32 = vld [vmem:[#allocation25_spill] sm:$0xff] }
 0x462   :  { %1765 = vmatpush1.bf16.msra.mxu0 %v5612_v11  ;;  %v5623_v11 = vld [vmem:[#allocation89_spill] sm:$0xff] }
 0x463   :  { %1766 = vmatprep.subr.bf16.mxu0 %v5613_v60  ;;  %v5624_v60 = vld [vmem:[#allocation90_spill] sm:$0xff] }
 0x466   :  { %1767 = vmatpush1.bf16.msra.mxu0 %v5614_v12  ;;  %v5625_v12 = vld [vmem:[#allocation91_spill] sm:$0xff] }
 0x467   :  { %1768 = vmatprep.subr.bf16.mxu0 %v5615_v13  ;;  %v5626_v13 = vld [vmem:[#allocation92_spill] sm:$0xff] }
 0x46a   :  { %1769 = vmatpush1.bf16.msra.mxu0 %v5616_v24  ;;  %v5627_v24 = vld [vmem:[#allocation93_spill] sm:$0xff] }
 0x46b   :  { %1770 = vmatprep.subr.bf16.mxu0 %v5617_v43  ;;  %v5628_v43 = vld [vmem:[#allocation94_spill] sm:$0xff] }
 0x46e   :  { %1771 = vmatpush1.bf16.msra.mxu0 %v5618_v46  ;;  %v5629_v46 = vld [vmem:[#allocation95_spill] sm:$0xff] }
 0x46f   :  { %1772 = vmatprep.subr.bf16.mxu0 %v5619_v14  ;;  %v5630_v14 = vld [vmem:[#allocation96_spill] sm:$0xff] }
 0x472   :  { %1773 = vmatpush1.bf16.msra.mxu0 %v5620_v16  ;;  %v5631_v16 = vld [vmem:[#allocation20_spill] sm:$0xff] }
 0x473   :  { %1774 = vmatprep.subr.bf16.mxu0 %v5621_v63 }
 0x476   :  { %1775 = vmatpush1.bf16.msra.mxu0 %v5622_v32 }
 0x477   :  { %1776 = vmatprep.subr.bf16.mxu0 %v5623_v11 }
 0x47a   :  { %1777 = vmatpush1.bf16.msra.mxu0 %v5624_v60 }
 0x47b   :  { %1778 = vmatprep.subr.bf16.mxu0 %v5625_v12 }
 0x47e   :  { %1779 = vmatpush1.bf16.msra.mxu0 %v5626_v13 }
 0x47f   :  { %1780 = vmatprep.subr.bf16.mxu0 %v5627_v24 }
 0x482   :  { %1781 = vmatpush1.bf16.msra.mxu0 %v5628_v43 }
 0x483   :  { %1782 = vmatprep.subr.bf16.mxu0 %v5629_v46 }
 0x486   :  { %1783 = vmatpush1.bf16.msra.mxu0 %v5630_v14 }
 0x487   :  { %1883 = vmatprep.subr.bf16.mxu0 %v5631_v16 }
 0x4dc   :  { %v1573_v63 = vpop.f32.mrb[48].mxu0  ;;  %v1614_v32 = vpop.f32.mrb[36].mxu1 }
 0x4dd   :  { %v1662_v11 = vadd.f32 %v1573_v63, %v5632_v37  ;;  %v1664_v60 = vadd.f32 %v1614_v32, %v5633_v22  ;;  %v1575_v17 = vpop.f32.mrb[49].mxu0  ;;  %v1616_v12 = vpop.f32.mrb[37].mxu1 }
 0x4de   :  { %v1663_v13 = vadd.f32 %v1575_v17, %v5634_v9  ;;  %v1665_v24 = vadd.f32 %v1616_v12, %v5635_v6  ;;  %v1577_v5 = vpop.f32.mrb[50].mxu0  ;;  %v1618_v43 = vpop.f32.mrb[38].mxu1 }
 0x4df   :  { %v1578_v44 = vpop.f32.mrb[51].mxu0  ;;  %v1619_v46 = vpop.f32.mrb[39].mxu1  ;;  %v2744_v57 = vmul.f32 -1.442695, %v1662_v11  ;;  %v2746_v16 = vmul.f32 -1.442695, %v1664_v60 }
 0x4e0   :  { %v2745_v14 = vmul.f32 -1.442695, %v1663_v13  ;;  %v2747_v26 = vmul.f32 -1.442695, %v1665_v24  ;;  %v5637_v60 = vld [vmem:[#allocation75_spill] sm:$0xff] }
 0x4e1   :  { %3057 = vpow2.f32 %v2744_v57  ;;  %v5636_v57 = vld [vmem:[#allocation74_spill] sm:$0xff] }
 0x4e2   :  { %3059 = vpow2.f32 %v2745_v14 }
 0x4e3   :  { %3061 = vpow2.f32 %v2746_v16 }
 0x4e4   :  { %3063 = vpow2.f32 %v2747_v26 }
 0x4eb   :  { %v3058_v7 = vpop.eup %3057 }
 0x4ec   :  { %v3060_v37 = vpop.eup %3059  ;;  %v1678_v22 = vadd.f32 1.0, %v3058_v7 }
 0x4ed   :  { %v1679_v32 = vadd.f32 1.0, %v3060_v37  ;;  %v3062_v9 = vpop.eup %3061 }
 0x4ee   :  { %3065 = vrcp.f32 %v1678_v22  ;;  %v3064_v6 = vpop.eup %3063  ;;  %v1680_v5 = vadd.f32 1.0, %v3062_v9 }
 0x4ef   :  { %3067 = vrcp.f32 %v1679_v32  ;;  %v1681_v17 = vadd.f32 1.0, %v3064_v6 }
 0x4f0   :  { %3069 = vrcp.f32 %v1680_v5 }
 0x4f1   :  { %3071 = vrcp.f32 %v1681_v17 }
 0x4f8   :  { %v3066_v12 = vpop.eup %3065 }
 0x4f9   :  { %v3068_v14 = vpop.eup %3067 }
 0x4fa   :  { %v3070_v37 = vpop.eup %3069 }
 0x4fb   :  { %v3072_v22 = vpop.eup %3071  ;;  %v1698_v32 = vsub.f32 1.0, %v3070_v37 }
 0x4fc   :  { %v1699_v6 = vsub.f32 1.0, %v3072_v22 }
 0x51c   :  { %v1655_v44 = vpop.f32.mrb[52].mxu0 }
 0x51d   :  { %v1690_v46 = vadd.f32 %v1655_v44, %v4171_v27  ;;  %v1657_v11 = vpop.f32.mrb[53].mxu0 }
 0x51e   :  { %v1691_v13 = vadd.f32 %v1657_v11, %v4175_v28  ;;  %v1659_v24 = vpop.f32.mrb[54].mxu0 }
 0x51f   :  { %v1692_v16 = vmul.f32 %v3066_v12, %v1690_v46  ;;  %v1660_v26 = vpop.f32.mrb[55].mxu0  ;;  %v1702_v24 = vmul.f32 %v3070_v37, %v4567_v3  ;;  %v1703_v46 = vmul.f32 %v3072_v22, %v4569_v21  ;;  %v5657_v3 = vld [vmem:[#allocation36_spill] sm:$0xff]  ;;  %v5658_v21 = vld [vmem:[#allocation38_spill] sm:$0xff]  ;;  %v5666_v37 = vld [vmem:[#allocation41_spill] sm:$0xff] }
 0x520   :  { %v1693_v7 = vmul.f32 %v3068_v14, %v1691_v13  ;;  %v5660_v26 = vld [vmem:[#allocation31_spill] sm:$0xff]  ;;  %v5667_v22 = vld [vmem:[#allocation42_spill] sm:$0xff] }
 0x521   :  { %v1694_v43 = vadd.f32 %v1692_v16, %v5636_v57  ;;  %v5659_v16 = vld [vmem:[#allocation101_spill] sm:$0xff]  ;;  %v5662_v57 = vld [vmem:[#allocation43_spill] sm:$0xff] }
 0x522   :  { %v1695_v63 = vadd.f32 %v1693_v7, %v5637_v60  ;;  %v5661_v7 = vld [vmem:[#allocation40_spill] sm:$0xff]  ;;  %v5664_v60 = vld [vmem:[#allocation37_spill] sm:$0xff] }
 0x523   :  { %3073 = vtanh.f32 %v1694_v43  ;;  %v5663_v43 = vld [vmem:[#allocation33_spill] sm:$0xff] }
 0x524   :  { %3075 = vtanh.f32 %v1695_v63  ;;  %v5665_v63 = vld [vmem:[#allocation39_spill] sm:$0xff] }
 0x52d   :  { %v3074_v9 = vpop.eup %3073 }
 0x52e   :  { %v3076_v44 = vpop.eup %3075  ;;  %v1700_v11 = vmul.f32 %v3074_v9, %v1698_v32  ;;  %v5668_v32 = vld [vmem:[#allocation84_spill] sm:$0xff]  ;;  %v5669_v9 = vld [vmem:[#allocation85_spill] sm:$0xff] }
 0x52f   :  { %v1701_v5 = vmul.f32 %v3076_v44, %v1699_v6  ;;  %v5670_v6 = vld [vmem:[#allocation86_spill] sm:$0xff]  ;;  %v5671_v44 = vld [vmem:[#allocation87_spill] sm:$0xff] }
 0x530   :  { %v4738_v17 = vadd.f32 %v1702_v24, %v1700_v11  ;;  %v5672_v11 = vld [vmem:[#allocation88_spill] sm:$0xff] }
 0x531   :  { %v4740_v12 = vadd.f32 %v1703_v46, %v1701_v5  ;;  %v5673_v24 = vld [vmem:[#allocation16_spill] sm:$0xff]  ;;  %v5674_v5 = vld [vmem:[#allocation45_spill] sm:$0xff] }
 0x532   :  { %1707 = vst [vmem:[#allocation8 + $0x30] sm:$0xff] %v4738_v17  ;;  %v4748_v14 = vpack.c.bf16 %v4738_v17, %v4738_v17  ;;  %v5675_v46 = vld [vmem:[#allocation44_spill] sm:$0xff] }
 0x533   :  { %1708 = vst [vmem:[#allocation8 + $0x38] sm:$0xff] %v4740_v12  ;;  %v1710_v13 = vpack.c.bf16 %v4740_v12, %v4740_v12 }
 0x535   :  { %1743 = vmatprep.mubr.bf16.mxu1 %v1710_v13  ;;  %1784 = vmatprep.mubr.bf16.mxu0 %v1710_v13 }
 0x536   :  { %1744 = vmatmul.mubr.bf16.vlgmr.msra.gmra.mrb[40].mxu1 %v4748_v14  ;;  %1785 = vmatmul.mubr.bf16.vlgmr.msra.gmra.mrb[56].mxu0 %v4748_v14 }
 0x537   :  { %1794 = vmatpush1.bf16.msra.mxu1 %v4384_v33  ;;  %1825 = vmatprep.mubr.bf16.mxu1 %v1710_v13  ;;  %v5676_v13 = vld [vmem:[#allocation70_spill] sm:$0xff] }
 0x538   :  { %1795 = vmatprep.subr.bf16.mxu1 %v4387_v53  ;;  %1884 = vmatpush1.bf16.msra.mxu0 %v4199_v39  ;;  %v5638_v39 = vld [vmem:[#allocation27_spill] sm:$0xff] }
 0x539   :  { %1885 = vmatprep.subr.bf16.mxu0 %v4202_v10  ;;  %v5639_v10 = vld [vmem:[#allocation46_spill] sm:$0xff] }
 0x53b   :  { %1796 = vmatpush1.bf16.msra.mxu1 %v4392_v34 }
 0x53c   :  { %1797 = vmatprep.subr.bf16.mxu1 %v4395_v50  ;;  %1886 = vmatpush1.bf16.msra.mxu0 %v4207_v47  ;;  %v5640_v47 = vld [vmem:[#allocation47_spill] sm:$0xff] }
 0x53d   :  { %1887 = vmatprep.subr.bf16.mxu0 %v4210_v36  ;;  %v5641_v36 = vld [vmem:[#allocation29_spill] sm:$0xff] }
 0x53f   :  { %1798 = vmatpush1.bf16.msra.mxu1 %v4400_v48 }
 0x540   :  { %1799 = vmatprep.subr.bf16.mxu1 %v4403_v4  ;;  %1888 = vmatpush1.bf16.msra.mxu0 %v4215_v19  ;;  %v5642_v19 = vld [vmem:[#allocation22_spill] sm:$0xff] }
 0x541   :  { %1889 = vmatprep.subr.bf16.mxu0 %v4218_v41  ;;  %v5643_v41 = vld [vmem:[#allocation48_spill] sm:$0xff] }
 0x543   :  { %1800 = vmatpush1.bf16.msra.mxu1 %v4593_v1 }
 0x544   :  { %1801 = vmatprep.subr.bf16.mxu1 %v4596_v54  ;;  %1890 = vmatpush1.bf16.msra.mxu0 %v4223_v45  ;;  %v5644_v45 = vld [vmem:[#allocation49_spill] sm:$0xff] }
 0x545   :  { %1891 = vmatprep.subr.bf16.mxu0 %v4226_v49  ;;  %v5645_v49 = vld [vmem:[#allocation24_spill] sm:$0xff] }
 0x547   :  { %1802 = vmatpush1.bf16.msra.mxu1 %v4601_v58 }
 0x548   :  { %1803 = vmatprep.subr.bf16.mxu1 %v4604_v20  ;;  %1892 = vmatpush1.bf16.msra.mxu0 %v4231_v29  ;;  %v5646_v29 = vld [vmem:[#allocation26_spill] sm:$0xff] }
 0x549   :  { %1893 = vmatprep.subr.bf16.mxu0 %v4234_v40  ;;  %v5647_v40 = vld [vmem:[#allocation72_spill] sm:$0xff] }
 0x54b   :  { %1804 = vmatpush1.bf16.msra.mxu1 %v4609_v18 }
 0x54c   :  { %1805 = vmatprep.subr.bf16.mxu1 %v4612_v59  ;;  %1894 = vmatpush1.bf16.msra.mxu0 %v5533_v8  ;;  %v5650_v8 = vld [vmem:[#allocation30_spill] sm:$0xff] }
 0x54d   :  { %1895 = vmatprep.subr.bf16.mxu0 %v5534_v42  ;;  %v5651_v42 = vld [vmem:[#allocation97_spill] sm:$0xff] }
 0x54f   :  { %1806 = vmatpush1.bf16.msra.mxu1 %v4617_v52 }
 0x550   :  { %1807 = vmatprep.subr.bf16.mxu1 %v4620_v2  ;;  %1896 = vmatpush1.bf16.msra.mxu0 %v5535_v30  ;;  %v5652_v30 = vld [vmem:[#allocation98_spill] sm:$0xff] }
 0x551   :  { %1897 = vmatprep.subr.bf16.mxu0 %v5536_v25  ;;  %v5653_v25 = vld [vmem:[#allocation32_spill] sm:$0xff] }
 0x553   :  { %1808 = vmatpush1.bf16.msra.mxu1 %v4625_v0 }
 0x554   :  { %1809 = vmatprep.subr.bf16.mxu1 %v4628_v56  ;;  %1898 = vmatpush1.bf16.msra.mxu0 %v5537_v23  ;;  %v5654_v23 = vld [vmem:[#allocation34_spill] sm:$0xff] }
 0x555   :  { %1899 = vmatprep.subr.bf16.mxu0 %v5538_v31  ;;  %v5655_v31 = vld [vmem:[#allocation99_spill] sm:$0xff] }
 0x557   :  { %1810 = vmatpush1.bf16.msra.mxu1 %v4633_v62 }
 0x558   :  { %1811 = vmatprep.subr.bf16.mxu1 %v4636_v61  ;;  %1900 = vmatpush1.bf16.msra.mxu0 %v5539_v15  ;;  %v5656_v15 = vld [vmem:[#allocation100_spill] sm:$0xff] }
 0x559   :  { %1901 = vmatprep.subr.bf16.mxu0 %v4266_v35  ;;  %v5649_v35 = vld [vmem:[#allocation28_spill] sm:$0xff] }
 0x55b   :  { %1812 = vmatpush1.bf16.msra.mxu1 %v4641_v55 }
 0x55c   :  { %1813 = vmatprep.subr.bf16.mxu1 %v4644_v38  ;;  %1902 = vmatpush1.bf16.msra.mxu0 %v4271_v51  ;;  %v5648_v51 = vld [vmem:[#allocation73_spill] sm:$0xff] }
 0x55d   :  { %1903 = vmatprep.subr.bf16.mxu0 %v5638_v39  ;;  %v5678_v39 = vld [vmem:[#allocation35_spill] sm:$0xff] }
 0x55f   :  { %1814 = vmatpush1.bf16.msra.mxu1 %v5639_v10 }
 0x560   :  { %1815 = vmatprep.subr.bf16.mxu1 %v5640_v47  ;;  %1904 = vmatpush1.bf16.msra.mxu0 %v5641_v36  ;;  %v5679_v36 = vld [vmem:[#allocation15_spill] sm:$0xff] }
 0x561   :  { %1905 = vmatprep.subr.bf16.mxu0 %v5642_v19 }
 0x563   :  { %1816 = vmatpush1.bf16.msra.mxu1 %v5643_v41 }
 0x564   :  { %1817 = vmatprep.subr.bf16.mxu1 %v5644_v45  ;;  %1906 = vmatpush1.bf16.msra.mxu0 %v5645_v49 }
 0x565   :  { %1907 = vmatprep.subr.bf16.mxu0 %v5646_v29 }
 0x567   :  { %1818 = vmatpush1.bf16.msra.mxu1 %v5647_v40 }
 0x568   :  { %1819 = vmatprep.subr.bf16.mxu1 %v5648_v51  ;;  %1908 = vmatpush1.bf16.msra.mxu0 %v5649_v35 }
 0x569   :  { %1909 = vmatprep.subr.bf16.mxu0 %v5650_v8 }
 0x56b   :  { %1820 = vmatpush1.bf16.msra.mxu1 %v5651_v42 }
 0x56c   :  { %1821 = vmatprep.subr.bf16.mxu1 %v5652_v30  ;;  %1910 = vmatpush1.bf16.msra.mxu0 %v5653_v25 }
 0x56d   :  { %1911 = vmatprep.subr.bf16.mxu0 %v5654_v23 }
 0x56f   :  { %1822 = vmatpush1.bf16.msra.mxu1 %v5655_v31 }
 0x570   :  { %1823 = vmatprep.subr.bf16.mxu1 %v5656_v15  ;;  %1912 = vmatpush1.bf16.msra.mxu0 %v5657_v3 }
 0x571   :  { %1913 = vmatprep.subr.bf16.mxu0 %v5658_v21 }
 0x573   :  { %1824 = vmatpush1.bf16.msra.mxu1 %v5659_v16 }
 0x574   :  { %1924 = vmatprep.subr.bf16.mxu1 %v5660_v26  ;;  %1914 = vmatpush1.bf16.msra.mxu0 %v5661_v7  ;;  %v5680_v26 = vld [vmem:[#allocation17_spill] sm:$0xff] }
 0x575   :  { %1965 = vmatprep.subr.bf16.mxu0 %v5662_v57 }
 0x576   :  { %1826 = vmatmul.mubr.bf16.vlgmr.msra.gmra.mrb[44].mxu1 %v4748_v14  ;;  %v5677_v14 = vld [vmem:[#allocation71_spill] sm:$0xff] }
 0x577   :  { %1925 = vmatpush1.bf16.msra.mxu1 %v5663_v43  ;;  %v5681_v43 = vld [vmem:[#allocation18_spill] sm:$0xff] }
 0x578   :  { %1926 = vmatprep.subr.bf16.mxu1 %v5664_v60  ;;  %v5682_v60 = vld [vmem:[#allocation19_spill] sm:$0xff] }
 0x57b   :  { %1927 = vmatpush1.bf16.msra.mxu1 %v5665_v63  ;;  %v5683_v63 = vld [vmem:[#allocation21_spill] sm:$0xff] }
 0x57c   :  { %1928 = vmatprep.subr.bf16.mxu1 %v5666_v37  ;;  %v5684_v37 = vld [vmem:[#allocation23_spill] sm:$0xff] }
 0x57f   :  { %1929 = vmatpush1.bf16.msra.mxu1 %v5667_v22  ;;  %v5685_v22 = vld [vmem:[#allocation25_spill] sm:$0xff] }
 0x580   :  { %1930 = vmatprep.subr.bf16.mxu1 %v5668_v32  ;;  %v5686_v32 = vld [vmem:[#allocation89_spill] sm:$0xff] }
 0x583   :  { %1931 = vmatpush1.bf16.msra.mxu1 %v5669_v9  ;;  %v5687_v9 = vld [vmem:[#allocation90_spill] sm:$0xff] }
 0x584   :  { %1932 = vmatprep.subr.bf16.mxu1 %v5670_v6  ;;  %v5688_v6 = vld [vmem:[#allocation91_spill] sm:$0xff] }
 0x587   :  { %1933 = vmatpush1.bf16.msra.mxu1 %v5671_v44  ;;  %v5689_v44 = vld [vmem:[#allocation92_spill] sm:$0xff] }
 0x588   :  { %1934 = vmatprep.subr.bf16.mxu1 %v5672_v11  ;;  %v5690_v11 = vld [vmem:[#allocation93_spill] sm:$0xff] }
 0x58b   :  { %1935 = vmatpush1.bf16.msra.mxu1 %v5673_v24 }
 0x58c   :  { %1936 = vmatprep.subr.bf16.mxu1 %v5674_v5 }
 0x58f   :  { %1937 = vmatpush1.bf16.msra.mxu1 %v5675_v46  ;;  %v5698_v46 = vld [vmem:[#allocation57_spill] sm:$0xff] }
 0x590   :  { %1938 = vmatprep.subr.bf16.mxu1 %v5676_v13  ;;  %v5697_v13 = vld [vmem:[#allocation56_spill] sm:$0xff] }
 0x593   :  { %1939 = vmatpush1.bf16.msra.mxu1 %v5677_v14 }
 0x594   :  { %1940 = vmatprep.subr.bf16.mxu1 %v5678_v39  ;;  %v5696_v39 = vld [vmem:[#allocation55_spill] sm:$0xff] }
 0x597   :  { %1941 = vmatpush1.bf16.msra.mxu1 %v5679_v36  ;;  %v5695_v36 = vld [vmem:[#allocation54_spill] sm:$0xff] }
 0x598   :  { %1942 = vmatprep.subr.bf16.mxu1 %v5680_v26  ;;  %v5691_v26 = vld [vmem:[#allocation94_spill] sm:$0xff] }
 0x59b   :  { %1943 = vmatpush1.bf16.msra.mxu1 %v5681_v43  ;;  %v5692_v43 = vld [vmem:[#allocation95_spill] sm:$0xff] }
 0x59c   :  { %1944 = vmatprep.subr.bf16.mxu1 %v5682_v60  ;;  %v5693_v60 = vld [vmem:[#allocation96_spill] sm:$0xff] }
 0x59f   :  { %1945 = vmatpush1.bf16.msra.mxu1 %v5683_v63  ;;  %v5694_v63 = vld [vmem:[#allocation20_spill] sm:$0xff] }
 0x5a0   :  { %1946 = vmatprep.subr.bf16.mxu1 %v5684_v37 }
 0x5a3   :  { %1947 = vmatpush1.bf16.msra.mxu1 %v5685_v22 }
 0x5a4   :  { %1948 = vmatprep.subr.bf16.mxu1 %v5686_v32 }
 0x5a7   :  { %1949 = vmatpush1.bf16.msra.mxu1 %v5687_v9 }
 0x5a8   :  { %1950 = vmatprep.subr.bf16.mxu1 %v5688_v6 }
 0x5ab   :  { %1951 = vmatpush1.bf16.msra.mxu1 %v5689_v44 }
 0x5ac   :  { %1952 = vmatprep.subr.bf16.mxu1 %v5690_v11 }
 0x5af   :  { %1953 = vmatpush1.bf16.msra.mxu1 %v5691_v26 }
 0x5b0   :  { %1954 = vmatprep.subr.bf16.mxu1 %v5692_v43 }
 0x5b3   :  { %1955 = vmatpush1.bf16.msra.mxu1 %v5693_v60 }
 0x5b4   :  { %2055 = vmatprep.subr.bf16.mxu1 %v5694_v63 }
 0x609   :  { %v1745_v37 = vpop.f32.mrb[40].mxu1  ;;  %v1786_v22 = vpop.f32.mrb[56].mxu0 }
 0x60a   :  { %v1834_v32 = vadd.f32 %v1745_v37, %v5695_v36  ;;  %v1836_v9 = vadd.f32 %v1786_v22, %v5696_v39  ;;  %v1747_v14 = vpop.f32.mrb[41].mxu1  ;;  %v1788_v6 = vpop.f32.mrb[57].mxu0 }
 0x60b   :  { %v1835_v44 = vadd.f32 %v1747_v14, %v5697_v13  ;;  %v1837_v11 = vadd.f32 %v1788_v6, %v5698_v46  ;;  %v1749_v5 = vpop.f32.mrb[42].mxu1  ;;  %v1790_v26 = vpop.f32.mrb[58].mxu0  ;;  %v5699_v6 = vld [vmem:[#allocation76_spill] sm:$0xff] }
 0x60c   :  { %v1750_v24 = vpop.f32.mrb[43].mxu1  ;;  %v1791_v43 = vpop.f32.mrb[59].mxu0  ;;  %v2748_v57 = vmul.f32 -1.442695, %v1834_v32  ;;  %v2750_v63 = vmul.f32 -1.442695, %v1836_v9 }
 0x60d   :  { %v2749_v60 = vmul.f32 -1.442695, %v1835_v44  ;;  %v2751_v7 = vmul.f32 -1.442695, %v1837_v11  ;;  %v5700_v11 = vld [vmem:[#allocation77_spill] sm:$0xff] }
 0x60e   :  { %3077 = vpow2.f32 %v2748_v57 }
 0x60f   :  { %3079 = vpow2.f32 %v2749_v60 }
 0x610   :  { %3081 = vpow2.f32 %v2750_v63 }
 0x611   :  { %3083 = vpow2.f32 %v2751_v7 }
 0x618   :  { %v3078_v16 = vpop.eup %3077 }
 0x619   :  { %v3080_v36 = vpop.eup %3079  ;;  %v1850_v39 = vadd.f32 1.0, %v3078_v16 }
 0x61a   :  { %v1851_v37 = vadd.f32 1.0, %v3080_v36  ;;  %v3082_v13 = vpop.eup %3081 }
 0x61b   :  { %3085 = vrcp.f32 %v1850_v39  ;;  %v3084_v46 = vpop.eup %3083  ;;  %v1852_v5 = vadd.f32 1.0, %v3082_v13 }
 0x61c   :  { %3087 = vrcp.f32 %v1851_v37  ;;  %v1853_v14 = vadd.f32 1.0, %v3084_v46 }
 0x61d   :  { %3089 = vrcp.f32 %v1852_v5 }
 0x61e   :  { %3091 = vrcp.f32 %v1853_v14 }
 0x625   :  { %v3086_v57 = vpop.eup %3085 }
 0x626   :  { %v3088_v32 = vpop.eup %3087 }
 0x627   :  { %v3090_v36 = vpop.eup %3089 }
 0x628   :  { %v3092_v39 = vpop.eup %3091  ;;  %v1870_v37 = vsub.f32 1.0, %v3090_v36 }
 0x629   :  { %v1871_v46 = vsub.f32 1.0, %v3092_v39 }
 0x649   :  { %v1827_v24 = vpop.f32.mrb[44].mxu1 }
 0x64a   :  { %v1862_v26 = vadd.f32 %v1827_v24, %v4171_v27  ;;  %v1829_v43 = vpop.f32.mrb[45].mxu1 }
 0x64b   :  { %v1863_v60 = vadd.f32 %v1829_v43, %v4175_v28  ;;  %v1831_v22 = vpop.f32.mrb[46].mxu1 }
 0x64c   :  { %v1864_v9 = vmul.f32 %v3086_v57, %v1862_v26  ;;  %v1832_v7 = vpop.f32.mrb[47].mxu1  ;;  %v1874_v22 = vmul.f32 %v3090_v36, %v4738_v17  ;;  %v1875_v26 = vmul.f32 %v3092_v39, %v4740_v12  ;;  %v4875_v17 = vld [vmem:[#allocation5] ss:$24 sps:$4 sm:$0xff]   ;;  %v4878_v12 = vld [vmem:[#allocation5 + $0x34] ss:$24 sps:$4 sm:$0xff]  }
 0x64d   :  { %v1865_v16 = vmul.f32 %v3088_v32, %v1863_v60  ;;  %v4894_v7 = vld [vmem:[#allocation5 + $0x94] ss:$24 sps:$4 sm:$0xff]   ;;  %v4934_v36 = vld [vmem:[#allocation5 + $0x184] ss:$24 sps:$4 sm:$0xff]   ;;  %v4939_v39 = vld [vmem:[#allocation5 + $0x180] ss:$24 sps:$4 sm:$0xff]  }
 0x64e   :  { %v1866_v44 = vadd.f32 %v1864_v9, %v5699_v6  ;;  %v4883_v9 = vld [vmem:[#allocation5 + $0x30] ss:$24 sps:$4 sm:$0xff]   ;;  %v4918_v6 = vld [vmem:[#allocation5 + $0x124] ss:$24 sps:$4 sm:$0xff]  }
 0x64f   :  { %v1867_v63 = vadd.f32 %v1865_v16, %v5700_v11  ;;  %v4915_v16 = vld [vmem:[#allocation5 + $0xf0] ss:$24 sps:$4 sm:$0xff]   ;;  %v4926_v11 = vld [vmem:[#allocation5 + $0x154] ss:$24 sps:$4 sm:$0xff]  }
 0x650   :  { %3093 = vtanh.f32 %v1866_v44  ;;  %v4923_v44 = vld [vmem:[#allocation5 + $0x120] ss:$24 sps:$4 sm:$0xff]  }
 0x651   :  { %3095 = vtanh.f32 %v1867_v63  ;;  %v4931_v63 = vld [vmem:[#allocation5 + $0x150] ss:$24 sps:$4 sm:$0xff]  }
 0x65a   :  { %v3094_v13 = vpop.eup %3093 }
 0x65b   :  { %v3096_v24 = vpop.eup %3095  ;;  %v1872_v43 = vmul.f32 %v3094_v13, %v1870_v37  ;;  %v4942_v37 = vld [vmem:[#allocation5 + $0x1b4] ss:$24 sps:$4 sm:$0xff]   ;;  %v4947_v13 = vld [vmem:[#allocation5 + $0x1b0] ss:$24 sps:$4 sm:$0xff]  }
 0x65c   :  { %v1873_v5 = vmul.f32 %v3096_v24, %v1871_v46  ;;  %v4950_v46 = vld [vmem:[#allocation5 + $0x1e4] ss:$24 sps:$4 sm:$0xff]   ;;  %v4955_v24 = vld [vmem:[#allocation5 + $0x1e0] ss:$24 sps:$4 sm:$0xff]  }
 0x65d   :  { %v4859_v14 = vadd.f32 %v1874_v22, %v1872_v43  ;;  %v4997_v43 = vld [vmem:[#allocation5 + $0x9c] ss:$24 sps:$4 sm:$0xff]   ;;  %v5000_v22 = vld [vmem:[#allocation5 + $0x98] ss:$24 sps:$4 sm:$0xff]  }
 0x65e   :  { %v4861_v57 = vadd.f32 %v1875_v26, %v1873_v5  ;;  %5710 = vst [vmem:[#allocation27_spill] sm:$0xff] %v4997_v43  ;;  %5711 = vst [vmem:[#allocation46_spill] sm:$0xff] %v5000_v22  ;;  %v5003_v5 = vld [vmem:[#allocation5 + $0xcc] ss:$24 sps:$4 sm:$0xff]   ;;  %v5006_v26 = vld [vmem:[#allocation5 + $0xc8] ss:$24 sps:$4 sm:$0xff]  }
 0x65f   :  { %1879 = vst [vmem:[#allocation8 + $0x40] sm:$0xff] %v4859_v14  ;;  %v4869_v32 = vpack.c.bf16 %v4859_v14, %v4859_v14  ;;  %5712 = vst [vmem:[#allocation47_spill] sm:$0xff] %v5003_v5 }
 0x660   :  { %1880 = vst [vmem:[#allocation8 + $0x48] sm:$0xff] %v4861_v57  ;;  %v1882_v60 = vpack.c.bf16 %v4861_v57, %v4861_v57  ;;  %5713 = vst [vmem:[#allocation29_spill] sm:$0xff] %v5006_v26 }
 0x662   :  { %1915 = vmatprep.mubr.bf16.mxu0 %v1882_v60  ;;  %1956 = vmatprep.mubr.bf16.mxu1 %v1882_v60 }
 0x663   :  { %1916 = vmatmul.mubr.bf16.vlgmr.msra.gmra.mrb[60].mxu0 %v4869_v32  ;;  %1957 = vmatmul.mubr.bf16.vlgmr.msra.gmra.mrb[48].mxu1 %v4869_v32 }
 0x664   :  { %1966 = vmatpush1.bf16.msra.mxu0 %v4384_v33  ;;  %1997 = vmatprep.mubr.bf16.mxu0 %v1882_v60  ;;  %v4886_v33 = vld [vmem:[#allocation5 + $0x64] ss:$24 sps:$4 sm:$0xff]  }
 0x665   :  { %1967 = vmatprep.subr.bf16.mxu0 %v4387_v53  ;;  %2056 = vmatpush1.bf16.msra.mxu1 %v4875_v17  ;;  %v4891_v53 = vld [vmem:[#allocation5 + $0x60] ss:$24 sps:$4 sm:$0xff]   ;;  %v5009_v60 = vld [vmem:[#allocation5 + $0xfc] ss:$24 sps:$4 sm:$0xff]  }
 0x666   :  { %2057 = vmatprep.subr.bf16.mxu1 %v4878_v12  ;;  %5714 = vst [vmem:[#allocation22_spill] sm:$0xff] %v5009_v60 }
 0x668   :  { %1968 = vmatpush1.bf16.msra.mxu0 %v4392_v34  ;;  %v4899_v34 = vld [vmem:[#allocation5 + $0x90] ss:$24 sps:$4 sm:$0xff]  }
 0x669   :  { %1969 = vmatprep.subr.bf16.mxu0 %v4395_v50  ;;  %2058 = vmatpush1.bf16.msra.mxu1 %v4883_v9  ;;  %v4902_v50 = vld [vmem:[#allocation5 + $0xc4] ss:$24 sps:$4 sm:$0xff]  }
 0x66a   :  { %2059 = vmatprep.subr.bf16.mxu1 %v4886_v33 }
 0x66c   :  { %1970 = vmatpush1.bf16.msra.mxu0 %v4400_v48  ;;  %v4907_v48 = vld [vmem:[#allocation5 + $0xc0] ss:$24 sps:$4 sm:$0xff]  }
 0x66d   :  { %1971 = vmatprep.subr.bf16.mxu0 %v4403_v4  ;;  %2060 = vmatpush1.bf16.msra.mxu1 %v4891_v53  ;;  %v4910_v4 = vld [vmem:[#allocation5 + $0xf4] ss:$24 sps:$4 sm:$0xff]  }
 0x66e   :  { %2061 = vmatprep.subr.bf16.mxu1 %v4894_v7 }
 0x670   :  { %1972 = vmatpush1.bf16.msra.mxu0 %v4593_v1 }
 0x671   :  { %1973 = vmatprep.subr.bf16.mxu0 %v4596_v54  ;;  %2062 = vmatpush1.bf16.msra.mxu1 %v4899_v34 }
 0x672   :  { %2063 = vmatprep.subr.bf16.mxu1 %v4902_v50 }
 0x674   :  { %1974 = vmatpush1.bf16.msra.mxu0 %v4601_v58 }
 0x675   :  { %1975 = vmatprep.subr.bf16.mxu0 %v4604_v20  ;;  %2064 = vmatpush1.bf16.msra.mxu1 %v4907_v48 }
 0x676   :  { %2065 = vmatprep.subr.bf16.mxu1 %v4910_v4 }
 0x678   :  { %1976 = vmatpush1.bf16.msra.mxu0 %v4609_v18 }
 0x679   :  { %1977 = vmatprep.subr.bf16.mxu0 %v4612_v59  ;;  %2066 = vmatpush1.bf16.msra.mxu1 %v4915_v16 }
 0x67a   :  { %2067 = vmatprep.subr.bf16.mxu1 %v4918_v6 }
 0x67c   :  { %1978 = vmatpush1.bf16.msra.mxu0 %v4617_v52 }
 0x67d   :  { %1979 = vmatprep.subr.bf16.mxu0 %v4620_v2  ;;  %2068 = vmatpush1.bf16.msra.mxu1 %v4923_v44 }
 0x67e   :  { %2069 = vmatprep.subr.bf16.mxu1 %v4926_v11 }
 0x680   :  { %1980 = vmatpush1.bf16.msra.mxu0 %v4625_v0 }
 0x681   :  { %1981 = vmatprep.subr.bf16.mxu0 %v4628_v56  ;;  %2070 = vmatpush1.bf16.msra.mxu1 %v4931_v63 }
 0x682   :  { %2071 = vmatprep.subr.bf16.mxu1 %v4934_v36 }
 0x684   :  { %1982 = vmatpush1.bf16.msra.mxu0 %v4633_v62 }
 0x685   :  { %1983 = vmatprep.subr.bf16.mxu0 %v4636_v61  ;;  %2072 = vmatpush1.bf16.msra.mxu1 %v4939_v39 }
 0x686   :  { %2073 = vmatprep.subr.bf16.mxu1 %v4942_v37 }
 0x688   :  { %1984 = vmatpush1.bf16.msra.mxu0 %v4641_v55 }
 0x689   :  { %1985 = vmatprep.subr.bf16.mxu0 %v4644_v38  ;;  %2074 = vmatpush1.bf16.msra.mxu1 %v4947_v13 }
 0x68a   :  { %2075 = vmatprep.subr.bf16.mxu1 %v4950_v46 }
 0x68c   :  { %1986 = vmatpush1.bf16.msra.mxu0 %v5639_v10 }
 0x68d   :  { %1987 = vmatprep.subr.bf16.mxu0 %v5640_v47  ;;  %2076 = vmatpush1.bf16.msra.mxu1 %v4955_v24 }
 0x68e   :  { %2077 = vmatprep.subr.bf16.mxu1 %v5642_v19  ;;  %v5701_v19 = vld [vmem:[#allocation101_spill] sm:$0xff] }
 0x690   :  { %1988 = vmatpush1.bf16.msra.mxu0 %v5643_v41 }
 0x691   :  { %1989 = vmatprep.subr.bf16.mxu0 %v5644_v45  ;;  %2078 = vmatpush1.bf16.msra.mxu1 %v5645_v49  ;;  %v4976_v49 = vld [vmem:[#allocation5 + $0xc] ss:$24 sps:$4 sm:$0xff]  }
 0x692   :  { %2079 = vmatprep.subr.bf16.mxu1 %v5646_v29  ;;  %5702 = vst [vmem:[#allocation50_spill] sm:$0xff] %v4976_v49  ;;  %v5703_v29 = vld [vmem:[#allocation40_spill] sm:$0xff] }
 0x694   :  { %1990 = vmatpush1.bf16.msra.mxu0 %v5647_v40 }
 0x695   :  { %1991 = vmatprep.subr.bf16.mxu0 %v5648_v51  ;;  %2080 = vmatpush1.bf16.msra.mxu1 %v5649_v35  ;;  %v5704_v35 = vld [vmem:[#allocation43_spill] sm:$0xff] }
 0x696   :  { %2081 = vmatprep.subr.bf16.mxu1 %v5650_v8  ;;  %v4982_v8 = vld [vmem:[#allocation5 + $0x8] ss:$24 sps:$4 sm:$0xff]  }
 0x697   :  { %5705 = vst [vmem:[#allocation51_spill] sm:$0xff] %v4982_v8 }
 0x698   :  { %1992 = vmatpush1.bf16.msra.mxu0 %v5651_v42 }
 0x699   :  { %1993 = vmatprep.subr.bf16.mxu0 %v5652_v30  ;;  %2082 = vmatpush1.bf16.msra.mxu1 %v5653_v25  ;;  %v4985_v25 = vld [vmem:[#allocation5 + $0x3c] ss:$24 sps:$4 sm:$0xff]  }
 0x69a   :  { %2083 = vmatprep.subr.bf16.mxu1 %v5654_v23  ;;  %5706 = vst [vmem:[#allocation52_spill] sm:$0xff] %v4985_v25  ;;  %v4988_v23 = vld [vmem:[#allocation5 + $0x38] ss:$24 sps:$4 sm:$0xff]  }
 0x69b   :  { %5707 = vst [vmem:[#allocation53_spill] sm:$0xff] %v4988_v23 }
 0x69c   :  { %1994 = vmatpush1.bf16.msra.mxu0 %v5655_v31 }
 0x69d   :  { %1995 = vmatprep.subr.bf16.mxu0 %v5656_v15  ;;  %2084 = vmatpush1.bf16.msra.mxu1 %v5657_v3  ;;  %v4991_v3 = vld [vmem:[#allocation5 + $0x6c] ss:$24 sps:$4 sm:$0xff]   ;;  %v5739_v15 = vld [vmem:[#allocation61_spill] sm:$0xff] }
 0x69e   :  { %2085 = vmatprep.subr.bf16.mxu1 %v5658_v21  ;;  %5708 = vst [vmem:[#allocation74_spill] sm:$0xff] %v4991_v3  ;;  %v4994_v21 = vld [vmem:[#allocation5 + $0x68] ss:$24 sps:$4 sm:$0xff]  }
 0x69f   :  { %5709 = vst [vmem:[#allocation75_spill] sm:$0xff] %v4994_v21 }
 0x6a0   :  { %1996 = vmatpush1.bf16.msra.mxu0 %v5701_v19  ;;  %v5738_v19 = vld [vmem:[#allocation60_spill] sm:$0xff] }
 0x6a1   :  { %2096 = vmatprep.subr.bf16.mxu0 %v4976_v49  ;;  %2086 = vmatpush1.bf16.msra.mxu1 %v5703_v29  ;;  %v5716_v29 = vld [vmem:[#allocation45_spill] sm:$0xff] }
 0x6a2   :  { %2137 = vmatprep.subr.bf16.mxu1 %v5704_v35  ;;  %v5717_v35 = vld [vmem:[#allocation44_spill] sm:$0xff] }
 0x6a3   :  { %1998 = vmatmul.mubr.bf16.vlgmr.msra.gmra.mrb[64].mxu0 %v4869_v32  ;;  %v5715_v32 = vld [vmem:[#allocation16_spill] sm:$0xff] }
 0x6a4   :  { %2097 = vmatpush1.bf16.msra.mxu0 %v4982_v8  ;;  %v5737_v8 = vld [vmem:[#allocation59_spill] sm:$0xff] }
 0x6a5   :  { %2098 = vmatprep.subr.bf16.mxu0 %v4985_v25  ;;  %v5736_v25 = vld [vmem:[#allocation58_spill] sm:$0xff] }
 0x6a8   :  { %2099 = vmatpush1.bf16.msra.mxu0 %v4988_v23  ;;  %v5724_v23 = vld [vmem:[#allocation19_spill] sm:$0xff] }
 0x6a9   :  { %2100 = vmatprep.subr.bf16.mxu0 %v4991_v3  ;;  %v5722_v3 = vld [vmem:[#allocation17_spill] sm:$0xff] }
 0x6ac   :  { %2101 = vmatpush1.bf16.msra.mxu0 %v4994_v21  ;;  %v5720_v21 = vld [vmem:[#allocation35_spill] sm:$0xff] }
 0x6ad   :  { %2102 = vmatprep.subr.bf16.mxu0 %v4997_v43  ;;  %v5718_v43 = vld [vmem:[#allocation70_spill] sm:$0xff] }
 0x6b0   :  { %2103 = vmatpush1.bf16.msra.mxu0 %v5000_v22  ;;  %v5719_v22 = vld [vmem:[#allocation71_spill] sm:$0xff] }
 0x6b1   :  { %2104 = vmatprep.subr.bf16.mxu0 %v5003_v5  ;;  %v5721_v5 = vld [vmem:[#allocation15_spill] sm:$0xff] }
 0x6b4   :  { %2105 = vmatpush1.bf16.msra.mxu0 %v5006_v26  ;;  %v5723_v26 = vld [vmem:[#allocation18_spill] sm:$0xff] }
 0x6b5   :  { %2106 = vmatprep.subr.bf16.mxu0 %v5009_v60  ;;  %v5725_v60 = vld [vmem:[#allocation21_spill] sm:$0xff] }
 0x6b8   :  { %2107 = vmatpush1.bf16.msra.mxu0 %v5715_v32  ;;  %v5726_v32 = vld [vmem:[#allocation23_spill] sm:$0xff] }
 0x6b9   :  { %2108 = vmatprep.subr.bf16.mxu0 %v5716_v29  ;;  %v5727_v29 = vld [vmem:[#allocation25_spill] sm:$0xff] }
 0x6bc   :  { %2109 = vmatpush1.bf16.msra.mxu0 %v5717_v35  ;;  %v5728_v35 = vld [vmem:[#allocation89_spill] sm:$0xff] }
 0x6bd   :  { %2110 = vmatprep.subr.bf16.mxu0 %v5718_v43  ;;  %v5729_v43 = vld [vmem:[#allocation90_spill] sm:$0xff] }
 0x6c0   :  { %2111 = vmatpush1.bf16.msra.mxu0 %v5719_v22  ;;  %v5730_v22 = vld [vmem:[#allocation91_spill] sm:$0xff] }
 0x6c1   :  { %2112 = vmatprep.subr.bf16.mxu0 %v5720_v21  ;;  %v5731_v21 = vld [vmem:[#allocation92_spill] sm:$0xff] }
 0x6c4   :  { %2113 = vmatpush1.bf16.msra.mxu0 %v5721_v5  ;;  %v5732_v5 = vld [vmem:[#allocation93_spill] sm:$0xff] }
 0x6c5   :  { %2114 = vmatprep.subr.bf16.mxu0 %v5722_v3  ;;  %v5733_v3 = vld [vmem:[#allocation94_spill] sm:$0xff] }
 0x6c8   :  { %2115 = vmatpush1.bf16.msra.mxu0 %v5723_v26  ;;  %v5734_v26 = vld [vmem:[#allocation95_spill] sm:$0xff] }
 0x6c9   :  { %2116 = vmatprep.subr.bf16.mxu0 %v5724_v23  ;;  %v5735_v23 = vld [vmem:[#allocation96_spill] sm:$0xff] }
 0x6cc   :  { %2117 = vmatpush1.bf16.msra.mxu0 %v5725_v60  ;;  %v3287_v60 = vld [vmem:[#allocation5 + $0x4] ss:$24 sps:$4 sm:$0xff]  }
 0x6cd   :  { %2118 = vmatprep.subr.bf16.mxu0 %v5726_v32 }
 0x6d0   :  { %2119 = vmatpush1.bf16.msra.mxu0 %v5727_v29 }
 0x6d1   :  { %2120 = vmatprep.subr.bf16.mxu0 %v5728_v35 }
 0x6d4   :  { %2121 = vmatpush1.bf16.msra.mxu0 %v5729_v43 }
 0x6d5   :  { %2122 = vmatprep.subr.bf16.mxu0 %v5730_v22 }
 0x6d8   :  { %2123 = vmatpush1.bf16.msra.mxu0 %v5731_v21 }
 0x6d9   :  { %2124 = vmatprep.subr.bf16.mxu0 %v5732_v5 }
 0x6dc   :  { %2125 = vmatpush1.bf16.msra.mxu0 %v5733_v3 }
 0x6dd   :  { %2126 = vmatprep.subr.bf16.mxu0 %v5734_v26 }
 0x6e0   :  { %2127 = vmatpush1.bf16.msra.mxu0 %v5735_v23 }
 0x6e1   :  { %2227 = vmatprep.subr.bf16.mxu0 %v3287_v60 }
 0x736   :  { %v1917_v32 = vpop.f32.mrb[60].mxu0  ;;  %v1958_v29 = vpop.f32.mrb[48].mxu1 }
 0x737   :  { %v2006_v35 = vadd.f32 %v1917_v32, %v5736_v25  ;;  %v2008_v43 = vadd.f32 %v1958_v29, %v5737_v8  ;;  %v1919_v49 = vpop.f32.mrb[61].mxu0  ;;  %v1960_v22 = vpop.f32.mrb[49].mxu1 }
 0x738   :  { %v2007_v21 = vadd.f32 %v1919_v49, %v5738_v19  ;;  %v2009_v5 = vadd.f32 %v1960_v22, %v5739_v15  ;;  %v1921_v31 = vpop.f32.mrb[62].mxu0  ;;  %v1962_v3 = vpop.f32.mrb[50].mxu1 }
 0x739   :  { %v1922_v30 = vpop.f32.mrb[63].mxu0  ;;  %v1963_v26 = vpop.f32.mrb[51].mxu1  ;;  %v2752_v42 = vmul.f32 -1.442695, %v2006_v35  ;;  %v2754_v60 = vmul.f32 -1.442695, %v2008_v43 }
 0x73a   :  { %v2753_v23 = vmul.f32 -1.442695, %v2007_v21  ;;  %v2755_v51 = vmul.f32 -1.442695, %v2009_v5  ;;  %v5740_v3 = vld [vmem:[#allocation78_spill] sm:$0xff] }
 0x73b   :  { %3097 = vpow2.f32 %v2752_v42 }
 0x73c   :  { %3099 = vpow2.f32 %v2753_v23  ;;  %v5741_v23 = vld [vmem:[#allocation79_spill] sm:$0xff] }
 0x73d   :  { %3101 = vpow2.f32 %v2754_v60 }
 0x73e   :  { %3103 = vpow2.f32 %v2755_v51 }
 0x745   :  { %v3098_v40 = vpop.eup %3097 }
 0x746   :  { %v3100_v25 = vpop.eup %3099  ;;  %v2022_v8 = vadd.f32 1.0, %v3098_v40 }
 0x747   :  { %v2023_v32 = vadd.f32 1.0, %v3100_v25  ;;  %v3102_v19 = vpop.eup %3101 }
 0x748   :  { %3105 = vrcp.f32 %v2022_v8  ;;  %v3104_v15 = vpop.eup %3103  ;;  %v2024_v31 = vadd.f32 1.0, %v3102_v19 }
 0x749   :  { %3107 = vrcp.f32 %v2023_v32  ;;  %v2025_v49 = vadd.f32 1.0, %v3104_v15 }
 0x74a   :  { %3109 = vrcp.f32 %v2024_v31 }
 0x74b   :  { %3111 = vrcp.f32 %v2025_v49 }
 0x752   :  { %v3106_v42 = vpop.eup %3105 }
 0x753   :  { %v3108_v21 = vpop.eup %3107 }
 0x754   :  { %v3110_v25 = vpop.eup %3109 }
 0x755   :  { %v3112_v8 = vpop.eup %3111  ;;  %v2042_v32 = vsub.f32 1.0, %v3110_v25 }
 0x756   :  { %v2043_v15 = vsub.f32 1.0, %v3112_v8 }
 0x776   :  { %v1999_v30 = vpop.f32.mrb[64].mxu0 }
 0x777   :  { %v2034_v29 = vadd.f32 %v1999_v30, %v4171_v27  ;;  %v2001_v35 = vpop.f32.mrb[65].mxu0 }
 0x778   :  { %v2035_v43 = vadd.f32 %v2001_v35, %v4175_v28  ;;  %v2003_v22 = vpop.f32.mrb[66].mxu0 }
 0x779   :  { %v2036_v5 = vmul.f32 %v3106_v42, %v2034_v29  ;;  %v2004_v51 = vpop.f32.mrb[67].mxu0  ;;  %v2046_v22 = vmul.f32 %v3110_v25, %v4859_v14  ;;  %v2047_v29 = vmul.f32 %v3112_v8, %v4861_v57  ;;  %v5057_v14 = vld [vmem:[#allocation5 + $0x10] ss:$24 sps:$4 sm:$0xff]   ;;  %v5060_v57 = vld [vmem:[#allocation5 + $0x44] ss:$24 sps:$4 sm:$0xff]  }
 0x77a   :  { %v2037_v40 = vmul.f32 %v3108_v21, %v2035_v43  ;;  %v5068_v51 = vld [vmem:[#allocation5 + $0x74] ss:$24 sps:$4 sm:$0xff]   ;;  %v3319_v8 = vld [vmem:[#allocation5 + $0x248] ss:$24 sps:$4 sm:$0xff]  }
 0x77b   :  { %v2038_v26 = vadd.f32 %v2036_v5, %v5740_v3  ;;  %v5065_v5 = vld [vmem:[#allocation5 + $0x40] ss:$24 sps:$4 sm:$0xff]   ;;  %v5076_v3 = vld [vmem:[#allocation5 + $0xa4] ss:$24 sps:$4 sm:$0xff]  }
 0x77c   :  { %v2039_v60 = vadd.f32 %v2037_v40, %v5741_v23  ;;  %v5073_v40 = vld [vmem:[#allocation5 + $0x70] ss:$24 sps:$4 sm:$0xff]   ;;  %v3316_v23 = vld [vmem:[#allocation5 + $0x21c] ss:$24 sps:$4 sm:$0xff]   ;;  %v3318_v25 = vld [vmem:[#allocation5 + $0x24c] ss:$24 sps:$4 sm:$0xff]  }
 0x77d   :  { %3113 = vtanh.f32 %v2038_v26  ;;  %v3315_v26 = vld [vmem:[#allocation5 + $0x1e8] ss:$24 sps:$4 sm:$0xff]  }
 0x77e   :  { %3115 = vtanh.f32 %v2039_v60  ;;  %v3317_v60 = vld [vmem:[#allocation5 + $0x218] ss:$24 sps:$4 sm:$0xff]  }
 0x787   :  { %v3114_v19 = vpop.eup %3113 }
 0x788   :  { %v3116_v30 = vpop.eup %3115  ;;  %v2044_v35 = vmul.f32 %v3114_v19, %v2042_v32  ;;  %v3320_v32 = vld [vmem:[#allocation5 + $0x27c] ss:$24 sps:$4 sm:$0xff]   ;;  %v3321_v19 = vld [vmem:[#allocation5 + $0x278] ss:$24 sps:$4 sm:$0xff]  }
 0x789   :  { %v2045_v31 = vmul.f32 %v3116_v30, %v2043_v15  ;;  %v3322_v15 = vld [vmem:[#allocation5 + $0x2ac] ss:$24 sps:$4 sm:$0xff]   ;;  %v3323_v30 = vld [vmem:[#allocation5 + $0x2a8] ss:$24 sps:$4 sm:$0xff]  }
 0x78a   :  { %v5043_v49 = vadd.f32 %v2046_v22, %v2044_v35  ;;  %v3324_v35 = vld [vmem:[#allocation5 + $0x2dc] ss:$24 sps:$4 sm:$0xff]   ;;  %v3325_v22 = vld [vmem:[#allocation5 + $0x2d8] ss:$24 sps:$4 sm:$0xff]  }
 0x78b   :  { %v5045_v42 = vadd.f32 %v2047_v29, %v2045_v31 }
 0x78c   :  { %2051 = vst [vmem:[#allocation8 + $0x50] sm:$0xff] %v5043_v49  ;;  %v5053_v21 = vpack.c.bf16 %v5043_v49, %v5043_v49 }
 0x78d   :  { %2052 = vst [vmem:[#allocation8 + $0x58] sm:$0xff] %v5045_v42  ;;  %v2054_v43 = vpack.c.bf16 %v5045_v42, %v5045_v42 }
 0x78f   :  { %2087 = vmatprep.mubr.bf16.mxu1 %v2054_v43  ;;  %2128 = vmatprep.mubr.bf16.mxu0 %v2054_v43 }
 0x790   :  { %2088 = vmatmul.mubr.bf16.vlgmr.msra.gmra.mrb[52].mxu1 %v5053_v21  ;;  %2129 = vmatmul.mubr.bf16.vlgmr.msra.gmra.mrb[68].mxu0 %v5053_v21 }
 0x791   :  { %2138 = vmatpush1.bf16.msra.mxu1 %v5057_v14  ;;  %2169 = vmatprep.mubr.bf16.mxu1 %v2054_v43  ;;  %v5760_v43 = vld [vmem:[#allocation62_spill] sm:$0xff] }
 0x792   :  { %2139 = vmatprep.subr.bf16.mxu1 %v5060_v57  ;;  %2228 = vmatpush1.bf16.msra.mxu0 %v4875_v17  ;;  %v3304_v17 = vld [vmem:[#allocation5 + $0x14] ss:$24 sps:$4 sm:$0xff]  }
 0x793   :  { %2229 = vmatprep.subr.bf16.mxu0 %v4878_v12  ;;  %v5750_v12 = vld [vmem:[#allocation51_spill] sm:$0xff] }
 0x795   :  { %2140 = vmatpush1.bf16.msra.mxu1 %v5065_v5 }
 0x796   :  { %2141 = vmatprep.subr.bf16.mxu1 %v5068_v51  ;;  %2230 = vmatpush1.bf16.msra.mxu0 %v4883_v9  ;;  %v5751_v9 = vld [vmem:[#allocation52_spill] sm:$0xff] }
 0x797   :  { %2231 = vmatprep.subr.bf16.mxu0 %v4886_v33  ;;  %v5752_v33 = vld [vmem:[#allocation53_spill] sm:$0xff] }
 0x799   :  { %2142 = vmatpush1.bf16.msra.mxu1 %v5073_v40 }
 0x79a   :  { %2143 = vmatprep.subr.bf16.mxu1 %v5076_v3  ;;  %2232 = vmatpush1.bf16.msra.mxu0 %v4891_v53  ;;  %v5753_v53 = vld [vmem:[#allocation74_spill] sm:$0xff] }
 0x79b   :  { %2233 = vmatprep.subr.bf16.mxu0 %v4894_v7  ;;  %v5754_v7 = vld [vmem:[#allocation75_spill] sm:$0xff] }
 0x79d   :  { %2144 = vmatpush1.bf16.msra.mxu1 %v4593_v1  ;;  %v3294_v1 = vld [vmem:[#allocation5 + $0x214] ss:$24 sps:$4 sm:$0xff]  }
 0x79e   :  { %2145 = vmatprep.subr.bf16.mxu1 %v4596_v54  ;;  %2234 = vmatpush1.bf16.msra.mxu0 %v4899_v34  ;;  %v3295_v54 = vld [vmem:[#allocation5 + $0x210] ss:$24 sps:$4 sm:$0xff]  }
 0x79f   :  { %2235 = vmatprep.subr.bf16.mxu0 %v4902_v50  ;;  %v5755_v34 = vld [vmem:[#allocation27_spill] sm:$0xff]  ;;  %v5756_v50 = vld [vmem:[#allocation46_spill] sm:$0xff] }
 0x7a1   :  { %2146 = vmatpush1.bf16.msra.mxu1 %v4601_v58  ;;  %v3296_v58 = vld [vmem:[#allocation5 + $0x244] ss:$24 sps:$4 sm:$0xff]  }
 0x7a2   :  { %2147 = vmatprep.subr.bf16.mxu1 %v4604_v20  ;;  %2236 = vmatpush1.bf16.msra.mxu0 %v4907_v48  ;;  %v5742_v20 = vld [vmem:[#allocation72_spill] sm:$0xff]  ;;  %v5757_v48 = vld [vmem:[#allocation47_spill] sm:$0xff] }
 0x7a3   :  { %2237 = vmatprep.subr.bf16.mxu0 %v4910_v4  ;;  %v5758_v4 = vld [vmem:[#allocation29_spill] sm:$0xff] }
 0x7a5   :  { %2148 = vmatpush1.bf16.msra.mxu1 %v4609_v18  ;;  %v5743_v18 = vld [vmem:[#allocation73_spill] sm:$0xff] }
 0x7a6   :  { %2149 = vmatprep.subr.bf16.mxu1 %v4612_v59  ;;  %2238 = vmatpush1.bf16.msra.mxu0 %v4915_v16  ;;  %v3297_v59 = vld [vmem:[#allocation5 + $0x240] ss:$24 sps:$4 sm:$0xff]  }
 0x7a7   :  { %2239 = vmatprep.subr.bf16.mxu0 %v4918_v6  ;;  %v5759_v16 = vld [vmem:[#allocation22_spill] sm:$0xff]  ;;  %v3305_v6 = vld [vmem:[#allocation5 + $0xf8] ss:$24 sps:$4 sm:$0xff]  }
 0x7a9   :  { %2150 = vmatpush1.bf16.msra.mxu1 %v4617_v52  ;;  %v3298_v52 = vld [vmem:[#allocation5 + $0x274] ss:$24 sps:$4 sm:$0xff]  }
 0x7aa   :  { %2151 = vmatprep.subr.bf16.mxu1 %v4620_v2  ;;  %2240 = vmatpush1.bf16.msra.mxu0 %v4923_v44  ;;  %v5744_v2 = vld [vmem:[#allocation97_spill] sm:$0xff]  ;;  %v3306_v44 = vld [vmem:[#allocation5 + $0x12c] ss:$24 sps:$4 sm:$0xff]  }
 0x7ab   :  { %2241 = vmatprep.subr.bf16.mxu0 %v4926_v11  ;;  %v3307_v11 = vld [vmem:[#allocation5 + $0x128] ss:$24 sps:$4 sm:$0xff]  }
 0x7ad   :  { %2152 = vmatpush1.bf16.msra.mxu1 %v4625_v0  ;;  %v5745_v0 = vld [vmem:[#allocation98_spill] sm:$0xff] }
 0x7ae   :  { %2153 = vmatprep.subr.bf16.mxu1 %v4628_v56  ;;  %2242 = vmatpush1.bf16.msra.mxu0 %v4931_v63  ;;  %v3299_v56 = vld [vmem:[#allocation5 + $0x270] ss:$24 sps:$4 sm:$0xff]   ;;  %v3308_v63 = vld [vmem:[#allocation5 + $0x15c] ss:$24 sps:$4 sm:$0xff]  }
 0x7af   :  { %2243 = vmatprep.subr.bf16.mxu0 %v4934_v36  ;;  %v3309_v36 = vld [vmem:[#allocation5 + $0x158] ss:$24 sps:$4 sm:$0xff]  }
 0x7b1   :  { %2154 = vmatpush1.bf16.msra.mxu1 %v4633_v62  ;;  %v3300_v62 = vld [vmem:[#allocation5 + $0x2a4] ss:$24 sps:$4 sm:$0xff]  }
 0x7b2   :  { %2155 = vmatprep.subr.bf16.mxu1 %v4636_v61  ;;  %2244 = vmatpush1.bf16.msra.mxu0 %v4939_v39  ;;  %v5746_v61 = vld [vmem:[#allocation99_spill] sm:$0xff] }
 0x7b3   :  { %2245 = vmatprep.subr.bf16.mxu0 %v4942_v37  ;;  %v3310_v39 = vld [vmem:[#allocation5 + $0x18c] ss:$24 sps:$4 sm:$0xff]   ;;  %v3311_v37 = vld [vmem:[#allocation5 + $0x188] ss:$24 sps:$4 sm:$0xff]  }
 0x7b5   :  { %2156 = vmatpush1.bf16.msra.mxu1 %v4641_v55  ;;  %v5747_v55 = vld [vmem:[#allocation100_spill] sm:$0xff] }
 0x7b6   :  { %2157 = vmatprep.subr.bf16.mxu1 %v4644_v38  ;;  %2246 = vmatpush1.bf16.msra.mxu0 %v4947_v13  ;;  %v3301_v38 = vld [vmem:[#allocation5 + $0x2a0] ss:$24 sps:$4 sm:$0xff]   ;;  %v3312_v13 = vld [vmem:[#allocation5 + $0x1bc] ss:$24 sps:$4 sm:$0xff]  }
 0x7b7   :  { %2247 = vmatprep.subr.bf16.mxu0 %v4950_v46  ;;  %v3313_v46 = vld [vmem:[#allocation5 + $0x1b8] ss:$24 sps:$4 sm:$0xff]  }
 0x7b9   :  { %2158 = vmatpush1.bf16.msra.mxu1 %v5639_v10  ;;  %v3302_v10 = vld [vmem:[#allocation5 + $0x2d4] ss:$24 sps:$4 sm:$0xff]  }
 0x7ba   :  { %2159 = vmatprep.subr.bf16.mxu1 %v5640_v47  ;;  %2248 = vmatpush1.bf16.msra.mxu0 %v4955_v24  ;;  %v5748_v47 = vld [vmem:[#allocation101_spill] sm:$0xff]  ;;  %v3314_v24 = vld [vmem:[#allocation5 + $0x1ec] ss:$24 sps:$4 sm:$0xff]  }
 0x7bb   :  { %2249 = vmatprep.subr.bf16.mxu0 %v3294_v1  ;;  %v5761_v1 = vld [vmem:[#allocation63_spill] sm:$0xff] }
 0x7bd   :  { %2160 = vmatpush1.bf16.msra.mxu1 %v5643_v41  ;;  %v5749_v41 = vld [vmem:[#allocation50_spill] sm:$0xff] }
 0x7be   :  { %2161 = vmatprep.subr.bf16.mxu1 %v5644_v45  ;;  %2250 = vmatpush1.bf16.msra.mxu0 %v3295_v54  ;;  %v3303_v45 = vld [vmem:[#allocation5 + $0x2d0] ss:$24 sps:$4 sm:$0xff]  }
 0x7bf   :  { %2251 = vmatprep.subr.bf16.mxu0 %v3296_v58 }
 0x7c1   :  { %2162 = vmatpush1.bf16.msra.mxu1 %v5742_v20 }
 0x7c2   :  { %2163 = vmatprep.subr.bf16.mxu1 %v5743_v18  ;;  %2252 = vmatpush1.bf16.msra.mxu0 %v3297_v59  ;;  %v5762_v18 = vld [vmem:[#allocation64_spill] sm:$0xff] }
 0x7c3   :  { %2253 = vmatprep.subr.bf16.mxu0 %v3298_v52  ;;  %v5763_v52 = vld [vmem:[#allocation65_spill] sm:$0xff] }
 0x7c5   :  { %2164 = vmatpush1.bf16.msra.mxu1 %v5744_v2 }
 0x7c6   :  { %2165 = vmatprep.subr.bf16.mxu1 %v5745_v0  ;;  %2254 = vmatpush1.bf16.msra.mxu0 %v3299_v56 }
 0x7c7   :  { %2255 = vmatprep.subr.bf16.mxu0 %v3300_v62 }
 0x7c9   :  { %2166 = vmatpush1.bf16.msra.mxu1 %v5746_v61 }
 0x7ca   :  { %2167 = vmatprep.subr.bf16.mxu1 %v5747_v55  ;;  %2256 = vmatpush1.bf16.msra.mxu0 %v3301_v38 }
 0x7cb   :  { %2257 = vmatprep.subr.bf16.mxu0 %v3302_v10 }
 0x7cd   :  { %2168 = vmatpush1.bf16.msra.mxu1 %v5748_v47 }
 0x7ce   :  { %2268 = vmatprep.subr.bf16.mxu1 %v5749_v41  ;;  %2258 = vmatpush1.bf16.msra.mxu0 %v3303_v45 }
 0x7cf   :  { %2309 = vmatprep.subr.bf16.mxu0 %v3304_v17 }
 0x7d0   :  { %2170 = vmatmul.mubr.bf16.vlgmr.msra.gmra.mrb[56].mxu1 %v5053_v21 }
 0x7d1   :  { %2269 = vmatpush1.bf16.msra.mxu1 %v5750_v12 }
 0x7d2   :  { %2270 = vmatprep.subr.bf16.mxu1 %v5751_v9 }
 0x7d5   :  { %2271 = vmatpush1.bf16.msra.mxu1 %v5752_v33 }
 0x7d6   :  { %2272 = vmatprep.subr.bf16.mxu1 %v5753_v53 }
 0x7d9   :  { %2273 = vmatpush1.bf16.msra.mxu1 %v5754_v7 }
 0x7da   :  { %2274 = vmatprep.subr.bf16.mxu1 %v5755_v34 }
 0x7dd   :  { %2275 = vmatpush1.bf16.msra.mxu1 %v5756_v50 }
 0x7de   :  { %2276 = vmatprep.subr.bf16.mxu1 %v5757_v48 }
 0x7e1   :  { %2277 = vmatpush1.bf16.msra.mxu1 %v5758_v4 }
 0x7e2   :  { %2278 = vmatprep.subr.bf16.mxu1 %v5759_v16 }
 0x7e5   :  { %2279 = vmatpush1.bf16.msra.mxu1 %v3305_v6 }
 0x7e6   :  { %2280 = vmatprep.subr.bf16.mxu1 %v3306_v44 }
 0x7e9   :  { %2281 = vmatpush1.bf16.msra.mxu1 %v3307_v11 }
 0x7ea   :  { %2282 = vmatprep.subr.bf16.mxu1 %v3308_v63 }
 0x7ed   :  { %2283 = vmatpush1.bf16.msra.mxu1 %v3309_v36 }
 0x7ee   :  { %2284 = vmatprep.subr.bf16.mxu1 %v3310_v39  ;;  %v5764_v39 = vld [vmem:[#allocation80_spill] sm:$0xff] }
 0x7f1   :  { %2285 = vmatpush1.bf16.msra.mxu1 %v3311_v37 }
 0x7f2   :  { %2286 = vmatprep.subr.bf16.mxu1 %v3312_v13  ;;  %v5765_v13 = vld [vmem:[#allocation81_spill] sm:$0xff] }
 0x7f5   :  { %2287 = vmatpush1.bf16.msra.mxu1 %v3313_v46 }
 0x7f6   :  { %2288 = vmatprep.subr.bf16.mxu1 %v3314_v24 }
 0x7f9   :  { %2289 = vmatpush1.bf16.msra.mxu1 %v3315_v26 }
 0x7fa   :  { %2290 = vmatprep.subr.bf16.mxu1 %v3316_v23 }
 0x7fd   :  { %2291 = vmatpush1.bf16.msra.mxu1 %v3317_v60 }
 0x7fe   :  { %2292 = vmatprep.subr.bf16.mxu1 %v3318_v25 }
 0x801   :  { %2293 = vmatpush1.bf16.msra.mxu1 %v3319_v8 }
 0x802   :  { %2294 = vmatprep.subr.bf16.mxu1 %v3320_v32 }
 0x805   :  { %2295 = vmatpush1.bf16.msra.mxu1 %v3321_v19 }
 0x806   :  { %2296 = vmatprep.subr.bf16.mxu1 %v3322_v15 }
 0x809   :  { %2297 = vmatpush1.bf16.msra.mxu1 %v3323_v30 }
 0x80a   :  { %2298 = vmatprep.subr.bf16.mxu1 %v3324_v35 }
 0x80d   :  { %2299 = vmatpush1.bf16.msra.mxu1 %v3325_v22 }
 0x863   :  { %v2089_v31 = vpop.f32.mrb[52].mxu1  ;;  %v2130_v29 = vpop.f32.mrb[68].mxu0 }
 0x864   :  { %v2178_v21 = vadd.f32 %v2089_v31, %v5760_v43  ;;  %v2180_v54 = vadd.f32 %v2130_v29, %v5761_v1  ;;  %v2091_v58 = vpop.f32.mrb[53].mxu1  ;;  %v2132_v20 = vpop.f32.mrb[69].mxu0  ;;  %v3328_v43 = vld [vmem:[#allocation5 + $0xd0] ss:$24 sps:$4 sm:$0xff]   ;;  %v3331_v1 = vld [vmem:[#allocation5 + $0x134] ss:$24 sps:$4 sm:$0xff]  }
 0x865   :  { %v2179_v59 = vadd.f32 %v2091_v58, %v5762_v18  ;;  %v2181_v2 = vadd.f32 %v2132_v20, %v5763_v52  ;;  %v2093_v0 = vpop.f32.mrb[54].mxu1  ;;  %v2134_v56 = vpop.f32.mrb[70].mxu0  ;;  %v3338_v58 = vld [vmem:[#allocation5 + $0x1c0] ss:$24 sps:$4 sm:$0xff]   ;;  %v3339_v20 = vld [vmem:[#allocation5 + $0x1f4] ss:$24 sps:$4 sm:$0xff]  }
 0x866   :  { %v2094_v62 = vpop.f32.mrb[55].mxu1  ;;  %v2135_v61 = vpop.f32.mrb[71].mxu0  ;;  %v2756_v55 = vmul.f32 -1.442695, %v2178_v21  ;;  %v2758_v10 = vmul.f32 -1.442695, %v2180_v54 }
 0x867   :  { %v2757_v38 = vmul.f32 -1.442695, %v2179_v59  ;;  %v2759_v47 = vmul.f32 -1.442695, %v2181_v2  ;;  %v3329_v21 = vld [vmem:[#allocation5 + $0x104] ss:$24 sps:$4 sm:$0xff]  }
 0x868   :  { %3117 = vpow2.f32 %v2756_v55  ;;  %v3337_v54 = vld [vmem:[#allocation5 + $0x1c4] ss:$24 sps:$4 sm:$0xff]   ;;  %v3340_v18 = vld [vmem:[#allocation5 + $0x1f0] ss:$24 sps:$4 sm:$0xff]   ;;  %v3342_v52 = vld [vmem:[#allocation5 + $0x220] ss:$24 sps:$4 sm:$0xff]  }
 0x869   :  { %3119 = vpow2.f32 %v2757_v38  ;;  %v3341_v59 = vld [vmem:[#allocation5 + $0x224] ss:$24 sps:$4 sm:$0xff]   ;;  %v3343_v2 = vld [vmem:[#allocation5 + $0x254] ss:$24 sps:$4 sm:$0xff]   ;;  %v3344_v0 = vld [vmem:[#allocation5 + $0x250] ss:$24 sps:$4 sm:$0xff]  }
 0x86a   :  { %3121 = vpow2.f32 %v2758_v10  ;;  %v3345_v56 = vld [vmem:[#allocation5 + $0x284] ss:$24 sps:$4 sm:$0xff]   ;;  %v3346_v62 = vld [vmem:[#allocation5 + $0x280] ss:$24 sps:$4 sm:$0xff]   ;;  %v3347_v61 = vld [vmem:[#allocation5 + $0x2b4] ss:$24 sps:$4 sm:$0xff]  }
 0x86b   :  { %3123 = vpow2.f32 %v2759_v47  ;;  %v3348_v55 = vld [vmem:[#allocation5 + $0x2b0] ss:$24 sps:$4 sm:$0xff]   ;;  %v3349_v38 = vld [vmem:[#allocation5 + $0x2e4] ss:$24 sps:$4 sm:$0xff]   ;;  %v3350_v10 = vld [vmem:[#allocation5 + $0x2e0] ss:$24 sps:$4 sm:$0xff]  }
 0x86c   :  { %v2981_v47 = vld [vmem:[#allocation7 + $0x40] sm:$0xff]  }
 0x86d   :  { %2781 = vmatprep.subr.bf16.mxu1 %v2981_v47 }
 0x872   :  { %v3118_v41 = vpop.eup %3117 }
 0x873   :  { %v3120_v45 = vpop.eup %3119  ;;  %v2194_v17 = vadd.f32 1.0, %v3118_v41  ;;  %v2982_v41 = vld [vmem:[#allocation7] sm:$0xff]  }
 0x874   :  { %v2195_v12 = vadd.f32 1.0, %v3120_v45  ;;  %v3122_v9 = vpop.eup %3121  ;;  %v2983_v45 = vld [vmem:[#allocation7 + $0x48] sm:$0xff]  }
 0x875   :  { %3125 = vrcp.f32 %v2194_v17  ;;  %v3124_v33 = vpop.eup %3123  ;;  %v2196_v53 = vadd.f32 1.0, %v3122_v9  ;;  %v2984_v17 = vld [vmem:[#allocation7 + $0x8] sm:$0xff]   ;;  %v2986_v9 = vld [vmem:[#allocation7 + $0x10] sm:$0xff]  }
 0x876   :  { %3127 = vrcp.f32 %v2195_v12  ;;  %v2197_v7 = vadd.f32 1.0, %v3124_v33  ;;  %v2985_v12 = vld [vmem:[#allocation7 + $0x50] sm:$0xff]   ;;  %v2987_v33 = vld [vmem:[#allocation7 + $0x58] sm:$0xff]  }
 0x877   :  { %3129 = vrcp.f32 %v2196_v53  ;;  %v2988_v53 = vld [vmem:[#allocation7 + $0x18] sm:$0xff]  }
 0x878   :  { %3131 = vrcp.f32 %v2197_v7  ;;  %v2989_v7 = vld [vmem:[#allocation7 + $0x60] sm:$0xff]  }
 0x87f   :  { %v3126_v4 = vpop.eup %3125 }
 0x880   :  { %v3128_v44 = vpop.eup %3127 }
 0x881   :  { %v3130_v24 = vpop.eup %3129 }
 0x882   :  { %v3132_v26 = vpop.eup %3131  ;;  %v2214_v23 = vsub.f32 1.0, %v3130_v24  ;;  %v2218_v19 = vmul.f32 %v3130_v24, %v5043_v49  ;;  %v3326_v49 = vld [vmem:[#allocation5 + $0xa0] ss:$24 sps:$4 sm:$0xff]  }
 0x883   :  { %v2215_v25 = vsub.f32 1.0, %v3132_v26  ;;  %v2219_v30 = vmul.f32 %v3132_v26, %v5045_v42  ;;  %v3327_v42 = vld [vmem:[#allocation5 + $0xd4] ss:$24 sps:$4 sm:$0xff]  }
 0x884   :  { %v5768_v26 = vld [vmem:[#allocation68_spill] sm:$0xff] }
 0x8a3   :  { %v2171_v34 = vpop.f32.mrb[56].mxu1 }
 0x8a4   :  { %v2206_v50 = vadd.f32 %v2171_v34, %v4171_v27  ;;  %v2173_v48 = vpop.f32.mrb[57].mxu1  ;;  %v2990_v34 = vld [vmem:[#allocation7 + $0x20] sm:$0xff]  }
 0x8a5   :  { %v2207_v16 = vadd.f32 %v2173_v48, %v4175_v28  ;;  %v2175_v6 = vpop.f32.mrb[58].mxu1  ;;  %v2992_v48 = vld [vmem:[#allocation7 + $0x28] sm:$0xff]  }
 0x8a6   :  { %v2208_v11 = vmul.f32 %v3126_v4, %v2206_v50  ;;  %v2176_v63 = vpop.f32.mrb[59].mxu1  ;;  %v2991_v50 = vld [vmem:[#allocation7 + $0x68] sm:$0xff]   ;;  %v2993_v4 = vld [vmem:[#allocation7 + $0x70] sm:$0xff]   ;;  %v2995_v6 = vld [vmem:[#allocation7 + $0x78] sm:$0xff]  }
 0x8a7   :  { %v2209_v36 = vmul.f32 %v3128_v44, %v2207_v16  ;;  %v2994_v16 = vld [vmem:[#allocation7 + $0x30] sm:$0xff]   ;;  %v2996_v44 = vld [vmem:[#allocation7 + $0x38] sm:$0xff]  }
 0x8a8   :  { %v2210_v37 = vadd.f32 %v2208_v11, %v5764_v39 }
 0x8a9   :  { %v2211_v46 = vadd.f32 %v2209_v36, %v5765_v13  ;;  %v5766_v36 = vld [vmem:[#allocation66_spill] sm:$0xff] }
 0x8aa   :  { %3133 = vtanh.f32 %v2210_v37  ;;  %v5767_v37 = vld [vmem:[#allocation67_spill] sm:$0xff] }
 0x8ab   :  { %3135 = vtanh.f32 %v2211_v46 }
 0x8b4   :  { %v3134_v60 = vpop.eup %3133 }
 0x8b5   :  { %v3136_v8 = vpop.eup %3135  ;;  %v2216_v32 = vmul.f32 %v3134_v60, %v2214_v23  ;;  %v5769_v60 = vld [vmem:[#allocation69_spill] sm:$0xff] }
 0x8b6   :  { %v2217_v15 = vmul.f32 %v3136_v8, %v2215_v25 }
 0x8b7   :  { %v5143_v35 = vadd.f32 %v2218_v19, %v2216_v32 }
 0x8b8   :  { %v5145_v22 = vadd.f32 %v2219_v30, %v2217_v15 }
 0x8b9   :  { %2223 = vst [vmem:[#allocation8 + $0x60] sm:$0xff] %v5143_v35  ;;  %v2225_v29 = vpack.c.bf16 %v5143_v35, %v5143_v35 }
 0x8ba   :  { %2224 = vst [vmem:[#allocation8 + $0x68] sm:$0xff] %v5145_v22  ;;  %v2226_v31 = vpack.c.bf16 %v5145_v22, %v5145_v22 }
 0x8bc   :  { %2259 = vmatprep.mubr.bf16.mxu0 %v2226_v31  ;;  %2300 = vmatprep.mubr.bf16.mxu1 %v2226_v31 }
 0x8bd   :  { %2260 = vmatmul.mubr.bf16.vlgmr.msra.gmra.mrb[72].mxu0 %v2225_v29  ;;  %2301 = vmatmul.mubr.bf16.vlgmr.msra.gmra.mrb[60].mxu1 %v2225_v29 }
 0x8be   :  { %2310 = vmatpush1.bf16.msra.mxu0 %v5057_v14  ;;  %2341 = vmatprep.mubr.bf16.mxu0 %v2226_v31  ;;  %v3330_v14 = vld [vmem:[#allocation5 + $0x100] ss:$24 sps:$4 sm:$0xff]  }
 0x8bf   :  { %2311 = vmatprep.subr.bf16.mxu0 %v5060_v57  ;;  %v3332_v57 = vld [vmem:[#allocation5 + $0x130] ss:$24 sps:$4 sm:$0xff]   ;;  %2782 = vmatpush3.bf16.msra.mxu1 %v2982_v41 }
 0x8c0   :  { %2783 = vmatprep.subr.bf16.mxu1 %v2983_v45 }
 0x8c2   :  { %2312 = vmatpush1.bf16.msra.mxu0 %v5065_v5  ;;  %v3333_v5 = vld [vmem:[#allocation5 + $0x164] ss:$24 sps:$4 sm:$0xff]  }
 0x8c3   :  { %2313 = vmatprep.subr.bf16.mxu0 %v5068_v51  ;;  %v3334_v51 = vld [vmem:[#allocation5 + $0x160] ss:$24 sps:$4 sm:$0xff]   ;;  %2784 = vmatpush3.bf16.msra.mxu1 %v2984_v17 }
 0x8c4   :  { %2785 = vmatprep.subr.bf16.mxu1 %v2985_v12 }
 0x8c6   :  { %2314 = vmatpush1.bf16.msra.mxu0 %v5073_v40  ;;  %v3335_v40 = vld [vmem:[#allocation5 + $0x194] ss:$24 sps:$4 sm:$0xff]  }
 0x8c7   :  { %2315 = vmatprep.subr.bf16.mxu0 %v5076_v3  ;;  %v3336_v3 = vld [vmem:[#allocation5 + $0x190] ss:$24 sps:$4 sm:$0xff]   ;;  %2786 = vmatpush3.bf16.msra.mxu1 %v2986_v9 }
 0x8c8   :  { %2787 = vmatprep.subr.bf16.mxu1 %v2987_v33 }
 0x8ca   :  { %2316 = vmatpush1.bf16.msra.mxu0 %v3326_v49 }
 0x8cb   :  { %2317 = vmatprep.subr.bf16.mxu0 %v3327_v42  ;;  %2788 = vmatpush3.bf16.msra.mxu1 %v2988_v53 }
 0x8cc   :  { %2789 = vmatprep.subr.bf16.mxu1 %v2989_v7 }
 0x8ce   :  { %2318 = vmatpush1.bf16.msra.mxu0 %v3328_v43 }
 0x8cf   :  { %2319 = vmatprep.subr.bf16.mxu0 %v3329_v21  ;;  %2790 = vmatpush3.bf16.msra.mxu1 %v2990_v34 }
 0x8d0   :  { %2791 = vmatprep.subr.bf16.mxu1 %v2991_v50 }
 0x8d2   :  { %2320 = vmatpush1.bf16.msra.mxu0 %v3330_v14 }
 0x8d3   :  { %2321 = vmatprep.subr.bf16.mxu0 %v3331_v1  ;;  %2792 = vmatpush3.bf16.msra.mxu1 %v2992_v48 }
 0x8d4   :  { %2793 = vmatprep.subr.bf16.mxu1 %v2993_v4 }
 0x8d6   :  { %2322 = vmatpush1.bf16.msra.mxu0 %v3332_v57 }
 0x8d7   :  { %2323 = vmatprep.subr.bf16.mxu0 %v3333_v5  ;;  %2794 = vmatpush3.bf16.msra.mxu1 %v2994_v16 }
 0x8d8   :  { %2795 = vmatprep.subr.bf16.mxu1 %v2995_v6 }
 0x8da   :  { %2324 = vmatpush1.bf16.msra.mxu0 %v3334_v51 }
 0x8db   :  { %2325 = vmatprep.subr.bf16.mxu0 %v3335_v40  ;;  %2796 = vmatpush3.bf16.msra.mxu1 %v2996_v44 }
 0x8de   :  { %2326 = vmatpush1.bf16.msra.mxu0 %v3336_v3 }
 0x8df   :  { %2327 = vmatprep.subr.bf16.mxu0 %v3337_v54 }
 0x8e2   :  { %2328 = vmatpush1.bf16.msra.mxu0 %v3338_v58 }
 0x8e3   :  { %2329 = vmatprep.subr.bf16.mxu0 %v3339_v20 }
 0x8e6   :  { %2330 = vmatpush1.bf16.msra.mxu0 %v3340_v18 }
 0x8e7   :  { %2331 = vmatprep.subr.bf16.mxu0 %v3341_v59 }
 0x8ea   :  { %2332 = vmatpush1.bf16.msra.mxu0 %v3342_v52 }
 0x8eb   :  { %2333 = vmatprep.subr.bf16.mxu0 %v3343_v2 }
 0x8ee   :  { %2334 = vmatpush1.bf16.msra.mxu0 %v3344_v0 }
 0x8ef   :  { %2335 = vmatprep.subr.bf16.mxu0 %v3345_v56  ;;  %v5770_v56 = vld [vmem:[#allocation82_spill] sm:$0xff] }
 0x8f2   :  { %2336 = vmatpush1.bf16.msra.mxu0 %v3346_v62 }
 0x8f3   :  { %2337 = vmatprep.subr.bf16.mxu0 %v3347_v61  ;;  %v5771_v61 = vld [vmem:[#allocation83_spill] sm:$0xff] }
 0x8f6   :  { %2338 = vmatpush1.bf16.msra.mxu0 %v3348_v55 }
 0x8f7   :  { %2339 = vmatprep.subr.bf16.mxu0 %v3349_v38 }
 0x8fa   :  { %2340 = vmatpush1.bf16.msra.mxu0 %v3350_v10 }
 0x8fd   :  { %2342 = vmatmul.mubr.bf16.vlgmr.msra.gmra.mrb[76].mxu0 %v2225_v29 }
 0x990   :  { %v2261_v11 = vpop.f32.mrb[72].mxu0  ;;  %v2302_v63 = vpop.f32.mrb[60].mxu1 }
 0x991   :  { %v2350_v39 = vadd.f32 %v2261_v11, %v5766_v36  ;;  %v2352_v13 = vadd.f32 %v2302_v63, %v5767_v37  ;;  %v2263_v46 = vpop.f32.mrb[73].mxu0  ;;  %v2304_v24 = vpop.f32.mrb[61].mxu1 }
 0x992   :  { %v2351_v23 = vadd.f32 %v2263_v46, %v5768_v26  ;;  %v2353_v25 = vadd.f32 %v2304_v24, %v5769_v60  ;;  %v2265_v8 = vpop.f32.mrb[74].mxu0  ;;  %v2306_v32 = vpop.f32.mrb[62].mxu1 }
 0x993   :  { %v2266_v19 = vpop.f32.mrb[75].mxu0  ;;  %v2307_v15 = vpop.f32.mrb[63].mxu1  ;;  %v2760_v30 = vmul.f32 -1.442695, %v2350_v39  ;;  %v2762_v29 = vmul.f32 -1.442695, %v2352_v13 }
 0x994   :  { %v2761_v31 = vmul.f32 -1.442695, %v2351_v23  ;;  %v2763_v49 = vmul.f32 -1.442695, %v2353_v25 }
 0x995   :  { %3137 = vpow2.f32 %v2760_v30 }
 0x996   :  { %3139 = vpow2.f32 %v2761_v31 }
 0x997   :  { %3141 = vpow2.f32 %v2762_v29 }
 0x998   :  { %3143 = vpow2.f32 %v2763_v49 }
 0x99f   :  { %v3138_v42 = vpop.eup %3137 }
 0x9a0   :  { %v3140_v43 = vpop.eup %3139  ;;  %v2366_v21 = vadd.f32 1.0, %v3138_v42 }
 0x9a1   :  { %v2367_v14 = vadd.f32 1.0, %v3140_v43  ;;  %v3142_v1 = vpop.eup %3141 }
 0x9a2   :  { %3145 = vrcp.f32 %v2366_v21  ;;  %v3144_v57 = vpop.eup %3143  ;;  %v2368_v5 = vadd.f32 1.0, %v3142_v1 }
 0x9a3   :  { %3147 = vrcp.f32 %v2367_v14  ;;  %v2369_v51 = vadd.f32 1.0, %v3144_v57 }
 0x9a4   :  { %3149 = vrcp.f32 %v2368_v5 }
 0x9a5   :  { %3151 = vrcp.f32 %v2369_v51 }
 0x9ac   :  { %v3146_v58 = vpop.eup %3145 }
 0x9ad   :  { %v3148_v59 = vpop.eup %3147 }
 0x9ae   :  { %v3150_v38 = vpop.eup %3149 }
 0x9af   :  { %v3152_v10 = vpop.eup %3151  ;;  %v2390_v17 = vmul.f32 %v3150_v38, %v5143_v35 }
 0x9b0   :  { %v2387_v41 = vsub.f32 1.0, %v3152_v10  ;;  %v2391_v9 = vmul.f32 %v3152_v10, %v5145_v22 }
 0x9d0   :  { %v2343_v40 = vpop.f32.mrb[76].mxu0 }
 0x9d1   :  { %v2378_v3 = vadd.f32 %v2343_v40, %v4171_v27  ;;  %v2345_v54 = vpop.f32.mrb[77].mxu0  ;;  %v2386_v27 = vsub.f32 1.0, %v3150_v38 }
 0x9d2   :  { %v2379_v20 = vadd.f32 %v2345_v54, %v4175_v28  ;;  %v2347_v18 = vpop.f32.mrb[78].mxu0 }
 0x9d3   :  { %v2380_v52 = vmul.f32 %v3146_v58, %v2378_v3  ;;  %v2348_v2 = vpop.f32.mrb[79].mxu0 }
 0x9d4   :  { %v2381_v0 = vmul.f32 %v3148_v59, %v2379_v20 }
 0x9d5   :  { %v2382_v62 = vadd.f32 %v2380_v52, %v5770_v56 }
 0x9d6   :  { %v2383_v55 = vadd.f32 %v2381_v0, %v5771_v61 }
 0x9d7   :  { %3153 = vtanh.f32 %v2382_v62 }
 0x9d8   :  { %3155 = vtanh.f32 %v2383_v55 }
 0x9e1   :  { %v3154_v47 = vpop.eup %3153 }
 0x9e2   :  { %v3156_v45 = vpop.eup %3155  ;;  %v2388_v28 = vmul.f32 %v3154_v47, %v2386_v27 }
 0x9e3   :  { %v2389_v12 = vmul.f32 %v3156_v45, %v2387_v41 }
 0x9e4   :  { %v2392_v33 = vadd.f32 %v2390_v17, %v2388_v28 }
 0x9e5   :  { %v2393_v53 = vadd.f32 %v2391_v9, %v2389_v12 }
 0x9e6   :  { %2395 = vst [vmem:[#allocation8 + $0x70] sm:$0xff] %v2392_v33  ;;  %v2397_v34 = vpack.c.bf16 %v2392_v33, %v2392_v33 }
 0x9e7   :  { %2396 = vst [vmem:[#allocation8 + $0x78] sm:$0xff] %v2393_v53  ;;  %v2398_v7 = vpack.c.bf16 %v2393_v53, %v2393_v53 }
 0x9e9   :  { %2566 = vmatprep.mubr.bf16.mxu1 %v2398_v7 }
 0x9ea   :  { %2567 = vmatmul.mubr.bf16.vlgmr.msra.gmra.mrb[64].mxu1 %v2397_v34 }
 0x9eb   :  { %3428 = shalt.err (!%p3425_p0)
}
 0x9ec   :  { %s3429_s12 = scalar_lea.hbm %s5203_s7, 2048 }
 0x9ed   :  { %p3430_p1 = scmp.ne.s32.totalorder %s5203_s7, %s3429_s12  ;;  %p3433_p2 = scmp.lt.u32.totalorder %s3429_s12, %s5203_s7 }
 0x9ef   :  { %p3435_p3 = pnand %p3433_p2, %p3430_p1 }
 0x9f1   :  { %3438 = shalt.err (!%p3435_p3)
}
 0x9f2   :  { %s3478_s19 = smov 256   ;;  %s3479_s20 = smov 16   ;;  %v2764_v22 = vld [vmem:[%s5202_s6] ss:$0 sm:$0xff] }
 0x9f3   :  { %2587 = dma.vmem_to_hbm [thread:$0]  %s2582_s28, 2048, %s5203_s7, [#allocation4], %s3478_s19, %s3478_s19, %s3479_s20  }
 0x9f4   :  { %s3480_s5 = smov [#allocation9]  }
 0x9f5   :  { %s2594_s21 = sshll.u32 %s3480_s5, 4  ;;  %s2595_s21 = int_to_ptr.vmem [resolvable:$true] %s2594_s21 }
 0x9f6   :  { %s3439_s22 = scalar_lea.vmem %s2595_s21, 128  ;;  %p3444_p5 = scmp.lt.s32.totalorder %s2595_s21, %s2595_s21 }
 0x9f7   :  { %p3440_p4 = scmp.ne.s32.totalorder %s2595_s21, %s3439_s22  ;;  %p3445_p6 = scmp.lt.s32.totalorder %s3439_s22, %s3439_s22 }
 0x9f9   :  { %p3446_p7 = por %p3445_p6, %p3444_p5 }
 0x9fb   :  { %p3447_p8 = pnand %p3446_p7, %p3440_p4 }
 0xabd   :  { %v2797_v35 = vpop.f32.mrb[64].mxu1 }
 0xabe   :  { %v2798_v50 = vpop.f32.mrb[65].mxu1 }
 0xabf   :  { %v2799_v48 = vadd.f32 %v2798_v50, %v2797_v35  ;;  %v2800_v4 = vpop.f32.mrb[66].mxu1 }
 0xac0   :  { %v2801_v16 = vpop.f32.mrb[67].mxu1 }
 0xac1   :  { %v2569_v6 = vadd.f32 %v2799_v48, %v2764_v22 }
 0xac3   :  { %3157 = vtanh.f32 %v2569_v6 }
 0xacd   :  { %v3158_v44 = vpop.eup %3157 }
 0xace   :  { %2575 = vst [vmem:[#allocation9] sm:$0xff] %v3158_v44 }
 0xacf   :  { %3450 = shalt.err (!%p3447_p8)
}
 0xad0   :  { %s3451_s23 = scalar_lea.hbm %s5204_s8, 128 }
 0xad1   :  { %p3452_p9 = scmp.ne.s32.totalorder %s5204_s8, %s3451_s23  ;;  %p3455_p10 = scmp.lt.u32.totalorder %s3451_s23, %s5204_s8 }
 0xad3   :  { %p3457_p11 = pnand %p3455_p10, %p3452_p9 }
 0xad5   :  { %3460 = shalt.err (!%p3457_p11)
}
 0xad6   :  { %2597 = dma.vmem_to_hbm [thread:$0]  %s2595_s21, 128, %s5204_s8, [#allocation10]  }
 0xad7   :  { %3465 = dma.done.wait [#allocation4], 2048  }
 0xad8   :  { %3466 = vsyncadd [#allocation4], 4294965248 }
 0xad9   :  { %3467 = dma.done.wait [#allocation10], 128  }
 0xada   :  { %3468 = vsyncadd [#allocation10], 4294967168 }
 0xadb   :  { %2604 = vsyncpa [#allocation3], 1 }
 0xadc   :  { %2605 = vsyncpa [#allocation6], 1 }
 0xadd   :  { %2606 = vsyncpa [#allocation4], 1 }
 0xade   :  { %2607 = vsyncpa [#allocation10], 1 }

</bundles_post_ra>
